<compile_context>
chip_gen: v7x
topology: tpu7x:2x2x1
jax: 0.10.0
libtpu: 0.0.40
codegen_flags: <defaults>
</compile_context>

<pallas_src>
import functools

import jax
import jax.numpy as jnp
import numpy as np
from jax.experimental import pallas as pl
from jax.experimental.pallas import tpu as pltpu


def _round_up(n, m):
    return ((n + m - 1) // m) * m


def _classifier_kernel(x_ref, w_ref, b_ref, o_ref):
    # x_ref: (tb, 12000)  w_ref: (12000, 50) bf16  b_ref: (1, 50)  o_ref: (tb, 50)
    x = x_ref[...].astype(jnp.bfloat16)            # 1-pass bf16 MXU, f32 accumulate
    y = jnp.dot(x, w_ref[...], preferred_element_type=jnp.float32)
    y = y + b_ref[...]
    o_ref[...] = jax.nn.sigmoid(y).astype(o_ref.dtype)


def fold_classifier_params(w, b, pool_hw=25):
    """Fold AvgPool2d(5) into the Linear weight.  Call ONCE (hoisted out of the
    per-forward path): w (50, 480) -> (12000, 50) bf16, b (50,) -> (1, 50) f32."""
    w_full = jnp.repeat(w.T.astype(jnp.float32), pool_hw, axis=0) * (1.0 / pool_hw)
    return w_full.astype(jnp.bfloat16), b.reshape(1, -1).astype(jnp.float32)


@functools.partial(jax.jit, static_argnames=("tb", "vmem_limit_bytes"))
def classifier_brats_nnunet_fwd(x, w_full, b_row, *, tb=256,
                                vmem_limit_bytes=48 * 1024 * 1024):
    """x: (B, 480, 5, 5) NCHW (any float dtype); w_full/b_row from
    fold_classifier_params.  Returns sigmoid(fc(avgpool(x)))."""
    B = x.shape[0]
    K = int(np.prod(x.shape[1:]))        # 480 * 5 * 5 = 12000
    O = w_full.shape[1]                  # 50
    assert w_full.shape[0] == K

    # Lane-dense, contiguous view of the activations (bitcast under jit).
    x_flat = x.reshape(B, K)

    # Tile the batch:
    #  - cap tb so the grid has >=2 steps when B allows (v7x megacore sharding),
    #  - keep tb a multiple of 8 (sublane constraint), or tb == B for tiny B
    #    (block dims equal to full array dims are always legal).
    tb = max(8, min(tb, _round_up(pl.cdiv(B, 2), 8)))
    if tb >= B:
        tb = B
    grid = pl.cdiv(B, tb)                # ragged last block handled by Pallas

    out = pl.pallas_call(
        _classifier_kernel,
        out_shape=jax.ShapeDtypeStruct((B, O), jnp.float32),
        grid_spec=pltpu.PrefetchScalarGridSpec(
            num_scalar_prefetch=0,
            grid=(grid,),
            in_specs=[
                # Activations: tiled over batch, double-buffered (default).
                pl.BlockSpec((tb, K), lambda i: (i, 0)),
                # Folded weight: resident, single buffer (constant index_map).
                pl.BlockSpec((K, O), lambda i: (0, 0),
                             pipeline_mode=pl.Buffered(1)),
                # Bias: resident, single buffer.
                pl.BlockSpec((1, O), lambda i: (0, 0),
                             pipeline_mode=pl.Buffered(1)),
            ],
            out_specs=pl.BlockSpec((tb, O), lambda i: (i, 0)),
        ),
        compiler_params=pltpu.CompilerParams(
            dimension_semantics=("parallel",),
            vmem_limit_bytes=vmem_limit_bytes,
        ),
    )(x_flat, w_full, b_row)

    # torch semantics: .squeeze() drops the batch dim only when B == 1.
    return jnp.squeeze(out, axis=0) if B == 1 else out


def _reference_f64(x, w, b):
    xd = np.asarray(x, dtype=np.float64)
    wd = np.asarray(w, dtype=np.float64)
    bd = np.asarray(b, dtype=np.float64)
    pooled = xd.mean(axis=(2, 3))            # (B, 480)
    z = pooled @ wd.T + bd                   # (B, 50)
    return 1.0 / (1.0 + np.exp(-z))


if __name__ == "__main__":
    key = jax.random.PRNGKey(0)
    kx, kw, kb = jax.random.split(key, 3)

    B = 2
    # Forward implies C=480, H=W=5 so AvgPool2d(5) -> [B,480,1,1] feeds Linear(480,50).
    x = jax.random.normal(kx, (B, 480, 5, 5), dtype=jnp.float32)

    # Deterministic Linear(480, 50) params (PyTorch-style U(-1/sqrt(480), 1/sqrt(480))).
    bound = 1.0 / float(np.sqrt(480.0))
    w = jax.random.uniform(kw, (50, 480), minval=-bound, maxval=bound, dtype=jnp.float32)
    b = jax.random.uniform(kb, (50,), minval=-bound, maxval=bound, dtype=jnp.float32)

    # Fold pool into weight once (hoisted out of the per-call path).
    w_full, b_row = fold_classifier_params(w, b)

    out = jax.block_until_ready(classifier_brats_nnunet_fwd(x, w_full, b_row))
    ref = _reference_f64(x, w, b)
    assert out.shape == (B, 50), out.shape
    # Tolerance covers bf16 input rounding over the folded K=12000 contraction
    # (measured error << 1e-3); structural bugs produce errors >> 1e-2.
    np.testing.assert_allclose(np.asarray(out, np.float64), ref, atol=3e-3, rtol=3e-3)

    # Ragged-batch path: B % tb != 0 exercises Pallas's clipped input DMA and
    # masked output stores on the last grid step (no padding round trip).
    B2 = 20
    x2 = jax.random.normal(kx, (B2, 480, 5, 5), dtype=jnp.float32)
    out2 = jax.block_until_ready(classifier_brats_nnunet_fwd(x2, w_full, b_row))
    ref2 = _reference_f64(x2, w, b)
    assert out2.shape == (B2, 50), out2.shape
    np.testing.assert_allclose(np.asarray(out2, np.float64), ref2, atol=3e-3, rtol=3e-3)

    print("KERNEL_OK")
</pallas_src>

<mosaic_0001>
module attributes {stable_mosaic.version = 11 : i64} {
  func.func @_classifier_kernel(%arg0: i32, %arg1: memref<2x12000xf32, #tpu.memory_space<vmem>>, %arg2: memref<12000x50xbf16, #tpu.memory_space<vmem>>, %arg3: memref<1x50xf32, #tpu.memory_space<vmem>>, %arg4: memref<2x50xf32, #tpu.memory_space<vmem>>) attributes {dimension_semantics = [#tpu.dimension_semantics<parallel>], iteration_bounds = array<i64: 1>, scalar_prefetch = 0 : i64, scratch_operands = 0 : i64, tpu.core_type = #tpu.core_type<tc>, window_params = [{transform_indices = @transform_0, window_bounds = array<i64: 2, 12000>}, {pipeline_mode = #tpu.pipeline_mode<synchronous>, transform_indices = @transform_1, window_bounds = array<i64: 12000, 50>}, {pipeline_mode = #tpu.pipeline_mode<synchronous>, transform_indices = @transform_2, window_bounds = array<i64: 1, 50>}, {transform_indices = @transform_3, window_bounds = array<i64: 2, 50>}]} {
    %c0 = arith.constant 0 : index
    %c0_0 = arith.constant 0 : index
    %0 = vector.load %arg1[%c0, %c0_0] : memref<2x12000xf32, #tpu.memory_space<vmem>>, vector<2x12000xf32>
    %1 = arith.truncf %0 : vector<2x12000xf32> to vector<2x12000xbf16>
    %c0_1 = arith.constant 0 : index
    %c0_2 = arith.constant 0 : index
    %2 = vector.load %arg2[%c0_1, %c0_2] : memref<12000x50xbf16, #tpu.memory_space<vmem>>, vector<12000x50xbf16>
    %cst = arith.constant dense<0.000000e+00> : vector<2x50xf32>
    %3 = tpu.matmul %1, %2, %cst {dimension_numbers = #tpu.dot_dimension_numbers<[1], [0], [0], [1], [0, 0, 1, 1], [], []>} : vector<2x12000xbf16>, vector<12000x50xbf16>, vector<2x50xf32> -> vector<2x50xf32>
    %c0_3 = arith.constant 0 : index
    %c0_4 = arith.constant 0 : index
    %4 = vector.load %arg3[%c0_3, %c0_4] : memref<1x50xf32, #tpu.memory_space<vmem>>, vector<1x50xf32>
    %5 = vector.broadcast %4 : vector<1x50xf32> to vector<2x50xf32>
    %6 = arith.addf %3, %5 : vector<2x50xf32>
    %7 = arith.negf %6 : vector<2x50xf32>
    %8 = math.exp %7 : vector<2x50xf32>
    %cst_5 = arith.constant 1.000000e+00 : f32
    %9 = vector.broadcast %cst_5 : f32 to vector<2x50xf32>
    %10 = arith.addf %9, %8 : vector<2x50xf32>
    %11 = arith.divf %9, %10 : vector<2x50xf32>
    %c0_6 = arith.constant 0 : index
    %c0_7 = arith.constant 0 : index
    %12 = vector.load %arg4[%c0_6, %c0_7] : memref<2x50xf32, #tpu.memory_space<vmem>>, vector<2x50xf32>
    tpu.vector_store %arg4[%c0_6, %c0_7], %11 {strides = array<i32>} : memref<2x50xf32, #tpu.memory_space<vmem>>, vector<2x50xf32>,
    return
  }
  func.func @transform_0(%arg0: i32) -> (i32, i32) {
    %c0_i32 = arith.constant 0 : i32
    %c0_i32_0 = arith.constant 0 : i32
    return %arg0, %c0_i32 : i32, i32
  }
  func.func @transform_1(%arg0: i32) -> (i32, i32) {
    %c0_i32 = arith.constant 0 : i32
    %c0_i32_0 = arith.constant 0 : i32
    %c0_i32_1 = arith.constant 0 : i32
    return %c0_i32, %c0_i32_0 : i32, i32
  }
  func.func @transform_2(%arg0: i32) -> (i32, i32) {
    %c0_i32 = arith.constant 0 : i32
    %c0_i32_0 = arith.constant 0 : i32
    %c0_i32_1 = arith.constant 0 : i32
    return %c0_i32, %c0_i32_0 : i32, i32
  }
  func.func @transform_3(%arg0: i32) -> (i32, i32) {
    %c0_i32 = arith.constant 0 : i32
    %c0_i32_0 = arith.constant 0 : i32
    return %arg0, %c0_i32 : i32, i32
  }
}

</mosaic_0001>

<bundles_post_ra>
// kernel: classifier_brats_nnunet_fwd.1
= control target key start
LH: loop header
LB: loop body
LE: loop exit
PB: predicated region body
PF: predicated region fallthrough
CT: control target
= control target key end

     0   :  { %v68_v23 = vlaneseq  ;;  %v11134_v31 = vmov 1983009808   ;;  %s13810_s0 = inlined_call_operand.vmem [shape: f32[2,12000], index: 0, kind: input, shape index: {}]   ;;  %s13811_s1 = inlined_call_operand.vmem [shape: bf16[12000,50], index: 1, kind: input, shape index: {}]   ;;  %s13812_s2 = inlined_call_operand.vmem [shape: f32[1,50], index: 2, kind: input, shape index: {}]   ;;  %s13813_s3 = inlined_call_operand.hbm [shape: f32[2,50], index: 3, kind: output, shape index: {}]  }
   0x1   :  { %v10333_v0 = vld [vmem:[%s13811_s1 + $0x40] sm:$0xff]   ;;  %v10335_v2 = vld [vmem:[%s13811_s1 + $0x48] sm:$0xff]   ;;  %v10337_v4 = vld [vmem:[%s13811_s1 + $0x50] sm:$0xff]   ;;  %v66_v32 = vunpack.c.l.s4 %v11134_v31 }
   0x2   :  { %v10334_v1 = vld [vmem:[%s13811_s1] sm:$0xff]   ;;  %9318 = vmatprep.subr.bf16.mxu1 %v10333_v0  ;;  %v10336_v3 = vld [vmem:[%s13811_s1 + $0x8] sm:$0xff]   ;;  %v10338_v5 = vld [vmem:[%s13811_s1 + $0x10] sm:$0xff]   ;;  %v69_v28 = vshrl.u32 %v68_v23, 7 }
   0x3   :  { %9319 = vmatpush3.bf16.msra.mxu1 %v10334_v1  ;;  %v10339_v6 = vld [vmem:[%s13811_s1 + $0x140] sm:$0xff]   ;;  %v10341_v8 = vld [vmem:[%s13811_s1 + $0x58] sm:$0xff]   ;;  %v10343_v10 = vld [vmem:[%s13811_s1 + $0x148] sm:$0xff]   ;;  %v67_v35 = vunpack.c.0.s8 %v66_v32 }
   0x4   :  { %9320 = vmatprep.subr.bf16.mxu1 %v10335_v2  ;;  %v10340_v7 = vld [vmem:[%s13811_s1 + $0x100] sm:$0xff]   ;;  %9362 = vmatprep.subr.bf16.mxu0 %v10339_v6  ;;  %v10342_v9 = vld [vmem:[%s13811_s1 + $0x18] sm:$0xff]   ;;  %v10344_v11 = vld [vmem:[%s13811_s1 + $0x108] sm:$0xff]  }
   0x5   :  { %9363 = vmatpush3.bf16.msra.mxu0 %v10340_v7  ;;  %v10345_v12 = vld [vmem:[%s13811_s1 + $0x60] sm:$0xff]   ;;  %v10347_v14 = vld [vmem:[%s13811_s1 + $0x150] sm:$0xff]   ;;  %v10349_v16 = vld [vmem:[%s13811_s1 + $0x68] sm:$0xff]   ;;  %v11250_v37 = vsub.s32 %v67_v35, %v69_v28 }
   0x6   :  { %9364 = vmatprep.subr.bf16.mxu0 %v10343_v10  ;;  %v10346_v13 = vld [vmem:[%s13811_s1 + $0x20] sm:$0xff]   ;;  %v10348_v15 = vld [vmem:[%s13811_s1 + $0x110] sm:$0xff]   ;;  %v10350_v17 = vld [vmem:[%s13811_s1 + $0x28] sm:$0xff]  }
   0x7   :  { %9321 = vmatpush3.bf16.msra.mxu1 %v10336_v3  ;;  %v10351_v18 = vld [vmem:[%s13811_s1 + $0x158] sm:$0xff]   ;;  %v10353_v20 = vld [vmem:[%s13811_s1 + $0x70] sm:$0xff]   ;;  %v10355_v22 = vld [vmem:[%s13811_s1 + $0x160] sm:$0xff]  }
   0x8   :  { %9322 = vmatprep.subr.bf16.mxu1 %v10337_v4  ;;  %v10352_v19 = vld [vmem:[%s13811_s1 + $0x118] sm:$0xff]   ;;  %v10354_v21 = vld [vmem:[%s13811_s1 + $0x30] sm:$0xff]   ;;  %v10356_v24 = vld [vmem:[%s13811_s1 + $0x120] sm:$0xff]  }
   0x9   :  { %9365 = vmatpush3.bf16.msra.mxu0 %v10344_v11  ;;  %v10357_v25 = vld [vmem:[%s13811_s1 + $0x78] sm:$0xff]   ;;  %v10359_v27 = vld [vmem:[%s13811_s1 + $0x168] sm:$0xff]   ;;  %v16_v29 = vld [vmem:[%s13810_s0] sm:$0xff] }
   0xa   :  { %9366 = vmatprep.subr.bf16.mxu0 %v10347_v14  ;;  %v10358_v26 = vld [vmem:[%s13811_s1 + $0x38] sm:$0xff]   ;;  %v10361_v30 = vld [vmem:[%s13811_s1 + $0x128] sm:$0xff]   ;;  %v10362_v33 = vld [vmem:[%s13811_s1 + $0xc0] sm:$0xff]   ;;  %v64_v34 = vcombine.high %v16_v29, %v16_v29  ;;  %v71_v39 = vrot.slane %v16_v29, %v11250_v37 }
   0xb   :  { %9323 = vmatpush3.bf16.msra.mxu1 %v10338_v5  ;;  %v10364_v36 = vld [vmem:[%s13811_s1 + $0x170] sm:$0xff]   ;;  %v10368_v41 = vld [vmem:[%s13811_s1 + $0x178] sm:$0xff]   ;;  %v10363_v46 = vld [vmem:[%s13811_s1 + $0x80] sm:$0xff]  }
   0xc   :  { %9324 = vmatprep.subr.bf16.mxu1 %v10341_v8  ;;  %v10365_v38 = vld [vmem:[%s13811_s1 + $0x130] sm:$0xff]   ;;  %v11257_v40 = vrot.slane %v64_v34, %v11250_v37  ;;  %v79_v42 = vcombine.high %v71_v39, %v71_v39  ;;  %v10369_v43 = vld [vmem:[%s13811_s1 + $0x138] sm:$0xff]   ;;  %v557_v45 = vpack.c.bf16 %v71_v39, %v71_v39  ;;  %v10366_v48 = vld [vmem:[%s13811_s1 + $0xc8] sm:$0xff]  }
   0xd   :  { %9367 = vmatpush3.bf16.msra.mxu0 %v10348_v15  ;;  %v17_v49 = vld [vmem:[%s13810_s0 + $0x8] sm:$0xff]  ;;  %v10373_v52 = vld [vmem:[%s13811_s1 + $0x240] sm:$0xff]   ;;  %v10370_v55 = vld [vmem:[%s13811_s1 + $0xd0] sm:$0xff]  }
   0xe   :  { %9368 = vmatprep.subr.bf16.mxu0 %v10351_v18  ;;  %v80_v44 = vcombine.high %v11257_v40, %v11257_v40  ;;  %v558_v47 = vpack.c.bf16 %v79_v42, %v79_v42  ;;  %v88_v51 = vrot.slane %v17_v49, %v11250_v37  ;;  %v10367_v53 = vld [vmem:[%s13811_s1 + $0x88] sm:$0xff]   ;;  %v10374_v58 = vld [vmem:[%s13811_s1 + $0x200] sm:$0xff]   ;;  %v10371_v60 = vld [vmem:[%s13811_s1 + $0x90] sm:$0xff]   ;;  %v559_v23 = vpack.c.bf16 %v11257_v40, %v11257_v40 }
   0xf   :  { %9325 = vmatpush3.bf16.msra.mxu1 %v10342_v9  ;;  %v10377_v59 = vld [vmem:[%s13811_s1 + $0x248] sm:$0xff]   ;;  %v10375_v61 = vld [vmem:[%s13811_s1 + $0xd8] sm:$0xff]   ;;  %v10381_v63 = vld [vmem:[%s13811_s1 + $0x250] sm:$0xff]   ;;  %v81_v9 = vcombine.high %v17_v49, %v17_v49 }
  0x10   :  { %9326 = vmatprep.subr.bf16.mxu1 %v10345_v12  ;;  %v560_v50 = vpack.c.bf16 %v80_v44, %v80_v44  ;;  %6694 = vmatprep.mubr.bf16.mxu1 %v558_v47  ;;  %v96_v54 = vcombine.high %v88_v51, %v88_v51  ;;  %v561_v56 = vpack.c.bf16 %v88_v51, %v88_v51  ;;  %v10378_v62 = vld [vmem:[%s13811_s1 + $0x208] sm:$0xff]   ;;  %v10376_v0 = vld [vmem:[%s13811_s1 + $0x98] sm:$0xff]   ;;  %v10379_v1 = vld [vmem:[%s13811_s1 + $0xe0] sm:$0xff]  }
  0x11   :  { %9369 = vmatpush3.bf16.msra.mxu0 %v10352_v19  ;;  %v10382_v2 = vld [vmem:[%s13811_s1 + $0x210] sm:$0xff]   ;;  %v10385_v3 = vld [vmem:[%s13811_s1 + $0x258] sm:$0xff]   ;;  %v10380_v4 = vld [vmem:[%s13811_s1 + $0xa0] sm:$0xff]   ;;  %v11347_v15 = vrot.slane %v81_v9, %v11250_v37 }
  0x12   :  { %9370 = vmatprep.subr.bf16.mxu0 %v10355_v22  ;;  %v562_v57 = vpack.c.bf16 %v96_v54, %v96_v54  ;;  %v10383_v5 = vld [vmem:[%s13811_s1 + $0xe8] sm:$0xff]   ;;  %v10386_v6 = vld [vmem:[%s13811_s1 + $0x218] sm:$0xff]   ;;  %v10389_v7 = vld [vmem:[%s13811_s1 + $0x260] sm:$0xff]  }
  0x13   :  { %9327 = vmatpush3.bf16.msra.mxu1 %v10346_v13  ;;  %v10384_v8 = vld [vmem:[%s13811_s1 + $0xa8] sm:$0xff]   ;;  %v10387_v10 = vld [vmem:[%s13811_s1 + $0xf0] sm:$0xff]   ;;  %v10390_v11 = vld [vmem:[%s13811_s1 + $0x220] sm:$0xff]  }
  0x14   :  { %9328 = vmatprep.subr.bf16.mxu1 %v10349_v16  ;;  %6774 = vmatprep.mubr.bf16.mxu0 %v562_v57  ;;  %v10393_v12 = vld [vmem:[%s13811_s1 + $0x268] sm:$0xff]   ;;  %v10388_v13 = vld [vmem:[%s13811_s1 + $0xb0] sm:$0xff]   ;;  %v10391_v14 = vld [vmem:[%s13811_s1 + $0xf8] sm:$0xff]  }
  0x15   :  { %9371 = vmatpush3.bf16.msra.mxu0 %v10356_v24  ;;  %v10394_v16 = vld [vmem:[%s13811_s1 + $0x228] sm:$0xff]   ;;  %v10392_v18 = vld [vmem:[%s13811_s1 + $0xb8] sm:$0xff]   ;;  %v10395_v19 = vld [vmem:[%s13811_s1 + $0x1c0] sm:$0xff]  }
  0x16   :  { %9372 = vmatprep.subr.bf16.mxu0 %v10359_v27  ;;  %v10401_v22 = vld [vmem:[%s13811_s1 + $0x278] sm:$0xff]   ;;  %v10396_v24 = vld [vmem:[%s13811_s1 + $0x180] sm:$0xff]   ;;  %v10400_v31 = vld [vmem:[%s13811_s1 + $0x188] sm:$0xff]  }
  0x17   :  { %9329 = vmatpush3.bf16.msra.mxu1 %v10350_v17  ;;  %v10397_v17 = vld [vmem:[%s13811_s1 + $0x270] sm:$0xff]   ;;  %v10402_v28 = vld [vmem:[%s13811_s1 + $0x238] sm:$0xff]   ;;  %v10411_v44 = vld [vmem:[%s13811_s1 + $0x1e0] sm:$0xff]  }
  0x18   :  { %9330 = vmatprep.subr.bf16.mxu1 %v10353_v20  ;;  %v97_v20 = vcombine.high %v11347_v15, %v11347_v15  ;;  %v10404_v39 = vld [vmem:[%s13811_s1 + $0x190] sm:$0xff]   ;;  %v10407_v40 = vld [vmem:[%s13811_s1 + $0x1d8] sm:$0xff]   ;;  %v10412_v47 = vld [vmem:[%s13811_s1 + $0x1a0] sm:$0xff]  }
  0x19   :  { %9373 = vmatpush3.bf16.msra.mxu0 %v10361_v30  ;;  %v10405_v30 = vld [vmem:[%s13811_s1 + $0x340] sm:$0xff]   ;;  %v10413_v42 = vld [vmem:[%s13811_s1 + $0x350] sm:$0xff]   ;;  %v10418_v49 = vld [vmem:[%s13811_s1 + $0x318] sm:$0xff]  }
  0x1a   :  { %9374 = vmatprep.subr.bf16.mxu0 %v10364_v36  ;;  %v564_v27 = vpack.c.bf16 %v97_v20, %v97_v20  ;;  %v10406_v36 = vld [vmem:[%s13811_s1 + $0x300] sm:$0xff]   ;;  %v10416_v51 = vld [vmem:[%s13811_s1 + $0x1a8] sm:$0xff]   ;;  %v10423_v57 = vld [vmem:[%s13811_s1 + $0x1f8] sm:$0xff]  }
  0x1b   :  { %9331 = vmatpush3.bf16.msra.mxu1 %v10354_v21  ;;  %v10398_v21 = vld [vmem:[%s13811_s1 + $0x230] sm:$0xff]   ;;  %v10422_v54 = vld [vmem:[%s13811_s1 + $0x320] sm:$0xff]  }
  0x1c   :  { %9332 = vmatprep.subr.bf16.mxu1 %v10357_v25  ;;  %v10399_v25 = vld [vmem:[%s13811_s1 + $0x1c8] sm:$0xff]   ;;  %v10437_v9 = vld [vmem:[%s13811_s1 + $0x440] sm:$0xff]   ;;  %v10445_v20 = vld [vmem:[%s13811_s1 + $0x450] sm:$0xff]  }
  0x1d   :  { %9375 = vmatpush3.bf16.msra.mxu0 %v10365_v38  ;;  %v10409_v38 = vld [vmem:[%s13811_s1 + $0x348] sm:$0xff]  }
  0x1e   :  { %9376 = vmatprep.subr.bf16.mxu0 %v10368_v41  ;;  %v10410_v41 = vld [vmem:[%s13811_s1 + $0x308] sm:$0xff]  }
  0x1f   :  { %9333 = vmatpush3.bf16.msra.mxu1 %v10358_v26  ;;  %v18_v26 = vld [vmem:[%s13810_s0 + $0x10] sm:$0xff] }
  0x20   :  { %9340 = vmatprep.subr.bf16.mxu1 %v10362_v33  ;;  %v105_v29 = vrot.slane %v18_v26, %v11250_v37  ;;  %v10403_v33 = vld [vmem:[%s13811_s1 + $0x1d0] sm:$0xff]  }
  0x21   :  { %9377 = vmatpush3.bf16.msra.mxu0 %v10369_v43  ;;  %v10408_v43 = vld [vmem:[%s13811_s1 + $0x198] sm:$0xff]  }
  0x22   :  { %6695 = vmatmul.mubr.bf16.vlgmr.msra.gmra.mrb[0].mxu1 %v557_v45  ;;  %9406 = vmatprep.subr.bf16.mxu0 %v10373_v52  ;;  %v113_v32 = vcombine.high %v105_v29, %v105_v29  ;;  %v565_v34 = vpack.c.bf16 %v105_v29, %v105_v29  ;;  %v10414_v45 = vld [vmem:[%s13811_s1 + $0x310] sm:$0xff]   ;;  %v10448_v29 = vld [vmem:[%s13811_s1 + $0x2a8] sm:$0xff]  }
  0x23   :  { %9341 = vmatpush3.bf16.msra.mxu1 %v10363_v46  ;;  %6734 = vmatprep.mubr.bf16.mxu1 %v560_v50  ;;  %v10417_v46 = vld [vmem:[%s13811_s1 + $0x358] sm:$0xff]   ;;  %v10421_v50 = vld [vmem:[%s13811_s1 + $0x360] sm:$0xff]   ;;  %v10419_v52 = vld [vmem:[%s13811_s1 + $0x1f0] sm:$0xff]  }
  0x24   :  { %9342 = vmatprep.subr.bf16.mxu1 %v10366_v48  ;;  %6775 = vmatmul.mubr.bf16.vlgmr.msra.gmra.mrb[0].mxu0 %v561_v56  ;;  %v566_v35 = vpack.c.bf16 %v113_v32, %v113_v32  ;;  %v10415_v48 = vld [vmem:[%s13811_s1 + $0x1e8] sm:$0xff]   ;;  %v10420_v56 = vld [vmem:[%s13811_s1 + $0x1b0] sm:$0xff]   ;;  %v10454_v32 = vld [vmem:[%s13811_s1 + $0x420] sm:$0xff]  }
  0x25   :  { %9407 = vmatpush3.bf16.msra.mxu0 %v10374_v58 }
  0x26   :  { %9408 = vmatprep.subr.bf16.mxu0 %v10377_v59  ;;  %6854 = vmatprep.mubr.bf16.mxu0 %v566_v35  ;;  %v10426_v59 = vld [vmem:[%s13811_s1 + $0x328] sm:$0xff]  }
  0x27   :  { %9343 = vmatpush3.bf16.msra.mxu1 %v10367_v53  ;;  %v98_v53 = vcombine.high %v18_v26, %v18_v26  ;;  %v10447_v26 = vld [vmem:[%s13811_s1 + $0x2e8] sm:$0xff]  }
  0x28   :  { %9344 = vmatprep.subr.bf16.mxu1 %v10370_v55  ;;  %v10425_v55 = vld [vmem:[%s13811_s1 + $0x368] sm:$0xff]  }
  0x29   :  { %9409 = vmatpush3.bf16.msra.mxu0 %v10378_v62  ;;  %v11454_v58 = vrot.slane %v98_v53, %v11250_v37  ;;  %v10427_v62 = vld [vmem:[%s13811_s1 + $0x2c0] sm:$0xff]   ;;  %v10465_v53 = vld [vmem:[%s13811_s1 + $0x388] sm:$0xff]  }
  0x2a   :  { %9410 = vmatprep.subr.bf16.mxu0 %v10381_v63 }
  0x2b   :  { %9345 = vmatpush3.bf16.msra.mxu1 %v10371_v60  ;;  %v10429_v60 = vld [vmem:[%s13811_s1 + $0x370] sm:$0xff]   ;;  %v114_v63 = vcombine.high %v11454_v58, %v11454_v58 }
  0x2c   :  { %9346 = vmatprep.subr.bf16.mxu1 %v10375_v61  ;;  %v10424_v61 = vld [vmem:[%s13811_s1 + $0x1b8] sm:$0xff]  }
  0x2d   :  { %9411 = vmatpush3.bf16.msra.mxu0 %v10382_v2  ;;  %v10433_v2 = vld [vmem:[%s13811_s1 + $0x378] sm:$0xff]  }
  0x2e   :  { %9412 = vmatprep.subr.bf16.mxu0 %v10385_v3  ;;  %v563_v3 = vpack.c.bf16 %v11347_v15, %v11347_v15  ;;  %v10438_v15 = vld [vmem:[%s13811_s1 + $0x400] sm:$0xff]  }
  0x2f   :  { %9347 = vmatpush3.bf16.msra.mxu1 %v10376_v0  ;;  %v10430_v0 = vld [vmem:[%s13811_s1 + $0x330] sm:$0xff]  }
  0x30   :  { %9348 = vmatprep.subr.bf16.mxu1 %v10379_v1  ;;  %v10428_v1 = vld [vmem:[%s13811_s1 + $0x280] sm:$0xff]  }
  0x31   :  { %9413 = vmatpush3.bf16.msra.mxu0 %v10386_v6  ;;  %v568_v6 = vpack.c.bf16 %v114_v63, %v114_v63  ;;  %v10478_v63 = vld [vmem:[%s13811_s1 + $0x550] sm:$0xff]  }
  0x32   :  { %9414 = vmatprep.subr.bf16.mxu0 %v10389_v7  ;;  %v19_v7 = vld [vmem:[%s13810_s0 + $0x18] sm:$0xff] }
  0x33   :  { %9349 = vmatpush3.bf16.msra.mxu1 %v10380_v4  ;;  %v10431_v4 = vld [vmem:[%s13811_s1 + $0x2c8] sm:$0xff]  }
  0x34   :  { %9350 = vmatprep.subr.bf16.mxu1 %v10383_v5  ;;  %v10434_v5 = vld [vmem:[%s13811_s1 + $0x338] sm:$0xff]  }
  0x35   :  { %9415 = vmatpush3.bf16.msra.mxu0 %v10390_v11 }
  0x36   :  { %9416 = vmatprep.subr.bf16.mxu0 %v10393_v12  ;;  %v10435_v12 = vld [vmem:[%s13811_s1 + $0x2d0] sm:$0xff]  }
  0x37   :  { %9351 = vmatpush3.bf16.msra.mxu1 %v10384_v8  ;;  %v122_v8 = vrot.slane %v19_v7, %v11250_v37 }
  0x38   :  { %9352 = vmatprep.subr.bf16.mxu1 %v10387_v10  ;;  %v10432_v10 = vld [vmem:[%s13811_s1 + $0x288] sm:$0xff]  }
  0x39   :  { %9417 = vmatpush3.bf16.msra.mxu0 %v10394_v16  ;;  %v130_v11 = vcombine.high %v122_v8, %v122_v8  ;;  %v10441_v16 = vld [vmem:[%s13811_s1 + $0x448] sm:$0xff]  }
  0x3a   :  { %9418 = vmatprep.subr.bf16.mxu0 %v10397_v17  ;;  %v10436_v17 = vld [vmem:[%s13811_s1 + $0x290] sm:$0xff]  }
  0x3b   :  { %9353 = vmatpush3.bf16.msra.mxu1 %v10388_v13  ;;  %v569_v13 = vpack.c.bf16 %v122_v8, %v122_v8  ;;  %v10481_v8 = vld [vmem:[%s13811_s1 + $0x3a8] sm:$0xff]  }
  0x3c   :  { %9354 = vmatprep.subr.bf16.mxu1 %v10391_v14  ;;  %v570_v14 = vpack.c.bf16 %v130_v11, %v130_v11  ;;  %v10487_v11 = vld [vmem:[%s13811_s1 + $0x520] sm:$0xff]  }
  0x3d   :  { %9419 = vmatpush3.bf16.msra.mxu0 %v10398_v21  ;;  %v10440_v21 = vld [vmem:[%s13811_s1 + $0x298] sm:$0xff]  }
  0x3e   :  { %9420 = vmatprep.subr.bf16.mxu0 %v10401_v22  ;;  %v10443_v22 = vld [vmem:[%s13811_s1 + $0x2e0] sm:$0xff]  }
  0x3f   :  { %9355 = vmatpush3.bf16.msra.mxu1 %v10392_v18  ;;  %v10439_v18 = vld [vmem:[%s13811_s1 + $0x2d8] sm:$0xff]  }
  0x40   :  { %9384 = vmatprep.subr.bf16.mxu1 %v10395_v19  ;;  %v10442_v19 = vld [vmem:[%s13811_s1 + $0x408] sm:$0xff]  }
  0x41   :  { %9421 = vmatpush3.bf16.msra.mxu0 %v10402_v28  ;;  %v10453_v28 = vld [vmem:[%s13811_s1 + $0x460] sm:$0xff]  }
  0x42   :  { %6735 = vmatmul.mubr.bf16.vlgmr.msra.gmra.mrb[4].mxu1 %v559_v23  ;;  %9450 = vmatprep.subr.bf16.mxu0 %v10405_v30  ;;  %v10446_v23 = vld [vmem:[%s13811_s1 + $0x410] sm:$0xff]   ;;  %v115_v30 = vcombine.high %v19_v7, %v19_v7  ;;  %v10486_v7 = vld [vmem:[%s13811_s1 + $0x560] sm:$0xff]  }
  0x43   :  { %9385 = vmatpush3.bf16.msra.mxu1 %v10396_v24  ;;  %6814 = vmatprep.mubr.bf16.mxu1 %v564_v27  ;;  %v10449_v24 = vld [vmem:[%s13811_s1 + $0x458] sm:$0xff]  }
  0x44   :  { %9386 = vmatprep.subr.bf16.mxu1 %v10399_v25  ;;  %6855 = vmatmul.mubr.bf16.vlgmr.msra.gmra.mrb[4].mxu0 %v565_v34  ;;  %v10444_v25 = vld [vmem:[%s13811_s1 + $0x2a0] sm:$0xff]   ;;  %v10450_v27 = vld [vmem:[%s13811_s1 + $0x418] sm:$0xff]   ;;  %v10452_v34 = vld [vmem:[%s13811_s1 + $0x2b0] sm:$0xff]   ;;  %v11558_v35 = vrot.slane %v115_v30, %v11250_v37 }
  0x45   :  { %9451 = vmatpush3.bf16.msra.mxu0 %v10406_v36  ;;  %6934 = vmatprep.mubr.bf16.mxu0 %v570_v14  ;;  %v10455_v36 = vld [vmem:[%s13811_s1 + $0x2f8] sm:$0xff]   ;;  %v10503_v30 = vld [vmem:[%s13811_s1 + $0x640] sm:$0xff]  }
  0x46   :  { %9452 = vmatprep.subr.bf16.mxu0 %v10409_v38  ;;  %v10459_v38 = vld [vmem:[%s13811_s1 + $0x428] sm:$0xff]  }
  0x47   :  { %9387 = vmatpush3.bf16.msra.mxu1 %v10400_v31  ;;  %v10451_v31 = vld [vmem:[%s13811_s1 + $0x2f0] sm:$0xff]  }
  0x48   :  { %9388 = vmatprep.subr.bf16.mxu1 %v10403_v33  ;;  %v10457_v33 = vld [vmem:[%s13811_s1 + $0x468] sm:$0xff]  }
  0x49   :  { %9453 = vmatpush3.bf16.msra.mxu0 %v10410_v41  ;;  %v131_v41 = vcombine.high %v11558_v35, %v11558_v35 }
  0x4a   :  { %9454 = vmatprep.subr.bf16.mxu0 %v10413_v42  ;;  %v10460_v42 = vld [vmem:[%s13811_s1 + $0x3c0] sm:$0xff]  }
  0x4b   :  { %9389 = vmatpush3.bf16.msra.mxu1 %v10404_v39  ;;  %v10462_v39 = vld [vmem:[%s13811_s1 + $0x470] sm:$0xff]  }
  0x4c   :  { %9390 = vmatprep.subr.bf16.mxu1 %v10407_v40  ;;  %v10456_v40 = vld [vmem:[%s13811_s1 + $0x2b8] sm:$0xff]  }
  0x4d   :  { %9455 = vmatpush3.bf16.msra.mxu0 %v10414_v45  ;;  %v10466_v45 = vld [vmem:[%s13811_s1 + $0x478] sm:$0xff]  }
  0x4e   :  { %9456 = vmatprep.subr.bf16.mxu0 %v10417_v46  ;;  %v10461_v46 = vld [vmem:[%s13811_s1 + $0x380] sm:$0xff]  }
  0x4f   :  { %9391 = vmatpush3.bf16.msra.mxu1 %v10408_v43  ;;  %v10463_v43 = vld [vmem:[%s13811_s1 + $0x430] sm:$0xff]  }
  0x50   :  { %9392 = vmatprep.subr.bf16.mxu1 %v10411_v44  ;;  %v567_v44 = vpack.c.bf16 %v11454_v58, %v11454_v58  ;;  %v10471_v58 = vld [vmem:[%s13811_s1 + $0x500] sm:$0xff]  }
  0x51   :  { %9457 = vmatpush3.bf16.msra.mxu0 %v10418_v49  ;;  %v20_v49 = vld [vmem:[%s13810_s0 + $0x20] sm:$0xff] }
  0x52   :  { %9458 = vmatprep.subr.bf16.mxu0 %v10421_v50  ;;  %v10467_v50 = vld [vmem:[%s13811_s1 + $0x438] sm:$0xff]  }
  0x53   :  { %9393 = vmatpush3.bf16.msra.mxu1 %v10412_v47  ;;  %v572_v47 = vpack.c.bf16 %v131_v41, %v131_v41  ;;  %v10508_v41 = vld [vmem:[%s13811_s1 + $0x608] sm:$0xff]  }
  0x54   :  { %9394 = vmatprep.subr.bf16.mxu1 %v10415_v48  ;;  %v10464_v48 = vld [vmem:[%s13811_s1 + $0x3c8] sm:$0xff]  }
  0x55   :  { %9459 = vmatpush3.bf16.msra.mxu0 %v10422_v54 }
  0x56   :  { %9460 = vmatprep.subr.bf16.mxu0 %v10425_v55  ;;  %v10468_v55 = vld [vmem:[%s13811_s1 + $0x3d0] sm:$0xff]  }
  0x57   :  { %9395 = vmatpush3.bf16.msra.mxu1 %v10416_v51  ;;  %v139_v51 = vrot.slane %v20_v49, %v11250_v37 }
  0x58   :  { %9396 = vmatprep.subr.bf16.mxu1 %v10419_v52  ;;  %v10470_v52 = vld [vmem:[%s13811_s1 + $0x540] sm:$0xff]  }
  0x59   :  { %9461 = vmatpush3.bf16.msra.mxu0 %v10426_v59  ;;  %v147_v54 = vcombine.high %v139_v51, %v139_v51  ;;  %v10474_v59 = vld [vmem:[%s13811_s1 + $0x548] sm:$0xff]  }
  0x5a   :  { %9462 = vmatprep.subr.bf16.mxu0 %v10429_v60  ;;  %v10469_v60 = vld [vmem:[%s13811_s1 + $0x390] sm:$0xff]  }
  0x5b   :  { %9397 = vmatpush3.bf16.msra.mxu1 %v10420_v56  ;;  %v573_v56 = vpack.c.bf16 %v139_v51, %v139_v51  ;;  %v10514_v51 = vld [vmem:[%s13811_s1 + $0x4a8] sm:$0xff]  }
  0x5c   :  { %9398 = vmatprep.subr.bf16.mxu1 %v10423_v57  ;;  %v574_v57 = vpack.c.bf16 %v147_v54, %v147_v54  ;;  %v10520_v54 = vld [vmem:[%s13811_s1 + $0x620] sm:$0xff]  }
  0x5d   :  { %9463 = vmatpush3.bf16.msra.mxu0 %v10430_v0  ;;  %v10473_v0 = vld [vmem:[%s13811_s1 + $0x398] sm:$0xff]  }
  0x5e   :  { %9464 = vmatprep.subr.bf16.mxu0 %v10433_v2  ;;  %v10479_v2 = vld [vmem:[%s13811_s1 + $0x510] sm:$0xff]  }
  0x5f   :  { %9399 = vmatpush3.bf16.msra.mxu1 %v10424_v61  ;;  %v10472_v61 = vld [vmem:[%s13811_s1 + $0x3d8] sm:$0xff]  }
  0x60   :  { %9428 = vmatprep.subr.bf16.mxu1 %v10427_v62  ;;  %v10475_v62 = vld [vmem:[%s13811_s1 + $0x508] sm:$0xff]  }
  0x61   :  { %9465 = vmatpush3.bf16.msra.mxu0 %v10434_v5  ;;  %v10480_v5 = vld [vmem:[%s13811_s1 + $0x3e8] sm:$0xff]  }
  0x62   :  { %6815 = vmatmul.mubr.bf16.vlgmr.msra.gmra.mrb[8].mxu1 %v563_v3  ;;  %9494 = vmatprep.subr.bf16.mxu0 %v10437_v9  ;;  %v10482_v3 = vld [vmem:[%s13811_s1 + $0x558] sm:$0xff]   ;;  %v132_v9 = vcombine.high %v20_v49, %v20_v49 }
  0x63   :  { %9429 = vmatpush3.bf16.msra.mxu1 %v10428_v1  ;;  %6894 = vmatprep.mubr.bf16.mxu1 %v568_v6  ;;  %v10476_v1 = vld [vmem:[%s13811_s1 + $0x3e0] sm:$0xff]   ;;  %v10483_v6 = vld [vmem:[%s13811_s1 + $0x518] sm:$0xff]  }
  0x64   :  { %9430 = vmatprep.subr.bf16.mxu1 %v10431_v4  ;;  %6935 = vmatmul.mubr.bf16.vlgmr.msra.gmra.mrb[8].mxu0 %v569_v13  ;;  %v10477_v4 = vld [vmem:[%s13811_s1 + $0x3a0] sm:$0xff]   ;;  %v10485_v13 = vld [vmem:[%s13811_s1 + $0x3b0] sm:$0xff]   ;;  %v11665_v14 = vrot.slane %v132_v9, %v11250_v37  ;;  %v10516_v49 = vld [vmem:[%s13811_s1 + $0x618] sm:$0xff]  }
  0x65   :  { %9495 = vmatpush3.bf16.msra.mxu0 %v10438_v15  ;;  %7014 = vmatprep.mubr.bf16.mxu0 %v574_v57  ;;  %v10488_v15 = vld [vmem:[%s13811_s1 + $0x3f8] sm:$0xff]   ;;  %v10536_v9 = vld [vmem:[%s13811_s1 + $0x740] sm:$0xff]  }
  0x66   :  { %9496 = vmatprep.subr.bf16.mxu0 %v10441_v16  ;;  %v10492_v16 = vld [vmem:[%s13811_s1 + $0x528] sm:$0xff]  }
  0x67   :  { %9431 = vmatpush3.bf16.msra.mxu1 %v10432_v10  ;;  %v10484_v10 = vld [vmem:[%s13811_s1 + $0x3f0] sm:$0xff]  }
  0x68   :  { %9432 = vmatprep.subr.bf16.mxu1 %v10435_v12  ;;  %v10490_v12 = vld [vmem:[%s13811_s1 + $0x568] sm:$0xff]  }
  0x69   :  { %9497 = vmatpush3.bf16.msra.mxu0 %v10442_v19  ;;  %v148_v19 = vcombine.high %v11665_v14, %v11665_v14 }
  0x6a   :  { %9498 = vmatprep.subr.bf16.mxu0 %v10445_v20  ;;  %v10493_v20 = vld [vmem:[%s13811_s1 + $0x4c0] sm:$0xff]  }
  0x6b   :  { %9433 = vmatpush3.bf16.msra.mxu1 %v10436_v17  ;;  %v10495_v17 = vld [vmem:[%s13811_s1 + $0x570] sm:$0xff]  }
  0x6c   :  { %9434 = vmatprep.subr.bf16.mxu1 %v10439_v18  ;;  %v10489_v18 = vld [vmem:[%s13811_s1 + $0x3b8] sm:$0xff]  }
  0x6d   :  { %9499 = vmatpush3.bf16.msra.mxu0 %v10446_v23  ;;  %v10499_v23 = vld [vmem:[%s13811_s1 + $0x578] sm:$0xff]  }
  0x6e   :  { %9500 = vmatprep.subr.bf16.mxu0 %v10449_v24  ;;  %v10494_v24 = vld [vmem:[%s13811_s1 + $0x480] sm:$0xff]  }
  0x6f   :  { %9435 = vmatpush3.bf16.msra.mxu1 %v10440_v21  ;;  %v10496_v21 = vld [vmem:[%s13811_s1 + $0x530] sm:$0xff]  }
  0x70   :  { %9436 = vmatprep.subr.bf16.mxu1 %v10443_v22  ;;  %v571_v22 = vpack.c.bf16 %v11558_v35, %v11558_v35 }
  0x71   :  { %9501 = vmatpush3.bf16.msra.mxu0 %v10450_v27  ;;  %v21_v27 = vld [vmem:[%s13810_s0 + $0x28] sm:$0xff] }
  0x72   :  { %9502 = vmatprep.subr.bf16.mxu0 %v10453_v28  ;;  %v10500_v28 = vld [vmem:[%s13811_s1 + $0x538] sm:$0xff]  }
  0x73   :  { %9437 = vmatpush3.bf16.msra.mxu1 %v10444_v25  ;;  %v576_v25 = vpack.c.bf16 %v148_v19, %v148_v19  ;;  %v10539_v19 = vld [vmem:[%s13811_s1 + $0x598] sm:$0xff]  }
  0x74   :  { %9438 = vmatprep.subr.bf16.mxu1 %v10447_v26  ;;  %v10497_v26 = vld [vmem:[%s13811_s1 + $0x4c8] sm:$0xff]  }
  0x75   :  { %9503 = vmatpush3.bf16.msra.mxu0 %v10454_v32 }
  0x76   :  { %9504 = vmatprep.subr.bf16.mxu0 %v10457_v33  ;;  %v10501_v33 = vld [vmem:[%s13811_s1 + $0x4d0] sm:$0xff]  }
  0x77   :  { %9439 = vmatpush3.bf16.msra.mxu1 %v10448_v29  ;;  %v156_v29 = vrot.slane %v21_v27, %v11250_v37 }
  0x78   :  { %9440 = vmatprep.subr.bf16.mxu1 %v10451_v31  ;;  %v10498_v31 = vld [vmem:[%s13811_s1 + $0x488] sm:$0xff]  }
  0x79   :  { %9505 = vmatpush3.bf16.msra.mxu0 %v10459_v38  ;;  %v164_v32 = vcombine.high %v156_v29, %v156_v29  ;;  %v10507_v38 = vld [vmem:[%s13811_s1 + $0x648] sm:$0xff]  }
  0x7a   :  { %9506 = vmatprep.subr.bf16.mxu0 %v10462_v39  ;;  %v10502_v39 = vld [vmem:[%s13811_s1 + $0x490] sm:$0xff]  }
  0x7b   :  { %9441 = vmatpush3.bf16.msra.mxu1 %v10452_v34  ;;  %v577_v34 = vpack.c.bf16 %v156_v29, %v156_v29  ;;  %v578_v35 = vpack.c.bf16 %v164_v32, %v164_v32  ;;  %v10552_v29 = vld [vmem:[%s13811_s1 + $0x760] sm:$0xff]   ;;  %v10551_v32 = vld [vmem:[%s13811_s1 + $0x5b0] sm:$0xff]  }
  0x7c   :  { %9442 = vmatprep.subr.bf16.mxu1 %v10455_v36  ;;  %v10504_v36 = vld [vmem:[%s13811_s1 + $0x600] sm:$0xff]  }
  0x7d   :  { %9507 = vmatpush3.bf16.msra.mxu0 %v10463_v43  ;;  %v10506_v43 = vld [vmem:[%s13811_s1 + $0x498] sm:$0xff]  }
  0x7e   :  { %9508 = vmatprep.subr.bf16.mxu0 %v10466_v45  ;;  %v10512_v45 = vld [vmem:[%s13811_s1 + $0x610] sm:$0xff]  }
  0x7f   :  { %9443 = vmatpush3.bf16.msra.mxu1 %v10456_v40  ;;  %v10505_v40 = vld [vmem:[%s13811_s1 + $0x4d8] sm:$0xff]  }
  0x80   :  { %9472 = vmatprep.subr.bf16.mxu1 %v10460_v42  ;;  %v10511_v42 = vld [vmem:[%s13811_s1 + $0x650] sm:$0xff]  }
  0x81   :  { %9509 = vmatpush3.bf16.msra.mxu0 %v10467_v50  ;;  %v10519_v50 = vld [vmem:[%s13811_s1 + $0x660] sm:$0xff]  }
  0x82   :  { %6895 = vmatmul.mubr.bf16.vlgmr.msra.gmra.mrb[12].mxu1 %v567_v44  ;;  %9538 = vmatprep.subr.bf16.mxu0 %v10470_v52  ;;  %v10509_v44 = vld [vmem:[%s13811_s1 + $0x4e0] sm:$0xff]   ;;  %v149_v52 = vcombine.high %v21_v27, %v21_v27  ;;  %v10547_v27 = vld [vmem:[%s13811_s1 + $0x5a8] sm:$0xff]  }
  0x83   :  { %9473 = vmatpush3.bf16.msra.mxu1 %v10461_v46  ;;  %6974 = vmatprep.mubr.bf16.mxu1 %v572_v47  ;;  %v10515_v46 = vld [vmem:[%s13811_s1 + $0x658] sm:$0xff]   ;;  %v10510_v47 = vld [vmem:[%s13811_s1 + $0x4a0] sm:$0xff]  }
  0x84   :  { %9474 = vmatprep.subr.bf16.mxu1 %v10464_v48  ;;  %7015 = vmatmul.mubr.bf16.vlgmr.msra.gmra.mrb[12].mxu0 %v573_v56  ;;  %v10513_v48 = vld [vmem:[%s13811_s1 + $0x4e8] sm:$0xff]   ;;  %v10518_v56 = vld [vmem:[%s13811_s1 + $0x4b0] sm:$0xff]   ;;  %v11772_v57 = vrot.slane %v149_v52, %v11250_v37 }
  0x85   :  { %9539 = vmatpush3.bf16.msra.mxu0 %v10471_v58  ;;  %7094 = vmatprep.mubr.bf16.mxu0 %v578_v35  ;;  %v10521_v58 = vld [vmem:[%s13811_s1 + $0x4f8] sm:$0xff]  }
  0x86   :  { %9540 = vmatprep.subr.bf16.mxu0 %v10474_v59  ;;  %v10525_v59 = vld [vmem:[%s13811_s1 + $0x628] sm:$0xff]   ;;  %v10554_v35 = vld [vmem:[%s13811_s1 + $0x5f8] sm:$0xff]  }
  0x87   :  { %9475 = vmatpush3.bf16.msra.mxu1 %v10465_v53  ;;  %v10517_v53 = vld [vmem:[%s13811_s1 + $0x4f0] sm:$0xff]  }
  0x88   :  { %9476 = vmatprep.subr.bf16.mxu1 %v10468_v55  ;;  %v10523_v55 = vld [vmem:[%s13811_s1 + $0x668] sm:$0xff]  }
  0x89   :  { %9541 = vmatpush3.bf16.msra.mxu0 %v10475_v62  ;;  %v165_v62 = vcombine.high %v11772_v57, %v11772_v57 }
  0x8a   :  { %9542 = vmatprep.subr.bf16.mxu0 %v10478_v63  ;;  %v10526_v63 = vld [vmem:[%s13811_s1 + $0x5c0] sm:$0xff]  }
  0x8b   :  { %9477 = vmatpush3.bf16.msra.mxu1 %v10469_v60  ;;  %v10528_v60 = vld [vmem:[%s13811_s1 + $0x670] sm:$0xff]  }
  0x8c   :  { %9478 = vmatprep.subr.bf16.mxu1 %v10472_v61  ;;  %v10522_v61 = vld [vmem:[%s13811_s1 + $0x4b8] sm:$0xff]  }
  0x8d   :  { %9543 = vmatpush3.bf16.msra.mxu0 %v10479_v2  ;;  %v575_v2 = vpack.c.bf16 %v11665_v14, %v11665_v14 }
  0x8e   :  { %9544 = vmatprep.subr.bf16.mxu0 %v10482_v3  ;;  %v10532_v3 = vld [vmem:[%s13811_s1 + $0x678] sm:$0xff]  }
  0x8f   :  { %9479 = vmatpush3.bf16.msra.mxu1 %v10473_v0  ;;  %v10527_v0 = vld [vmem:[%s13811_s1 + $0x580] sm:$0xff]  }
  0x90   :  { %9480 = vmatprep.subr.bf16.mxu1 %v10476_v1  ;;  %v10529_v1 = vld [vmem:[%s13811_s1 + $0x630] sm:$0xff]  }
  0x91   :  { %9545 = vmatpush3.bf16.msra.mxu0 %v10483_v6  ;;  %v10533_v6 = vld [vmem:[%s13811_s1 + $0x638] sm:$0xff]  }
  0x92   :  { %9546 = vmatprep.subr.bf16.mxu0 %v10486_v7  ;;  %v22_v7 = vld [vmem:[%s13810_s0 + $0x30] sm:$0xff] }
  0x93   :  { %9481 = vmatpush3.bf16.msra.mxu1 %v10477_v4  ;;  %v10530_v4 = vld [vmem:[%s13811_s1 + $0x5c8] sm:$0xff]  }
  0x94   :  { %9482 = vmatprep.subr.bf16.mxu1 %v10480_v5  ;;  %v580_v5 = vpack.c.bf16 %v165_v62, %v165_v62  ;;  %v10574_v62 = vld [vmem:[%s13811_s1 + $0x808] sm:$0xff]  }
  0x95   :  { %9547 = vmatpush3.bf16.msra.mxu0 %v10487_v11  ;;  %v10534_v11 = vld [vmem:[%s13811_s1 + $0x5d0] sm:$0xff]  }
  0x96   :  { %9548 = vmatprep.subr.bf16.mxu0 %v10490_v12 }
  0x97   :  { %9483 = vmatpush3.bf16.msra.mxu1 %v10481_v8  ;;  %v173_v8 = vrot.slane %v22_v7, %v11250_v37 }
  0x98   :  { %9484 = vmatprep.subr.bf16.mxu1 %v10484_v10  ;;  %v10531_v10 = vld [vmem:[%s13811_s1 + $0x588] sm:$0xff]  }
  0x99   :  { %9549 = vmatpush3.bf16.msra.mxu0 %v10492_v16  ;;  %v181_v12 = vcombine.high %v173_v8, %v173_v8  ;;  %v581_v14 = vpack.c.bf16 %v173_v8, %v173_v8  ;;  %v10537_v16 = vld [vmem:[%s13811_s1 + $0x700] sm:$0xff]  }
  0x9a   :  { %9550 = vmatprep.subr.bf16.mxu0 %v10495_v17  ;;  %v10540_v17 = vld [vmem:[%s13811_s1 + $0x748] sm:$0xff]   ;;  %v10585_v8 = vld [vmem:[%s13811_s1 + $0x860] sm:$0xff]  }
  0x9b   :  { %9485 = vmatpush3.bf16.msra.mxu1 %v10485_v13  ;;  %v10535_v13 = vld [vmem:[%s13811_s1 + $0x590] sm:$0xff]  }
  0x9c   :  { %9486 = vmatprep.subr.bf16.mxu1 %v10488_v15  ;;  %v582_v15 = vpack.c.bf16 %v181_v12, %v181_v12  ;;  %v10584_v12 = vld [vmem:[%s13811_s1 + $0x6b0] sm:$0xff]  }
  0x9d   :  { %9551 = vmatpush3.bf16.msra.mxu0 %v10496_v21  ;;  %v10544_v21 = vld [vmem:[%s13811_s1 + $0x750] sm:$0xff]  }
  0x9e   :  { %9552 = vmatprep.subr.bf16.mxu0 %v10499_v23  ;;  %v10543_v23 = vld [vmem:[%s13811_s1 + $0x5a0] sm:$0xff]  }
  0x9f   :  { %9487 = vmatpush3.bf16.msra.mxu1 %v10489_v18  ;;  %v10538_v18 = vld [vmem:[%s13811_s1 + $0x5d8] sm:$0xff]  }
  0xa0   :  { %9516 = vmatprep.subr.bf16.mxu1 %v10493_v20  ;;  %v10541_v20 = vld [vmem:[%s13811_s1 + $0x708] sm:$0xff]  }
  0xa1   :  { %9553 = vmatpush3.bf16.msra.mxu0 %v10500_v28  ;;  %v10549_v28 = vld [vmem:[%s13811_s1 + $0x718] sm:$0xff]  }
  0xa2   :  { %6975 = vmatmul.mubr.bf16.vlgmr.msra.gmra.mrb[16].mxu1 %v571_v22  ;;  %9582 = vmatprep.subr.bf16.mxu0 %v10503_v30  ;;  %v10542_v22 = vld [vmem:[%s13811_s1 + $0x5e0] sm:$0xff]   ;;  %v10550_v30 = vld [vmem:[%s13811_s1 + $0x5f0] sm:$0xff]  }
  0xa3   :  { %9517 = vmatpush3.bf16.msra.mxu1 %v10494_v24  ;;  %7054 = vmatprep.mubr.bf16.mxu1 %v576_v25  ;;  %v10545_v24 = vld [vmem:[%s13811_s1 + $0x710] sm:$0xff]   ;;  %v10548_v25 = vld [vmem:[%s13811_s1 + $0x758] sm:$0xff]  }
  0xa4   :  { %9518 = vmatprep.subr.bf16.mxu1 %v10497_v26  ;;  %7095 = vmatmul.mubr.bf16.vlgmr.msra.gmra.mrb[16].mxu0 %v577_v34  ;;  %v10546_v26 = vld [vmem:[%s13811_s1 + $0x5e8] sm:$0xff]  }
  0xa5   :  { %9583 = vmatpush3.bf16.msra.mxu0 %v10504_v36  ;;  %7174 = vmatprep.mubr.bf16.mxu0 %v582_v15  ;;  %v10556_v34 = vld [vmem:[%s13811_s1 + $0x768] sm:$0xff]  }
  0xa6   :  { %9584 = vmatprep.subr.bf16.mxu0 %v10507_v38  ;;  %v10555_v38 = vld [vmem:[%s13811_s1 + $0x5b8] sm:$0xff]  }
  0xa7   :  { %9519 = vmatpush3.bf16.msra.mxu1 %v10498_v31  ;;  %v166_v31 = vcombine.high %v22_v7, %v22_v7  ;;  %v10582_v7 = vld [vmem:[%s13811_s1 + $0x818] sm:$0xff]  }
  0xa8   :  { %9520 = vmatprep.subr.bf16.mxu1 %v10501_v33  ;;  %v10553_v33 = vld [vmem:[%s13811_s1 + $0x720] sm:$0xff]  }
  0xa9   :  { %9585 = vmatpush3.bf16.msra.mxu0 %v10508_v41  ;;  %v11882_v36 = vrot.slane %v166_v31, %v11250_v37  ;;  %v10559_v41 = vld [vmem:[%s13811_s1 + $0x6c0] sm:$0xff]  }
  0xaa   :  { %9586 = vmatprep.subr.bf16.mxu0 %v10511_v42  ;;  %v10593_v31 = vld [vmem:[%s13811_s1 + $0x780] sm:$0xff]  }
  0xab   :  { %9521 = vmatpush3.bf16.msra.mxu1 %v10502_v39  ;;  %v10558_v39 = vld [vmem:[%s13811_s1 + $0x728] sm:$0xff]   ;;  %v182_v42 = vcombine.high %v11882_v36, %v11882_v36 }
  0xac   :  { %9522 = vmatprep.subr.bf16.mxu1 %v10505_v40  ;;  %v10561_v40 = vld [vmem:[%s13811_s1 + $0x770] sm:$0xff]  }
  0xad   :  { %9587 = vmatpush3.bf16.msra.mxu0 %v10512_v45  ;;  %v10562_v45 = vld [vmem:[%s13811_s1 + $0x730] sm:$0xff]  }
  0xae   :  { %9588 = vmatprep.subr.bf16.mxu0 %v10515_v46  ;;  %v10565_v46 = vld [vmem:[%s13811_s1 + $0x778] sm:$0xff]  }
  0xaf   :  { %9523 = vmatpush3.bf16.msra.mxu1 %v10506_v43  ;;  %v10560_v43 = vld [vmem:[%s13811_s1 + $0x680] sm:$0xff]  }
  0xb0   :  { %9524 = vmatprep.subr.bf16.mxu1 %v10509_v44  ;;  %v579_v44 = vpack.c.bf16 %v11772_v57, %v11772_v57 }
  0xb1   :  { %9589 = vmatpush3.bf16.msra.mxu0 %v10516_v49  ;;  %v10564_v49 = vld [vmem:[%s13811_s1 + $0x688] sm:$0xff]  }
  0xb2   :  { %9590 = vmatprep.subr.bf16.mxu0 %v10519_v50  ;;  %v11918_v50 = vld [vmem:[%s13810_s0 + $0x38] sm:$0xff] }
  0xb3   :  { %9525 = vmatpush3.bf16.msra.mxu1 %v10510_v47  ;;  %v10563_v47 = vld [vmem:[%s13811_s1 + $0x6c8] sm:$0xff]   ;;  %v190_v52 = vrot.slane %v11918_v50, %v11250_v37 }
  0xb4   :  { %9526 = vmatprep.subr.bf16.mxu1 %v10513_v48  ;;  %v584_v48 = vpack.c.bf16 %v182_v42, %v182_v42  ;;  %v10602_v42 = vld [vmem:[%s13811_s1 + $0x940] sm:$0xff]  }
  0xb5   :  { %9591 = vmatpush3.bf16.msra.mxu0 %v10520_v54  ;;  %v10567_v54 = vld [vmem:[%s13811_s1 + $0x6d0] sm:$0xff]   ;;  %v585_v57 = vpack.c.bf16 %v190_v52, %v190_v52 }
  0xb6   :  { %9592 = vmatprep.subr.bf16.mxu0 %v10523_v55  ;;  %v198_v55 = vcombine.high %v190_v52, %v190_v52  ;;  %v10607_v52 = vld [vmem:[%s13811_s1 + $0x908] sm:$0xff]  }
  0xb7   :  { %9527 = vmatpush3.bf16.msra.mxu1 %v10514_v51  ;;  %v10566_v51 = vld [vmem:[%s13811_s1 + $0x738] sm:$0xff]  }
  0xb8   :  { %9528 = vmatprep.subr.bf16.mxu1 %v10517_v53  ;;  %v10569_v53 = vld [vmem:[%s13811_s1 + $0x840] sm:$0xff]  }
  0xb9   :  { %9593 = vmatpush3.bf16.msra.mxu0 %v10525_v59  ;;  %v10570_v59 = vld [vmem:[%s13811_s1 + $0x800] sm:$0xff]  }
  0xba   :  { %9594 = vmatprep.subr.bf16.mxu0 %v10528_v60  ;;  %v10573_v60 = vld [vmem:[%s13811_s1 + $0x848] sm:$0xff]  }
  0xbb   :  { %9529 = vmatpush3.bf16.msra.mxu1 %v10518_v56  ;;  %v10568_v56 = vld [vmem:[%s13811_s1 + $0x690] sm:$0xff]  }
  0xbc   :  { %9530 = vmatprep.subr.bf16.mxu1 %v10521_v58  ;;  %v586_v58 = vpack.c.bf16 %v198_v55, %v198_v55  ;;  %v10609_v55 = vld [vmem:[%s13811_s1 + $0x7a0] sm:$0xff]  }
  0xbd   :  { %9595 = vmatpush3.bf16.msra.mxu0 %v10529_v1  ;;  %v10575_v1 = vld [vmem:[%s13811_s1 + $0x6e0] sm:$0xff]  }
  0xbe   :  { %9596 = vmatprep.subr.bf16.mxu0 %v10532_v3  ;;  %v10578_v3 = vld [vmem:[%s13811_s1 + $0x810] sm:$0xff]  }
  0xbf   :  { %9531 = vmatpush3.bf16.msra.mxu1 %v10522_v61  ;;  %v10571_v61 = vld [vmem:[%s13811_s1 + $0x6d8] sm:$0xff]  }
  0xc0   :  { %9560 = vmatprep.subr.bf16.mxu1 %v10526_v63  ;;  %v10572_v63 = vld [vmem:[%s13811_s1 + $0x698] sm:$0xff]  }
  0xc1   :  { %9597 = vmatpush3.bf16.msra.mxu0 %v10533_v6  ;;  %v10580_v6 = vld [vmem:[%s13811_s1 + $0x6a8] sm:$0xff]  }
  0xc2   :  { %7055 = vmatmul.mubr.bf16.vlgmr.msra.gmra.mrb[20].mxu1 %v575_v2  ;;  %9626 = vmatprep.subr.bf16.mxu0 %v10536_v9  ;;  %v10576_v2 = vld [vmem:[%s13811_s1 + $0x6a0] sm:$0xff]   ;;  %v10583_v9 = vld [vmem:[%s13811_s1 + $0x6f0] sm:$0xff]  }
  0xc3   :  { %9561 = vmatpush3.bf16.msra.mxu1 %v10527_v0  ;;  %7134 = vmatprep.mubr.bf16.mxu1 %v580_v5  ;;  %v10577_v0 = vld [vmem:[%s13811_s1 + $0x850] sm:$0xff]   ;;  %v10579_v5 = vld [vmem:[%s13811_s1 + $0x6e8] sm:$0xff]  }
  0xc4   :  { %9562 = vmatprep.subr.bf16.mxu1 %v10530_v4  ;;  %7175 = vmatmul.mubr.bf16.vlgmr.msra.gmra.mrb[20].mxu0 %v581_v14  ;;  %v10581_v4 = vld [vmem:[%s13811_s1 + $0x858] sm:$0xff]   ;;  %v10586_v14 = vld [vmem:[%s13811_s1 + $0x820] sm:$0xff]  }
  0xc5   :  { %9627 = vmatpush3.bf16.msra.mxu0 %v10537_v16  ;;  %7254 = vmatprep.mubr.bf16.mxu0 %v586_v58  ;;  %v10614_v58 = vld [vmem:[%s13811_s1 + $0x958] sm:$0xff]  }
  0xc6   :  { %9628 = vmatprep.subr.bf16.mxu0 %v10540_v17  ;;  %v10589_v17 = vld [vmem:[%s13811_s1 + $0x868] sm:$0xff]  }
  0xc7   :  { %9563 = vmatpush3.bf16.msra.mxu1 %v10531_v10  ;;  %v183_v10 = vcombine.high %v11918_v50, %v11918_v50  ;;  %v10606_v50 = vld [vmem:[%s13811_s1 + $0x948] sm:$0xff]  }
  0xc8   :  { %9564 = vmatprep.subr.bf16.mxu1 %v10534_v11 }
  0xc9   :  { %9629 = vmatpush3.bf16.msra.mxu0 %v10541_v20  ;;  %v11996_v20 = vrot.slane %v183_v10, %v11250_v37  ;;  %v10622_v10 = vld [vmem:[%s13811_s1 + $0x968] sm:$0xff]  }
  0xca   :  { %9630 = vmatprep.subr.bf16.mxu0 %v10544_v21  ;;  %v10588_v21 = vld [vmem:[%s13811_s1 + $0x6b8] sm:$0xff]  }
  0xcb   :  { %9565 = vmatpush3.bf16.msra.mxu1 %v10535_v13 }
  0xcc   :  { %9566 = vmatprep.subr.bf16.mxu1 %v10538_v18 }
  0xcd   :  { %9631 = vmatpush3.bf16.msra.mxu0 %v10545_v24 }
  0xce   :  { %9632 = vmatprep.subr.bf16.mxu0 %v10548_v25  ;;  %v10594_v25 = vld [vmem:[%s13811_s1 + $0x870] sm:$0xff]  }
  0xcf   :  { %9567 = vmatpush3.bf16.msra.mxu1 %v10539_v19  ;;  %v10587_v19 = vld [vmem:[%s13811_s1 + $0x6f8] sm:$0xff]  }
  0xd0   :  { %9568 = vmatprep.subr.bf16.mxu1 %v10542_v22 }
  0xd1   :  { %9633 = vmatpush3.bf16.msra.mxu0 %v10549_v28  ;;  %v10592_v28 = vld [vmem:[%s13811_s1 + $0x7c0] sm:$0xff]  }
  0xd2   :  { %9634 = vmatprep.subr.bf16.mxu0 %v10552_v29  ;;  %v199_v29 = vcombine.high %v11996_v20, %v11996_v20 }
  0xd3   :  { %9569 = vmatpush3.bf16.msra.mxu1 %v10543_v23  ;;  %v10591_v23 = vld [vmem:[%s13811_s1 + $0x828] sm:$0xff]  }
  0xd4   :  { %9570 = vmatprep.subr.bf16.mxu1 %v10546_v26 }
  0xd5   :  { %9635 = vmatpush3.bf16.msra.mxu0 %v10553_v33  ;;  %v10595_v33 = vld [vmem:[%s13811_s1 + $0x830] sm:$0xff]  }
  0xd6   :  { %9636 = vmatprep.subr.bf16.mxu0 %v10556_v34  ;;  %v10598_v34 = vld [vmem:[%s13811_s1 + $0x878] sm:$0xff]  }
  0xd7   :  { %9571 = vmatpush3.bf16.msra.mxu1 %v10547_v27 }
  0xd8   :  { %9572 = vmatprep.subr.bf16.mxu1 %v10550_v30 }
  0xd9   :  { %9637 = vmatpush3.bf16.msra.mxu0 %v10558_v39  ;;  %v10599_v39 = vld [vmem:[%s13811_s1 + $0x838] sm:$0xff]  }
  0xda   :  { %9638 = vmatprep.subr.bf16.mxu0 %v10561_v40  ;;  %v12037_v40 = vld [vmem:[%s13810_s0 + $0x40] sm:$0xff] }
  0xdb   :  { %9573 = vmatpush3.bf16.msra.mxu1 %v10551_v32  ;;  %v583_v32 = vpack.c.bf16 %v11882_v36, %v11882_v36  ;;  %v10597_v36 = vld [vmem:[%s13811_s1 + $0x788] sm:$0xff]  }
  0xdc   :  { %9574 = vmatprep.subr.bf16.mxu1 %v10554_v35  ;;  %v10596_v35 = vld [vmem:[%s13811_s1 + $0x7c8] sm:$0xff]  }
  0xdd   :  { %9639 = vmatpush3.bf16.msra.mxu0 %v10562_v45 }
  0xde   :  { %9640 = vmatprep.subr.bf16.mxu0 %v10565_v46 }
  0xdf   :  { %9575 = vmatpush3.bf16.msra.mxu1 %v10555_v38  ;;  %v588_v38 = vpack.c.bf16 %v199_v29, %v199_v29  ;;  %v10631_v29 = vld [vmem:[%s13811_s1 + $0x978] sm:$0xff]  }
  0xe0   :  { %9604 = vmatprep.subr.bf16.mxu1 %v10559_v41  ;;  %v207_v41 = vrot.slane %v12037_v40, %v11250_v37 }
  0xe1   :  { %9641 = vmatpush3.bf16.msra.mxu0 %v10566_v51  ;;  %v10605_v51 = vld [vmem:[%s13811_s1 + $0x798] sm:$0xff]  }
  0xe2   :  { %7135 = vmatmul.mubr.bf16.vlgmr.msra.gmra.mrb[24].mxu1 %v579_v44  ;;  %9670 = vmatprep.subr.bf16.mxu0 %v10569_v53  ;;  %v10601_v44 = vld [vmem:[%s13811_s1 + $0x790] sm:$0xff]   ;;  %v215_v45 = vcombine.high %v207_v41, %v207_v41  ;;  %v589_v46 = vpack.c.bf16 %v207_v41, %v207_v41  ;;  %v10608_v53 = vld [vmem:[%s13811_s1 + $0x7e0] sm:$0xff]  }
  0xe3   :  { %9605 = vmatpush3.bf16.msra.mxu1 %v10560_v43  ;;  %7214 = vmatprep.mubr.bf16.mxu1 %v584_v48  ;;  %v10600_v43 = vld [vmem:[%s13811_s1 + $0x7d0] sm:$0xff]  }
  0xe4   :  { %9606 = vmatprep.subr.bf16.mxu1 %v10563_v47  ;;  %7255 = vmatmul.mubr.bf16.vlgmr.msra.gmra.mrb[24].mxu0 %v585_v57  ;;  %v10603_v47 = vld [vmem:[%s13811_s1 + $0x900] sm:$0xff]   ;;  %v590_v48 = vpack.c.bf16 %v215_v45, %v215_v45  ;;  %v10612_v57 = vld [vmem:[%s13811_s1 + $0x7e8] sm:$0xff]  }
  0xe5   :  { %9671 = vmatpush3.bf16.msra.mxu0 %v10570_v59  ;;  %v10613_v59 = vld [vmem:[%s13811_s1 + $0x7a8] sm:$0xff]  }
  0xe6   :  { %9672 = vmatprep.subr.bf16.mxu0 %v10573_v60  ;;  %7334 = vmatprep.mubr.bf16.mxu0 %v590_v48  ;;  %v8565_v60 = vld [vmem:[%s13812_s2] ss:$0 sm:$0xff]  ;;  %v10640_v45 = vld [vmem:[%s13811_s1 + $0xa08] sm:$0xff]  }
  0xe7   :  { %9607 = vmatpush3.bf16.msra.mxu1 %v10564_v49  ;;  %v10604_v49 = vld [vmem:[%s13811_s1 + $0x7d8] sm:$0xff]   ;;  %v10642_v48 = vld [vmem:[%s13811_s1 + $0x8a0] sm:$0xff]  }
  0xe8   :  { %9608 = vmatprep.subr.bf16.mxu1 %v10567_v54  ;;  %v10610_v54 = vld [vmem:[%s13811_s1 + $0x950] sm:$0xff]  }
  0xe9   :  { %9673 = vmatpush3.bf16.msra.mxu0 %v10574_v62  ;;  %v10616_v62 = vld [vmem:[%s13811_s1 + $0x7f0] sm:$0xff]  }
  0xea   :  { %9674 = vmatprep.subr.bf16.mxu0 %v10577_v0 }
  0xeb   :  { %9609 = vmatpush3.bf16.msra.mxu1 %v10568_v56  ;;  %v10611_v56 = vld [vmem:[%s13811_s1 + $0x910] sm:$0xff]  }
  0xec   :  { %9610 = vmatprep.subr.bf16.mxu1 %v10571_v61  ;;  %v10615_v61 = vld [vmem:[%s13811_s1 + $0x918] sm:$0xff]  }
  0xed   :  { %9675 = vmatpush3.bf16.msra.mxu0 %v10578_v3 }
  0xee   :  { %9676 = vmatprep.subr.bf16.mxu0 %v10581_v4  ;;  %v10619_v4 = vld [vmem:[%s13811_s1 + $0x920] sm:$0xff]  }
  0xef   :  { %9611 = vmatpush3.bf16.msra.mxu1 %v10572_v63  ;;  %v10618_v63 = vld [vmem:[%s13811_s1 + $0x960] sm:$0xff]  }
  0xf0   :  { %9612 = vmatprep.subr.bf16.mxu1 %v10575_v1  ;;  %v10617_v1 = vld [vmem:[%s13811_s1 + $0x7b0] sm:$0xff]  }
  0xf1   :  { %9677 = vmatpush3.bf16.msra.mxu0 %v10582_v7 }
  0xf2   :  { %9678 = vmatprep.subr.bf16.mxu0 %v10585_v8  ;;  %v10620_v8 = vld [vmem:[%s13811_s1 + $0x7f8] sm:$0xff]  }
  0xf3   :  { %9613 = vmatpush3.bf16.msra.mxu1 %v10576_v2  ;;  %v200_v2 = vcombine.high %v12037_v40, %v12037_v40  ;;  %v10636_v40 = vld [vmem:[%s13811_s1 + $0xa00] sm:$0xff]  }
  0xf4   :  { %9614 = vmatprep.subr.bf16.mxu1 %v10579_v5 }
  0xf5   :  { %v9334_v11 = vpop.f32.mrb[0].mxu1  ;;  %9679 = vmatpush3.bf16.msra.mxu0 %v10586_v14 }
  0xf6   :  { %v9335_v13 = vpop.f32.mrb[1].mxu1  ;;  %9680 = vmatprep.subr.bf16.mxu0 %v10589_v17  ;;  %v10625_v17 = vld [vmem:[%s13811_s1 + $0x8c0] sm:$0xff]  }
  0xf7   :  { %v11987_v15 = vadd.f32 %v9335_v13, %v9334_v11  ;;  %v9337_v16 = vpop.f32.mrb[2].mxu1  ;;  %9615 = vmatpush3.bf16.msra.mxu1 %v10580_v6  ;;  %v9378_v22 = vpop.f32.mrb[0].mxu0  ;;  %v12117_v13 = vrot.slane %v200_v2, %v11250_v37 }
  0xf8   :  { %v9338_v18 = vpop.f32.mrb[3].mxu1  ;;  %9616 = vmatprep.subr.bf16.mxu1 %v10583_v9  ;;  %v9379_v24 = vpop.f32.mrb[1].mxu0 }
  0xf9   :  { %v12007_v26 = vadd.f32 %v9379_v24, %v9378_v22  ;;  %v9381_v27 = vpop.f32.mrb[2].mxu0  ;;  %9681 = vmatpush3.bf16.msra.mxu0 %v10591_v23  ;;  %v6697_v5 = vadd.f32 %v11987_v15, %v8565_v60  ;;  %v10624_v15 = vld [vmem:[%s13811_s1 + $0x928] sm:$0xff]   ;;  %v10627_v22 = vld [vmem:[%s13811_s1 + $0x970] sm:$0xff]   ;;  %v10626_v24 = vld [vmem:[%s13811_s1 + $0x880] sm:$0xff]  }
  0xfa   :  { %v9382_v30 = vpop.f32.mrb[3].mxu0  ;;  %9682 = vmatprep.subr.bf16.mxu0 %v10594_v25  ;;  %v216_v25 = vcombine.high %v12117_v13, %v12117_v13  ;;  %v10628_v27 = vld [vmem:[%s13811_s1 + $0x930] sm:$0xff]   ;;  %v10652_v60 = vld [vmem:[%s13811_s1 + $0xa20] sm:$0xff]  }
  0xfb   :  { %9617 = vmatpush3.bf16.msra.mxu1 %v10584_v12  ;;  %v10621_v12 = vld [vmem:[%s13811_s1 + $0x7b8] sm:$0xff]  }
  0xfc   :  { %9618 = vmatprep.subr.bf16.mxu1 %v10587_v19  ;;  %v592_v30 = vpack.c.bf16 %v216_v25, %v216_v25  ;;  %v10666_v25 = vld [vmem:[%s13811_s1 + $0x9d0] sm:$0xff]  }
  0xfd   :  { %9683 = vmatpush3.bf16.msra.mxu0 %v10595_v33  ;;  %v10633_v33 = vld [vmem:[%s13811_s1 + $0x8d0] sm:$0xff]  }
  0xfe   :  { %9684 = vmatprep.subr.bf16.mxu0 %v10598_v34 }
  0xff   :  { %9619 = vmatpush3.bf16.msra.mxu1 %v10588_v21 }
 0x100   :  { %9648 = vmatprep.subr.bf16.mxu1 %v10592_v28  ;;  %v10629_v28 = vld [vmem:[%s13811_s1 + $0x8c8] sm:$0xff]  }
 0x101   :  { %9685 = vmatpush3.bf16.msra.mxu0 %v10599_v39 }
 0x102   :  { %7215 = vmatmul.mubr.bf16.vlgmr.msra.gmra.mrb[28].mxu1 %v583_v32  ;;  %9714 = vmatprep.subr.bf16.mxu0 %v10602_v42  ;;  %v12158_v32 = vld [vmem:[%s13810_s0 + $0x48] sm:$0xff]  ;;  %v10637_v42 = vld [vmem:[%s13811_s1 + $0x8d8] sm:$0xff]  }
 0x103   :  { %9649 = vmatpush3.bf16.msra.mxu1 %v10593_v31  ;;  %7294 = vmatprep.mubr.bf16.mxu1 %v588_v38  ;;  %v10632_v31 = vld [vmem:[%s13811_s1 + $0x938] sm:$0xff]   ;;  %v224_v34 = vrot.slane %v12158_v32, %v11250_v37  ;;  %v10634_v38 = vld [vmem:[%s13811_s1 + $0x890] sm:$0xff]  }
 0x104   :  { %9650 = vmatprep.subr.bf16.mxu1 %v10596_v35  ;;  %7335 = vmatmul.mubr.bf16.vlgmr.msra.gmra.mrb[28].mxu0 %v589_v46  ;;  %v10635_v35 = vld [vmem:[%s13811_s1 + $0xa40] sm:$0xff]  }
 0x105   :  { %9715 = vmatpush3.bf16.msra.mxu0 %v10603_v47  ;;  %v593_v39 = vpack.c.bf16 %v224_v34, %v224_v34  ;;  %v10641_v46 = vld [vmem:[%s13811_s1 + $0x8e0] sm:$0xff]   ;;  %v10643_v47 = vld [vmem:[%s13811_s1 + $0xa50] sm:$0xff]  }
 0x106   :  { %9716 = vmatprep.subr.bf16.mxu0 %v10606_v50  ;;  %v10645_v50 = vld [vmem:[%s13811_s1 + $0x8e8] sm:$0xff]  }
 0x107   :  { %9651 = vmatpush3.bf16.msra.mxu1 %v10597_v36  ;;  %v232_v36 = vcombine.high %v224_v34, %v224_v34  ;;  %v10671_v34 = vld [vmem:[%s13811_s1 + $0x998] sm:$0xff]  }
 0x108   :  { %9652 = vmatprep.subr.bf16.mxu1 %v10600_v43  ;;  %v10639_v43 = vld [vmem:[%s13811_s1 + $0xa48] sm:$0xff]  }
 0x109   :  { %9717 = vmatpush3.bf16.msra.mxu0 %v10607_v52  ;;  %v594_v41 = vpack.c.bf16 %v232_v36, %v232_v36  ;;  %v10646_v52 = vld [vmem:[%s13811_s1 + $0x8a8] sm:$0xff]   ;;  %v10676_v36 = vld [vmem:[%s13811_s1 + $0xb50] sm:$0xff]  }
 0x10a   :  { %9718 = vmatprep.subr.bf16.mxu0 %v10610_v54  ;;  %v10649_v54 = vld [vmem:[%s13811_s1 + $0x8f0] sm:$0xff]  }
 0x10b   :  { %9653 = vmatpush3.bf16.msra.mxu1 %v10601_v44  ;;  %7414 = vmatprep.mubr.bf16.mxu0 %v594_v41  ;;  %v10638_v44 = vld [vmem:[%s13811_s1 + $0x898] sm:$0xff]   ;;  %v10678_v41 = vld [vmem:[%s13811_s1 + $0x9e8] sm:$0xff]  }
 0x10c   :  { %9654 = vmatprep.subr.bf16.mxu1 %v10604_v49  ;;  %v10644_v49 = vld [vmem:[%s13811_s1 + $0xa10] sm:$0xff]  }
 0x10d   :  { %9719 = vmatpush3.bf16.msra.mxu0 %v10611_v56 }
 0x10e   :  { %9720 = vmatprep.subr.bf16.mxu0 %v10614_v58  ;;  %v217_v58 = vcombine.high %v12158_v32, %v12158_v32  ;;  %v10670_v32 = vld [vmem:[%s13811_s1 + $0x9d8] sm:$0xff]  }
 0x10f   :  { %9655 = vmatpush3.bf16.msra.mxu1 %v10605_v51  ;;  %v10647_v51 = vld [vmem:[%s13811_s1 + $0xa58] sm:$0xff]  }
 0x110   :  { %9656 = vmatprep.subr.bf16.mxu1 %v10608_v53  ;;  %v10648_v53 = vld [vmem:[%s13811_s1 + $0xa18] sm:$0xff]  }
 0x111   :  { %9721 = vmatpush3.bf16.msra.mxu0 %v10615_v61 }
 0x112   :  { %9722 = vmatprep.subr.bf16.mxu0 %v10618_v63  ;;  %v10653_v63 = vld [vmem:[%s13811_s1 + $0x8f8] sm:$0xff]  }
 0x113   :  { %9657 = vmatpush3.bf16.msra.mxu1 %v10609_v55  ;;  %v10651_v55 = vld [vmem:[%s13811_s1 + $0xa60] sm:$0xff]  }
 0x114   :  { %9658 = vmatprep.subr.bf16.mxu1 %v10612_v57  ;;  %v10650_v57 = vld [vmem:[%s13811_s1 + $0x8b0] sm:$0xff]  }
 0x115   :  { %v9356_v0 = vpop.f32.mrb[4].mxu1  ;;  %9723 = vmatpush3.bf16.msra.mxu0 %v10619_v4  ;;  %v12235_v4 = vrot.slane %v217_v58, %v11250_v37  ;;  %v10687_v58 = vld [vmem:[%s13811_s1 + $0x9b8] sm:$0xff]  }
 0x116   :  { %v9357_v3 = vpop.f32.mrb[5].mxu1  ;;  %9724 = vmatprep.subr.bf16.mxu0 %v10622_v10  ;;  %v10660_v10 = vld [vmem:[%s13811_s1 + $0xa70] sm:$0xff]  }
 0x117   :  { %v9358_v6 = vadd.f32 %v9357_v3, %v9356_v0  ;;  %v9359_v7 = vpop.f32.mrb[6].mxu1  ;;  %9659 = vmatpush3.bf16.msra.mxu1 %v10613_v59  ;;  %v9422_v14 = vpop.f32.mrb[4].mxu0  ;;  %v10654_v3 = vld [vmem:[%s13811_s1 + $0x8b8] sm:$0xff]  }
 0x118   :  { %v9360_v9 = vpop.f32.mrb[7].mxu1  ;;  %9660 = vmatprep.subr.bf16.mxu1 %v10616_v62  ;;  %v9423_v16 = vpop.f32.mrb[5].mxu0  ;;  %v10658_v7 = vld [vmem:[%s13811_s1 + $0x9c0] sm:$0xff]  }
 0x119   :  { %v6737_v11 = vadd.f32 %v9358_v6, %v6697_v5  ;;  %v12128_v19 = vadd.f32 %v9423_v16, %v9422_v14  ;;  %v9425_v21 = vpop.f32.mrb[6].mxu0  ;;  %9725 = vmatpush3.bf16.msra.mxu0 %v10624_v15  ;;  %v10657_v5 = vld [vmem:[%s13811_s1 + $0xa28] sm:$0xff]   ;;  %v10659_v14 = vld [vmem:[%s13811_s1 + $0x980] sm:$0xff]   ;;  %v233_v15 = vcombine.high %v12235_v4, %v12235_v4  ;;  %v591_v16 = vpack.c.bf16 %v12117_v13, %v12117_v13 }
 0x11a   :  { %v9426_v23 = vpop.f32.mrb[7].mxu0  ;;  %9726 = vmatprep.subr.bf16.mxu0 %v10627_v22  ;;  %v10664_v21 = vld [vmem:[%s13811_s1 + $0xa78] sm:$0xff]   ;;  %v10663_v13 = vld [vmem:[%s13811_s1 + $0x988] sm:$0xff]  }
 0x11b   :  { %9661 = vmatpush3.bf16.msra.mxu1 %v10617_v1  ;;  %v12126_v18 = vadd.f32 %v12007_v26, %v6737_v11  ;;  %v587_v26 = vpack.c.bf16 %v11996_v20, %v11996_v20  ;;  %v10630_v20 = vld [vmem:[%s13811_s1 + $0x888] sm:$0xff]   ;;  %v596_v22 = vpack.c.bf16 %v233_v15, %v233_v15  ;;  %v10665_v23 = vld [vmem:[%s13811_s1 + $0xa38] sm:$0xff]   ;;  %v10699_v15 = vld [vmem:[%s13811_s1 + $0xad0] sm:$0xff]  }
 0x11c   :  { %9662 = vmatprep.subr.bf16.mxu1 %v10620_v8  ;;  %v10655_v1 = vld [vmem:[%s13811_s1 + $0xa68] sm:$0xff]  }
 0x11d   :  { %9727 = vmatpush3.bf16.msra.mxu0 %v10628_v27  ;;  %v10668_v27 = vld [vmem:[%s13811_s1 + $0xb40] sm:$0xff]  }
 0x11e   :  { %9728 = vmatprep.subr.bf16.mxu0 %v10631_v29 }
 0x11f   :  { %9663 = vmatpush3.bf16.msra.mxu1 %v10621_v12 }
 0x120   :  { %9692 = vmatprep.subr.bf16.mxu1 %v10625_v17 }
 0x121   :  { %9729 = vmatpush3.bf16.msra.mxu0 %v10632_v31 }
 0x122   :  { %7295 = vmatmul.mubr.bf16.vlgmr.msra.gmra.mrb[32].mxu1 %v587_v26  ;;  %9758 = vmatprep.subr.bf16.mxu0 %v10635_v35  ;;  %v10673_v35 = vld [vmem:[%s13811_s1 + $0xb08] sm:$0xff]  }
 0x123   :  { %9693 = vmatpush3.bf16.msra.mxu1 %v10626_v24  ;;  %7374 = vmatprep.mubr.bf16.mxu1 %v592_v30  ;;  %v12276_v24 = vld [vmem:[%s13810_s0 + $0x50] sm:$0xff]  ;;  %v10669_v30 = vld [vmem:[%s13811_s1 + $0xb00] sm:$0xff]  }
 0x124   :  { %9694 = vmatprep.subr.bf16.mxu1 %v10629_v28  ;;  %7415 = vmatmul.mubr.bf16.vlgmr.msra.gmra.mrb[32].mxu0 %v593_v39  ;;  %v241_v26 = vrot.slane %v12276_v24, %v11250_v37  ;;  %v10667_v28 = vld [vmem:[%s13811_s1 + $0x990] sm:$0xff]   ;;  %v10675_v39 = vld [vmem:[%s13811_s1 + $0x9a0] sm:$0xff]  }
 0x125   :  { %9759 = vmatpush3.bf16.msra.mxu0 %v10636_v40  ;;  %v10677_v40 = vld [vmem:[%s13811_s1 + $0xb10] sm:$0xff]  }
 0x126   :  { %9760 = vmatprep.subr.bf16.mxu0 %v10639_v43  ;;  %v249_v29 = vcombine.high %v241_v26, %v241_v26  ;;  %v10679_v43 = vld [vmem:[%s13811_s1 + $0x9a8] sm:$0xff]  }
 0x127   :  { %9695 = vmatpush3.bf16.msra.mxu1 %v10630_v20  ;;  %v597_v20 = vpack.c.bf16 %v241_v26, %v241_v26  ;;  %v10704_v26 = vld [vmem:[%s13811_s1 + $0xa98] sm:$0xff]  }
 0x128   :  { %9696 = vmatprep.subr.bf16.mxu1 %v10633_v33  ;;  %v598_v31 = vpack.c.bf16 %v249_v29, %v249_v29  ;;  %v10672_v33 = vld [vmem:[%s13811_s1 + $0xb48] sm:$0xff]   ;;  %v10709_v29 = vld [vmem:[%s13811_s1 + $0xc50] sm:$0xff]  }
 0x129   :  { %9761 = vmatpush3.bf16.msra.mxu0 %v10640_v45  ;;  %v10682_v45 = vld [vmem:[%s13811_s1 + $0x9f0] sm:$0xff]  }
 0x12a   :  { %9762 = vmatprep.subr.bf16.mxu0 %v10643_v47  ;;  %7494 = vmatprep.mubr.bf16.mxu0 %v598_v31  ;;  %v10711_v31 = vld [vmem:[%s13811_s1 + $0xae8] sm:$0xff]  }
 0x12b   :  { %9697 = vmatpush3.bf16.msra.mxu1 %v10634_v38  ;;  %v10674_v38 = vld [vmem:[%s13811_s1 + $0x9e0] sm:$0xff]  }
 0x12c   :  { %9698 = vmatprep.subr.bf16.mxu1 %v10637_v42  ;;  %v10680_v42 = vld [vmem:[%s13811_s1 + $0xb58] sm:$0xff]  }
 0x12d   :  { %9763 = vmatpush3.bf16.msra.mxu0 %v10644_v49  ;;  %v234_v49 = vcombine.high %v12276_v24, %v12276_v24  ;;  %v10703_v24 = vld [vmem:[%s13811_s1 + $0xad8] sm:$0xff]  }
 0x12e   :  { %9764 = vmatprep.subr.bf16.mxu0 %v10647_v51  ;;  %v10685_v51 = vld [vmem:[%s13811_s1 + $0xb20] sm:$0xff]  }
 0x12f   :  { %9699 = vmatpush3.bf16.msra.mxu1 %v10638_v44  ;;  %v10681_v44 = vld [vmem:[%s13811_s1 + $0xb18] sm:$0xff]  }
 0x130   :  { %9700 = vmatprep.subr.bf16.mxu1 %v10641_v46  ;;  %v10684_v46 = vld [vmem:[%s13811_s1 + $0xb60] sm:$0xff]  }
 0x131   :  { %9765 = vmatpush3.bf16.msra.mxu0 %v10648_v53 }
 0x132   :  { %9766 = vmatprep.subr.bf16.mxu0 %v10651_v55 }
 0x133   :  { %9701 = vmatpush3.bf16.msra.mxu1 %v10642_v48  ;;  %v10683_v48 = vld [vmem:[%s13811_s1 + $0x9b0] sm:$0xff]  }
 0x134   :  { %9702 = vmatprep.subr.bf16.mxu1 %v10645_v50 }
 0x135   :  { %v9400_v56 = vpop.f32.mrb[8].mxu1  ;;  %9767 = vmatpush3.bf16.msra.mxu0 %v10652_v60  ;;  %v10690_v60 = vld [vmem:[%s13811_s1 + $0xb28] sm:$0xff]  }
 0x136   :  { %v9401_v59 = vpop.f32.mrb[9].mxu1  ;;  %9768 = vmatprep.subr.bf16.mxu0 %v10655_v1  ;;  %v10693_v1 = vld [vmem:[%s13811_s1 + $0xb70] sm:$0xff]  }
 0x137   :  { %v9402_v61 = vadd.f32 %v9401_v59, %v9400_v56  ;;  %v9403_v62 = vpop.f32.mrb[10].mxu1  ;;  %9703 = vmatpush3.bf16.msra.mxu1 %v10646_v52  ;;  %v9466_v6 = vpop.f32.mrb[8].mxu0  ;;  %v10688_v56 = vld [vmem:[%s13811_s1 + $0xb68] sm:$0xff]   ;;  %v12353_v59 = vrot.slane %v234_v49, %v11250_v37 }
 0x138   :  { %v9404_v0 = vpop.f32.mrb[11].mxu1  ;;  %9704 = vmatprep.subr.bf16.mxu1 %v10649_v54  ;;  %v9467_v9 = vpop.f32.mrb[9].mxu0  ;;  %v10686_v54 = vld [vmem:[%s13811_s1 + $0x9f8] sm:$0xff]   ;;  %v10691_v62 = vld [vmem:[%s13811_s1 + $0xac0] sm:$0xff]   ;;  %v10721_v49 = vld [vmem:[%s13811_s1 + $0xc68] sm:$0xff]  }
 0x139   :  { %v6817_v2 = vadd.f32 %v9402_v61, %v12126_v18  ;;  %v12249_v11 = vadd.f32 %v9467_v9, %v9466_v6  ;;  %v9469_v12 = vpop.f32.mrb[10].mxu0  ;;  %v10661_v18 = vld [vmem:[%s13811_s1 + $0xa30] sm:$0xff]   ;;  %9769 = vmatpush3.bf16.msra.mxu0 %v10657_v5  ;;  %v10692_v5 = vld [vmem:[%s13811_s1 + $0xa80] sm:$0xff]   ;;  %v250_v6 = vcombine.high %v12353_v59, %v12353_v59 }
 0x13a   :  { %v9470_v17 = vpop.f32.mrb[11].mxu0  ;;  %9770 = vmatprep.subr.bf16.mxu0 %v10660_v10  ;;  %v10694_v9 = vld [vmem:[%s13811_s1 + $0xb30] sm:$0xff]   ;;  %v10695_v10 = vld [vmem:[%s13811_s1 + $0xac8] sm:$0xff]   ;;  %v10698_v12 = vld [vmem:[%s13811_s1 + $0xb38] sm:$0xff]  }
 0x13b   :  { %9705 = vmatpush3.bf16.msra.mxu1 %v10650_v57  ;;  %v12244_v8 = vadd.f32 %v12128_v19, %v6817_v2  ;;  %v10662_v19 = vld [vmem:[%s13811_s1 + $0x9c8] sm:$0xff]  }
 0x13c   :  { %9706 = vmatprep.subr.bf16.mxu1 %v10653_v63 }
 0x13d   :  { %9771 = vmatpush3.bf16.msra.mxu0 %v10661_v18  ;;  %v10701_v18 = vld [vmem:[%s13811_s1 + $0xc40] sm:$0xff]  }
 0x13e   :  { %9772 = vmatprep.subr.bf16.mxu0 %v10664_v21 }
 0x13f   :  { %9707 = vmatpush3.bf16.msra.mxu1 %v10654_v3 }
 0x140   :  { %9736 = vmatprep.subr.bf16.mxu1 %v10658_v7  ;;  %v595_v7 = vpack.c.bf16 %v12235_v4, %v12235_v4  ;;  %v10696_v4 = vld [vmem:[%s13811_s1 + $0xa88] sm:$0xff]  }
 0x141   :  { %9773 = vmatpush3.bf16.msra.mxu0 %v10665_v23 }
 0x142   :  { %7375 = vmatmul.mubr.bf16.vlgmr.msra.gmra.mrb[36].mxu1 %v591_v16  ;;  %9802 = vmatprep.subr.bf16.mxu0 %v10668_v27  ;;  %v27_v16 = vld [vmem:[%s13810_s0 + $0x58] sm:$0xff]  ;;  %v10706_v27 = vld [vmem:[%s13811_s1 + $0xc08] sm:$0xff]  }
 0x143   :  { %9737 = vmatpush3.bf16.msra.mxu1 %v10659_v14  ;;  %7454 = vmatprep.mubr.bf16.mxu1 %v596_v22  ;;  %v600_v14 = vpack.c.bf16 %v250_v6, %v250_v6  ;;  %v258_v17 = vrot.slane %v27_v16, %v11250_v37  ;;  %v10702_v22 = vld [vmem:[%s13811_s1 + $0xc00] sm:$0xff]  }
 0x144   :  { %9738 = vmatprep.subr.bf16.mxu1 %v10662_v19  ;;  %7495 = vmatmul.mubr.bf16.vlgmr.msra.gmra.mrb[36].mxu0 %v597_v20  ;;  %v10700_v19 = vld [vmem:[%s13811_s1 + $0xa90] sm:$0xff]   ;;  %v10708_v20 = vld [vmem:[%s13811_s1 + $0xaa0] sm:$0xff]  }
 0x145   :  { %9803 = vmatpush3.bf16.msra.mxu0 %v10669_v30  ;;  %v266_v21 = vcombine.high %v258_v17, %v258_v17  ;;  %v10710_v30 = vld [vmem:[%s13811_s1 + $0xc10] sm:$0xff]   ;;  %v28_v6 = vld [vmem:[%s13810_s0 + $0x60] sm:$0xff] }
 0x146   :  { %9804 = vmatprep.subr.bf16.mxu0 %v10672_v33  ;;  %v10712_v33 = vld [vmem:[%s13811_s1 + $0xaa8] sm:$0xff]  }
 0x147   :  { %9739 = vmatpush3.bf16.msra.mxu1 %v10663_v13  ;;  %v601_v13 = vpack.c.bf16 %v258_v17, %v258_v17  ;;  %v602_v23 = vpack.c.bf16 %v266_v21, %v266_v21  ;;  %v10737_v17 = vld [vmem:[%s13811_s1 + $0xb98] sm:$0xff]   ;;  %v10742_v21 = vld [vmem:[%s13811_s1 + $0xd50] sm:$0xff]  }
 0x148   :  { %9740 = vmatprep.subr.bf16.mxu1 %v10666_v25  ;;  %v10705_v25 = vld [vmem:[%s13811_s1 + $0xc48] sm:$0xff]  }
 0x149   :  { %9805 = vmatpush3.bf16.msra.mxu0 %v10673_v35  ;;  %7574 = vmatprep.mubr.bf16.mxu0 %v602_v23  ;;  %v251_v35 = vcombine.high %v27_v16, %v27_v16  ;;  %v10738_v16 = vld [vmem:[%s13811_s1 + $0xd48] sm:$0xff]  }
 0x14a   :  { %9806 = vmatprep.subr.bf16.mxu0 %v10676_v36  ;;  %v10744_v23 = vld [vmem:[%s13811_s1 + $0xbe8] sm:$0xff]  }
 0x14b   :  { %9741 = vmatpush3.bf16.msra.mxu1 %v10667_v28  ;;  %v10707_v28 = vld [vmem:[%s13811_s1 + $0xae0] sm:$0xff]  }
 0x14c   :  { %9742 = vmatprep.subr.bf16.mxu1 %v10670_v32  ;;  %v10713_v32 = vld [vmem:[%s13811_s1 + $0xc58] sm:$0xff]  }
 0x14d   :  { %9807 = vmatpush3.bf16.msra.mxu0 %v10677_v40 }
 0x14e   :  { %9808 = vmatprep.subr.bf16.mxu0 %v10680_v42 }
 0x14f   :  { %9743 = vmatpush3.bf16.msra.mxu1 %v10671_v34  ;;  %v10714_v34 = vld [vmem:[%s13811_s1 + $0xc18] sm:$0xff]  }
 0x150   :  { %9744 = vmatprep.subr.bf16.mxu1 %v10674_v38  ;;  %v10715_v38 = vld [vmem:[%s13811_s1 + $0xaf0] sm:$0xff]  }
 0x151   :  { %9809 = vmatpush3.bf16.msra.mxu0 %v10681_v44  ;;  %v10718_v44 = vld [vmem:[%s13811_s1 + $0xc20] sm:$0xff]  }
 0x152   :  { %9810 = vmatprep.subr.bf16.mxu0 %v10684_v46 }
 0x153   :  { %9745 = vmatpush3.bf16.msra.mxu1 %v10675_v39  ;;  %v10717_v39 = vld [vmem:[%s13811_s1 + $0xc60] sm:$0xff]  }
 0x154   :  { %9746 = vmatprep.subr.bf16.mxu1 %v10678_v41  ;;  %v10716_v41 = vld [vmem:[%s13811_s1 + $0xab0] sm:$0xff]  }
 0x155   :  { %v9444_v47 = vpop.f32.mrb[12].mxu1  ;;  %9811 = vmatpush3.bf16.msra.mxu0 %v10685_v51 }
 0x156   :  { %v9445_v50 = vpop.f32.mrb[13].mxu1  ;;  %9812 = vmatprep.subr.bf16.mxu0 %v10688_v56  ;;  %v10724_v56 = vld [vmem:[%s13811_s1 + $0xbc0] sm:$0xff]  }
 0x157   :  { %v9446_v52 = vadd.f32 %v9445_v50, %v9444_v47  ;;  %v9447_v53 = vpop.f32.mrb[14].mxu1  ;;  %9747 = vmatpush3.bf16.msra.mxu1 %v10679_v43  ;;  %v9510_v61 = vpop.f32.mrb[12].mxu0  ;;  %v10719_v47 = vld [vmem:[%s13811_s1 + $0xaf8] sm:$0xff]  }
 0x158   :  { %v9448_v55 = vpop.f32.mrb[15].mxu1  ;;  %9748 = vmatprep.subr.bf16.mxu1 %v10682_v45  ;;  %v9511_v0 = vpop.f32.mrb[13].mxu0  ;;  %v12456_v45 = vrot.slane %v251_v35, %v11250_v37  ;;  %v10720_v50 = vld [vmem:[%s13811_s1 + $0xab8] sm:$0xff]  }
 0x159   :  { %v6897_v57 = vadd.f32 %v9446_v52, %v12244_v8  ;;  %v12367_v2 = vadd.f32 %v9511_v0, %v9510_v61  ;;  %v9513_v3 = vpop.f32.mrb[14].mxu0  ;;  %9813 = vmatpush3.bf16.msra.mxu0 %v10690_v60  ;;  %v10723_v52 = vld [vmem:[%s13811_s1 + $0xc28] sm:$0xff]   ;;  %v10726_v60 = vld [vmem:[%s13811_s1 + $0xc70] sm:$0xff]   ;;  %v599_v61 = vpack.c.bf16 %v12353_v59, %v12353_v59  ;;  %v10730_v59 = vld [vmem:[%s13811_s1 + $0xc78] sm:$0xff]  }
 0x15a   :  { %v9514_v8 = vpop.f32.mrb[15].mxu0  ;;  %9814 = vmatprep.subr.bf16.mxu0 %v10693_v1  ;;  %v10727_v0 = vld [vmem:[%s13811_s1 + $0xc30] sm:$0xff]   ;;  %v10729_v3 = vld [vmem:[%s13811_s1 + $0xb88] sm:$0xff]  }
 0x15b   :  { %9749 = vmatpush3.bf16.msra.mxu1 %v10683_v48  ;;  %v12362_v63 = vadd.f32 %v12249_v11, %v6897_v57  ;;  %v10697_v11 = vld [vmem:[%s13811_s1 + $0xb78] sm:$0xff]   ;;  %v275_v8 = vrot.slane %v28_v6, %v11250_v37 }
 0x15c   :  { %9750 = vmatprep.subr.bf16.mxu1 %v10686_v54  ;;  %v267_v54 = vcombine.high %v12456_v45, %v12456_v45 }
 0x15d   :  { %9815 = vmatpush3.bf16.msra.mxu0 %v10694_v9  ;;  %v10734_v9 = vld [vmem:[%s13811_s1 + $0xd40] sm:$0xff]  }
 0x15e   :  { %9816 = vmatprep.subr.bf16.mxu0 %v10697_v11  ;;  %v604_v1 = vpack.c.bf16 %v267_v54, %v267_v54  ;;  %v283_v11 = vcombine.high %v275_v8, %v275_v8 }
 0x15f   :  { %9751 = vmatpush3.bf16.msra.mxu1 %v10687_v58 }
 0x160   :  { %9780 = vmatprep.subr.bf16.mxu1 %v10691_v62 }
 0x161   :  { %9817 = vmatpush3.bf16.msra.mxu0 %v10698_v12  ;;  %v10735_v12 = vld [vmem:[%s13811_s1 + $0xd00] sm:$0xff]  }
 0x162   :  { %7455 = vmatmul.mubr.bf16.vlgmr.msra.gmra.mrb[40].mxu1 %v595_v7  ;;  %9846 = vmatprep.subr.bf16.mxu0 %v10701_v18  ;;  %v10732_v7 = vld [vmem:[%s13811_s1 + $0xbd0] sm:$0xff]   ;;  %v10739_v18 = vld [vmem:[%s13811_s1 + $0xd08] sm:$0xff]  }
 0x163   :  { %9781 = vmatpush3.bf16.msra.mxu1 %v10692_v5  ;;  %7534 = vmatprep.mubr.bf16.mxu1 %v600_v14  ;;  %v10731_v5 = vld [vmem:[%s13811_s1 + $0xc38] sm:$0xff]   ;;  %v606_v14 = vpack.c.bf16 %v283_v11, %v283_v11  ;;  %v10775_v11 = vld [vmem:[%s13811_s1 + $0xe50] sm:$0xff]  }
 0x164   :  { %9782 = vmatprep.subr.bf16.mxu1 %v10695_v10  ;;  %7575 = vmatmul.mubr.bf16.vlgmr.msra.gmra.mrb[40].mxu0 %v601_v13  ;;  %v10733_v10 = vld [vmem:[%s13811_s1 + $0xb90] sm:$0xff]   ;;  %v10741_v13 = vld [vmem:[%s13811_s1 + $0xba0] sm:$0xff]  }
 0x165   :  { %9847 = vmatpush3.bf16.msra.mxu0 %v10702_v22  ;;  %7654 = vmatprep.mubr.bf16.mxu0 %v606_v14  ;;  %v10743_v22 = vld [vmem:[%s13811_s1 + $0xd10] sm:$0xff]   ;;  %v10777_v14 = vld [vmem:[%s13811_s1 + $0xce8] sm:$0xff]  }
 0x166   :  { %9848 = vmatprep.subr.bf16.mxu0 %v10705_v25  ;;  %v10745_v25 = vld [vmem:[%s13811_s1 + $0xba8] sm:$0xff]  }
 0x167   :  { %9783 = vmatpush3.bf16.msra.mxu1 %v10696_v4  ;;  %v605_v4 = vpack.c.bf16 %v275_v8, %v275_v8  ;;  %v10770_v8 = vld [vmem:[%s13811_s1 + $0xc98] sm:$0xff]  }
 0x168   :  { %9784 = vmatprep.subr.bf16.mxu1 %v10699_v15  ;;  %v10736_v15 = vld [vmem:[%s13811_s1 + $0xbd8] sm:$0xff]  }
 0x169   :  { %9849 = vmatpush3.bf16.msra.mxu0 %v10706_v27  ;;  %v268_v27 = vcombine.high %v28_v6, %v28_v6  ;;  %v10769_v6 = vld [vmem:[%s13811_s1 + $0xcd8] sm:$0xff]  }
 0x16a   :  { %9850 = vmatprep.subr.bf16.mxu0 %v10709_v29 }
 0x16b   :  { %9785 = vmatpush3.bf16.msra.mxu1 %v10700_v19  ;;  %v10740_v19 = vld [vmem:[%s13811_s1 + $0xbe0] sm:$0xff]   ;;  %v12569_v35 = vrot.slane %v268_v27, %v11250_v37 }
 0x16c   :  { %9786 = vmatprep.subr.bf16.mxu1 %v10703_v24  ;;  %v10746_v24 = vld [vmem:[%s13811_s1 + $0xd58] sm:$0xff]  }
 0x16d   :  { %9851 = vmatpush3.bf16.msra.mxu0 %v10710_v30 }
 0x16e   :  { %9852 = vmatprep.subr.bf16.mxu0 %v10713_v32 }
 0x16f   :  { %9787 = vmatpush3.bf16.msra.mxu1 %v10704_v26  ;;  %v10747_v26 = vld [vmem:[%s13811_s1 + $0xd18] sm:$0xff]  }
 0x170   :  { %9788 = vmatprep.subr.bf16.mxu1 %v10707_v28  ;;  %v10748_v28 = vld [vmem:[%s13811_s1 + $0xbf0] sm:$0xff]  }
 0x171   :  { %9853 = vmatpush3.bf16.msra.mxu0 %v10714_v34  ;;  %v10751_v34 = vld [vmem:[%s13811_s1 + $0xd20] sm:$0xff]  }
 0x172   :  { %9854 = vmatprep.subr.bf16.mxu0 %v10717_v39 }
 0x173   :  { %9789 = vmatpush3.bf16.msra.mxu1 %v10708_v20  ;;  %v10750_v20 = vld [vmem:[%s13811_s1 + $0xd60] sm:$0xff]  }
 0x174   :  { %9790 = vmatprep.subr.bf16.mxu1 %v10711_v31  ;;  %v10749_v31 = vld [vmem:[%s13811_s1 + $0xbb0] sm:$0xff]  }
 0x175   :  { %v9488_v36 = vpop.f32.mrb[16].mxu1  ;;  %9855 = vmatpush3.bf16.msra.mxu0 %v10718_v44  ;;  %v284_v44 = vcombine.high %v12569_v35, %v12569_v35 }
 0x176   :  { %v9489_v40 = vpop.f32.mrb[17].mxu1  ;;  %9856 = vmatprep.subr.bf16.mxu0 %v10721_v49  ;;  %v10759_v49 = vld [vmem:[%s13811_s1 + $0xd70] sm:$0xff]  }
 0x177   :  { %v9490_v42 = vadd.f32 %v9489_v40, %v9488_v36  ;;  %v9491_v43 = vpop.f32.mrb[18].mxu1  ;;  %9791 = vmatpush3.bf16.msra.mxu1 %v10712_v33  ;;  %v9554_v51 = vpop.f32.mrb[16].mxu0  ;;  %v10752_v36 = vld [vmem:[%s13811_s1 + $0xbf8] sm:$0xff]   ;;  %v10754_v40 = vld [vmem:[%s13811_s1 + $0xd68] sm:$0xff]  }
 0x178   :  { %v9492_v46 = vpop.f32.mrb[19].mxu1  ;;  %9792 = vmatprep.subr.bf16.mxu1 %v10715_v38  ;;  %v9555_v55 = vpop.f32.mrb[17].mxu0 }
 0x179   :  { %v6977_v48 = vadd.f32 %v9490_v42, %v12362_v63  ;;  %v12479_v57 = vadd.f32 %v9555_v55, %v9554_v51  ;;  %v9557_v58 = vpop.f32.mrb[18].mxu0  ;;  %v10725_v63 = vld [vmem:[%s13811_s1 + $0xb80] sm:$0xff]   ;;  %9857 = vmatpush3.bf16.msra.mxu0 %v10723_v52  ;;  %v10756_v42 = vld [vmem:[%s13811_s1 + $0xd28] sm:$0xff]   ;;  %v603_v52 = vpack.c.bf16 %v12456_v45, %v12456_v45  ;;  %v10760_v55 = vld [vmem:[%s13811_s1 + $0xd30] sm:$0xff]  }
 0x17a   :  { %v9558_v62 = vpop.f32.mrb[19].mxu0  ;;  %9858 = vmatprep.subr.bf16.mxu0 %v10726_v60  ;;  %v10763_v45 = vld [vmem:[%s13811_s1 + $0xd78] sm:$0xff]   ;;  %v10762_v58 = vld [vmem:[%s13811_s1 + $0xc88] sm:$0xff]  }
 0x17b   :  { %9793 = vmatpush3.bf16.msra.mxu1 %v10716_v41  ;;  %v12472_v53 = vadd.f32 %v12367_v2, %v6977_v48  ;;  %v10728_v2 = vld [vmem:[%s13811_s1 + $0xbc8] sm:$0xff]   ;;  %v10753_v41 = vld [vmem:[%s13811_s1 + $0xbb8] sm:$0xff]   ;;  %v10765_v62 = vld [vmem:[%s13811_s1 + $0xcd0] sm:$0xff]  }
 0x17c   :  { %9794 = vmatprep.subr.bf16.mxu1 %v10719_v47  ;;  %v10757_v47 = vld [vmem:[%s13811_s1 + $0xcc0] sm:$0xff]   ;;  %v10764_v60 = vld [vmem:[%s13811_s1 + $0xd38] sm:$0xff]  }
 0x17d   :  { %9859 = vmatpush3.bf16.msra.mxu0 %v10727_v0  ;;  %v10767_v0 = vld [vmem:[%s13811_s1 + $0xe40] sm:$0xff]  }
 0x17e   :  { %9860 = vmatprep.subr.bf16.mxu0 %v10730_v59 }
 0x17f   :  { %9795 = vmatpush3.bf16.msra.mxu1 %v10720_v50 }
 0x180   :  { %9824 = vmatprep.subr.bf16.mxu1 %v10724_v56  ;;  %v608_v56 = vpack.c.bf16 %v284_v44, %v284_v44  ;;  %v10791_v44 = vld [vmem:[%s13811_s1 + $0xd80] sm:$0xff]  }
 0x181   :  { %9861 = vmatpush3.bf16.msra.mxu0 %v10731_v5 }
 0x182   :  { %7535 = vmatmul.mubr.bf16.vlgmr.msra.gmra.mrb[44].mxu1 %v599_v61  ;;  %9890 = vmatprep.subr.bf16.mxu0 %v10734_v9  ;;  %v29_v61 = vld [vmem:[%s13810_s0 + $0x68] sm:$0xff] }
 0x183   :  { %9825 = vmatpush3.bf16.msra.mxu1 %v10725_v63  ;;  %7614 = vmatprep.mubr.bf16.mxu1 %v604_v1  ;;  %v292_v63 = vrot.slane %v29_v61, %v11250_v37  ;;  %v10766_v1 = vld [vmem:[%s13811_s1 + $0xc90] sm:$0xff]   ;;  %v10772_v9 = vld [vmem:[%s13811_s1 + $0xe08] sm:$0xff]  }
 0x184   :  { %9826 = vmatprep.subr.bf16.mxu1 %v10728_v2  ;;  %7655 = vmatmul.mubr.bf16.vlgmr.msra.gmra.mrb[44].mxu0 %v605_v4  ;;  %v10774_v4 = vld [vmem:[%s13811_s1 + $0xca0] sm:$0xff]  }
 0x185   :  { %9891 = vmatpush3.bf16.msra.mxu0 %v10735_v12  ;;  %v300_v2 = vcombine.high %v292_v63, %v292_v63  ;;  %v609_v59 = vpack.c.bf16 %v292_v63, %v292_v63  ;;  %v10776_v12 = vld [vmem:[%s13811_s1 + $0xe10] sm:$0xff]   ;;  %v10804_v63 = vld [vmem:[%s13811_s1 + $0xf48] sm:$0xff]  }
 0x186   :  { %9892 = vmatprep.subr.bf16.mxu0 %v10738_v16  ;;  %v10778_v16 = vld [vmem:[%s13811_s1 + $0xca8] sm:$0xff]  }
 0x187   :  { %9827 = vmatpush3.bf16.msra.mxu1 %v10729_v3  ;;  %v10768_v3 = vld [vmem:[%s13811_s1 + $0xe00] sm:$0xff]   ;;  %v610_v5 = vpack.c.bf16 %v300_v2, %v300_v2 }
 0x188   :  { %9828 = vmatprep.subr.bf16.mxu1 %v10732_v7  ;;  %v10771_v7 = vld [vmem:[%s13811_s1 + $0xe48] sm:$0xff]   ;;  %v10807_v2 = vld [vmem:[%s13811_s1 + $0xda0] sm:$0xff]  }
 0x189   :  { %9893 = vmatpush3.bf16.msra.mxu0 %v10739_v18  ;;  %7734 = vmatprep.mubr.bf16.mxu0 %v610_v5  ;;  %v285_v18 = vcombine.high %v29_v61, %v29_v61  ;;  %v10810_v5 = vld [vmem:[%s13811_s1 + $0xde8] sm:$0xff]  }
 0x18a   :  { %9894 = vmatprep.subr.bf16.mxu0 %v10742_v21 }
 0x18b   :  { %9829 = vmatpush3.bf16.msra.mxu1 %v10733_v10  ;;  %v10773_v10 = vld [vmem:[%s13811_s1 + $0xce0] sm:$0xff]   ;;  %v12682_v27 = vrot.slane %v285_v18, %v11250_v37 }
 0x18c   :  { %9830 = vmatprep.subr.bf16.mxu1 %v10736_v15  ;;  %v10779_v15 = vld [vmem:[%s13811_s1 + $0xe58] sm:$0xff]  }
 0x18d   :  { %9895 = vmatpush3.bf16.msra.mxu0 %v10743_v22 }
 0x18e   :  { %9896 = vmatprep.subr.bf16.mxu0 %v10746_v24 }
 0x18f   :  { %9831 = vmatpush3.bf16.msra.mxu1 %v10737_v17  ;;  %v10780_v17 = vld [vmem:[%s13811_s1 + $0xe18] sm:$0xff]  }
 0x190   :  { %9832 = vmatprep.subr.bf16.mxu1 %v10740_v19  ;;  %v10781_v19 = vld [vmem:[%s13811_s1 + $0xcf0] sm:$0xff]  }
 0x191   :  { %9897 = vmatpush3.bf16.msra.mxu0 %v10747_v26  ;;  %v10784_v26 = vld [vmem:[%s13811_s1 + $0xe20] sm:$0xff]  }
 0x192   :  { %9898 = vmatprep.subr.bf16.mxu0 %v10750_v20 }
 0x193   :  { %9833 = vmatpush3.bf16.msra.mxu1 %v10741_v13  ;;  %v10783_v13 = vld [vmem:[%s13811_s1 + $0xe60] sm:$0xff]  }
 0x194   :  { %9834 = vmatprep.subr.bf16.mxu1 %v10744_v23  ;;  %v10782_v23 = vld [vmem:[%s13811_s1 + $0xcb0] sm:$0xff]  }
 0x195   :  { %v9532_v29 = vpop.f32.mrb[20].mxu1  ;;  %9899 = vmatpush3.bf16.msra.mxu0 %v10751_v34  ;;  %v301_v34 = vcombine.high %v12682_v27, %v12682_v27 }
 0x196   :  { %v9533_v30 = vpop.f32.mrb[21].mxu1  ;;  %9900 = vmatprep.subr.bf16.mxu0 %v10754_v40  ;;  %v10792_v40 = vld [vmem:[%s13811_s1 + $0xe70] sm:$0xff]  }
 0x197   :  { %v9534_v32 = vadd.f32 %v9533_v30, %v9532_v29  ;;  %v9535_v33 = vpop.f32.mrb[22].mxu1  ;;  %9835 = vmatpush3.bf16.msra.mxu1 %v10745_v25  ;;  %v9598_v46 = vpop.f32.mrb[20].mxu0  ;;  %v10785_v29 = vld [vmem:[%s13811_s1 + $0xcf8] sm:$0xff]   ;;  %v10787_v30 = vld [vmem:[%s13811_s1 + $0xe68] sm:$0xff]  }
 0x198   :  { %v9536_v38 = vpop.f32.mrb[23].mxu1  ;;  %9836 = vmatprep.subr.bf16.mxu1 %v10748_v28  ;;  %v9599_v48 = vpop.f32.mrb[21].mxu0 }
 0x199   :  { %v7057_v39 = vadd.f32 %v9534_v32, %v12472_v53  ;;  %v12595_v50 = vadd.f32 %v9599_v48, %v9598_v46  ;;  %v9601_v51 = vpop.f32.mrb[22].mxu0  ;;  %v10758_v53 = vld [vmem:[%s13811_s1 + $0xc80] sm:$0xff]   ;;  %9901 = vmatpush3.bf16.msra.mxu0 %v10756_v42  ;;  %v10789_v32 = vld [vmem:[%s13811_s1 + $0xe28] sm:$0xff]   ;;  %v612_v48 = vpack.c.bf16 %v301_v34, %v301_v34 }
 0x19a   :  { %v9602_v54 = vpop.f32.mrb[23].mxu0  ;;  %9902 = vmatprep.subr.bf16.mxu0 %v10759_v49  ;;  %v10794_v49 = vld [vmem:[%s13811_s1 + $0xdc8] sm:$0xff]   ;;  %v10797_v51 = vld [vmem:[%s13811_s1 + $0xe38] sm:$0xff]  }
 0x19b   :  { %9837 = vmatpush3.bf16.msra.mxu1 %v10749_v31  ;;  %v12585_v43 = vadd.f32 %v12479_v57, %v7057_v39  ;;  %v10761_v57 = vld [vmem:[%s13811_s1 + $0xcc8] sm:$0xff]   ;;  %v10786_v31 = vld [vmem:[%s13811_s1 + $0xcb8] sm:$0xff]  }
 0x19c   :  { %9838 = vmatprep.subr.bf16.mxu1 %v10752_v36  ;;  %v10790_v36 = vld [vmem:[%s13811_s1 + $0xdc0] sm:$0xff]  }
 0x19d   :  { %9903 = vmatpush3.bf16.msra.mxu0 %v10760_v55  ;;  %v10800_v55 = vld [vmem:[%s13811_s1 + $0xf40] sm:$0xff]  }
 0x19e   :  { %9904 = vmatprep.subr.bf16.mxu0 %v10763_v45  ;;  %v10801_v45 = vld [vmem:[%s13811_s1 + $0xf00] sm:$0xff]  }
 0x19f   :  { %9839 = vmatpush3.bf16.msra.mxu1 %v10753_v41 }
 0x1a0   :  { %9868 = vmatprep.subr.bf16.mxu1 %v10757_v47  ;;  %v10793_v47 = vld [vmem:[%s13811_s1 + $0xe30] sm:$0xff]  }
 0x1a1   :  { %9905 = vmatpush3.bf16.msra.mxu0 %v10764_v60  ;;  %v10802_v60 = vld [vmem:[%s13811_s1 + $0xdd8] sm:$0xff]  }
 0x1a2   :  { %7615 = vmatmul.mubr.bf16.vlgmr.msra.gmra.mrb[48].mxu1 %v603_v52  ;;  %9934 = vmatprep.subr.bf16.mxu0 %v10767_v0  ;;  %v10798_v52 = vld [vmem:[%s13811_s1 + $0xdd0] sm:$0xff]   ;;  %v10805_v0 = vld [vmem:[%s13811_s1 + $0xf08] sm:$0xff]  }
 0x1a3   :  { %9869 = vmatpush3.bf16.msra.mxu1 %v10758_v53  ;;  %7694 = vmatprep.mubr.bf16.mxu1 %v608_v56  ;;  %v30_v53 = vld [vmem:[%s13810_s0 + $0x70] sm:$0xff] }
 0x1a4   :  { %9870 = vmatprep.subr.bf16.mxu1 %v10761_v57  ;;  %7735 = vmatmul.mubr.bf16.vlgmr.msra.gmra.mrb[48].mxu0 %v609_v59  ;;  %v309_v54 = vrot.slane %v30_v53, %v11250_v37  ;;  %v10799_v56 = vld [vmem:[%s13811_s1 + $0xd90] sm:$0xff]  }
 0x1a5   :  { %9935 = vmatpush3.bf16.msra.mxu0 %v10768_v3  ;;  %v10808_v59 = vld [vmem:[%s13811_s1 + $0xf50] sm:$0xff]  }
 0x1a6   :  { %9936 = vmatprep.subr.bf16.mxu0 %v10771_v7  ;;  %v317_v57 = vcombine.high %v309_v54, %v309_v54  ;;  %v10809_v3 = vld [vmem:[%s13811_s1 + $0xf10] sm:$0xff]   ;;  %v10812_v7 = vld [vmem:[%s13811_s1 + $0xf58] sm:$0xff]  }
 0x1a7   :  { %9871 = vmatpush3.bf16.msra.mxu1 %v10762_v58  ;;  %v613_v58 = vpack.c.bf16 %v309_v54, %v309_v54  ;;  %v10837_v54 = vld [vmem:[%s13811_s1 + $0x1048] sm:$0xff]  }
 0x1a8   :  { %9872 = vmatprep.subr.bf16.mxu1 %v10765_v62  ;;  %v614_v61 = vpack.c.bf16 %v317_v57, %v317_v57  ;;  %v10803_v62 = vld [vmem:[%s13811_s1 + $0xd98] sm:$0xff]   ;;  %v10840_v57 = vld [vmem:[%s13811_s1 + $0xea0] sm:$0xff]  }
 0x1a9   :  { %9937 = vmatpush3.bf16.msra.mxu0 %v10772_v9  ;;  %v302_v9 = vcombine.high %v30_v53, %v30_v53  ;;  %v10836_v53 = vld [vmem:[%s13811_s1 + $0xe98] sm:$0xff]  }
 0x1aa   :  { %9938 = vmatprep.subr.bf16.mxu0 %v10775_v11  ;;  %7814 = vmatprep.mubr.bf16.mxu0 %v614_v61  ;;  %v10844_v61 = vld [vmem:[%s13811_s1 + $0xea8] sm:$0xff]  }
 0x1ab   :  { %9873 = vmatpush3.bf16.msra.mxu1 %v10766_v1  ;;  %v10806_v1 = vld [vmem:[%s13811_s1 + $0xde0] sm:$0xff]   ;;  %v12795_v18 = vrot.slane %v302_v9, %v11250_v37 }
 0x1ac   :  { %9874 = vmatprep.subr.bf16.mxu1 %v10769_v6  ;;  %v10811_v6 = vld [vmem:[%s13811_s1 + $0xda8] sm:$0xff]  }
 0x1ad   :  { %9939 = vmatpush3.bf16.msra.mxu0 %v10776_v12 }
 0x1ae   :  { %9940 = vmatprep.subr.bf16.mxu0 %v10779_v15 }
 0x1af   :  { %9875 = vmatpush3.bf16.msra.mxu1 %v10770_v8  ;;  %v10813_v8 = vld [vmem:[%s13811_s1 + $0xf18] sm:$0xff]  }
 0x1b0   :  { %9876 = vmatprep.subr.bf16.mxu1 %v10773_v10  ;;  %v10814_v10 = vld [vmem:[%s13811_s1 + $0xdf0] sm:$0xff]  }
 0x1b1   :  { %9941 = vmatpush3.bf16.msra.mxu0 %v10780_v17  ;;  %v10817_v17 = vld [vmem:[%s13811_s1 + $0xf20] sm:$0xff]  }
 0x1b2   :  { %9942 = vmatprep.subr.bf16.mxu0 %v10783_v13 }
 0x1b3   :  { %9877 = vmatpush3.bf16.msra.mxu1 %v10774_v4  ;;  %v10815_v4 = vld [vmem:[%s13811_s1 + $0xdb0] sm:$0xff]  }
 0x1b4   :  { %9878 = vmatprep.subr.bf16.mxu1 %v10777_v14  ;;  %v10816_v14 = vld [vmem:[%s13811_s1 + $0xf60] sm:$0xff]  }
 0x1b5   :  { %v9576_v21 = vpop.f32.mrb[24].mxu1  ;;  %9943 = vmatpush3.bf16.msra.mxu0 %v10784_v26  ;;  %v318_v26 = vcombine.high %v12795_v18, %v12795_v18 }
 0x1b6   :  { %v9577_v22 = vpop.f32.mrb[25].mxu1  ;;  %9944 = vmatprep.subr.bf16.mxu0 %v10787_v30 }
 0x1b7   :  { %v9578_v24 = vadd.f32 %v9577_v22, %v9576_v21  ;;  %v9579_v25 = vpop.f32.mrb[26].mxu1  ;;  %9879 = vmatpush3.bf16.msra.mxu1 %v10778_v16  ;;  %v9642_v38 = vpop.f32.mrb[24].mxu0  ;;  %v10818_v21 = vld [vmem:[%s13811_s1 + $0xdf8] sm:$0xff]  }
 0x1b8   :  { %v9580_v28 = vpop.f32.mrb[27].mxu1  ;;  %9880 = vmatprep.subr.bf16.mxu1 %v10781_v19  ;;  %v9643_v39 = vpop.f32.mrb[25].mxu0  ;;  %v10819_v22 = vld [vmem:[%s13811_s1 + $0xdb8] sm:$0xff]  }
 0x1b9   :  { %v7137_v20 = vadd.f32 %v9578_v24, %v12585_v43  ;;  %v12708_v41 = vadd.f32 %v9643_v39, %v9642_v38  ;;  %v9645_v42 = vpop.f32.mrb[26].mxu0  ;;  %v607_v43 = vpack.c.bf16 %v12569_v35, %v12569_v35  ;;  %9945 = vmatpush3.bf16.msra.mxu0 %v10789_v32  ;;  %v10795_v35 = vld [vmem:[%s13811_s1 + $0xd88] sm:$0xff]   ;;  %v10823_v28 = vld [vmem:[%s13811_s1 + $0xec0] sm:$0xff]   ;;  %v10825_v32 = vld [vmem:[%s13811_s1 + $0xf70] sm:$0xff]  }
 0x1ba   :  { %v9646_v46 = vpop.f32.mrb[27].mxu0  ;;  %9946 = vmatprep.subr.bf16.mxu0 %v10792_v40  ;;  %v10822_v24 = vld [vmem:[%s13811_s1 + $0xf28] sm:$0xff]   ;;  %v10826_v38 = vld [vmem:[%s13811_s1 + $0xf30] sm:$0xff]   ;;  %v10830_v42 = vld [vmem:[%s13811_s1 + $0xf38] sm:$0xff]  }
 0x1bb   :  { %9881 = vmatpush3.bf16.msra.mxu1 %v10782_v23  ;;  %v12698_v33 = vadd.f32 %v12595_v50, %v7137_v20  ;;  %v10796_v50 = vld [vmem:[%s13811_s1 + $0xe78] sm:$0xff]   ;;  %v10820_v23 = vld [vmem:[%s13811_s1 + $0xf68] sm:$0xff]   ;;  %v10824_v20 = vld [vmem:[%s13811_s1 + $0xe80] sm:$0xff]  }
 0x1bc   :  { %9882 = vmatprep.subr.bf16.mxu1 %v10785_v29  ;;  %v10827_v40 = vld [vmem:[%s13811_s1 + $0xec8] sm:$0xff]   ;;  %v10832_v46 = vld [vmem:[%s13811_s1 + $0xe90] sm:$0xff]  }
 0x1bd   :  { %9947 = vmatpush3.bf16.msra.mxu0 %v10793_v47 }
 0x1be   :  { %9948 = vmatprep.subr.bf16.mxu0 %v10796_v50 }
 0x1bf   :  { %9883 = vmatpush3.bf16.msra.mxu1 %v10786_v31  ;;  %v611_v31 = vpack.c.bf16 %v12682_v27, %v12682_v27  ;;  %v10828_v27 = vld [vmem:[%s13811_s1 + $0xe88] sm:$0xff]  }
 0x1c0   :  { %9912 = vmatprep.subr.bf16.mxu1 %v10790_v36  ;;  %v616_v36 = vpack.c.bf16 %v318_v26, %v318_v26 }
 0x1c1   :  { %9949 = vmatpush3.bf16.msra.mxu0 %v10797_v51  ;;  %v10835_v51 = vld [vmem:[%s13811_s1 + $0xed8] sm:$0xff]  }
 0x1c2   :  { %7695 = vmatmul.mubr.bf16.vlgmr.msra.gmra.mrb[52].mxu1 %v607_v43  ;;  %9978 = vmatprep.subr.bf16.mxu0 %v10800_v55  ;;  %v10831_v43 = vld [vmem:[%s13811_s1 + $0xed0] sm:$0xff]   ;;  %v10838_v55 = vld [vmem:[%s13811_s1 + $0x1008] sm:$0xff]  }
 0x1c3   :  { %9913 = vmatpush3.bf16.msra.mxu1 %v10791_v44  ;;  %7774 = vmatprep.mubr.bf16.mxu1 %v612_v48  ;;  %v31_v44 = vld [vmem:[%s13810_s0 + $0x78] sm:$0xff]  ;;  %v10833_v48 = vld [vmem:[%s13811_s1 + $0x1040] sm:$0xff]  }
 0x1c4   :  { %9914 = vmatprep.subr.bf16.mxu1 %v10794_v49  ;;  %7815 = vmatmul.mubr.bf16.vlgmr.msra.gmra.mrb[52].mxu0 %v613_v58  ;;  %v326_v47 = vrot.slane %v31_v44, %v11250_v37  ;;  %v10842_v58 = vld [vmem:[%s13811_s1 + $0x1010] sm:$0xff]  }
 0x1c5   :  { %9979 = vmatpush3.bf16.msra.mxu0 %v10801_v45  ;;  %v10841_v45 = vld [vmem:[%s13811_s1 + $0x1050] sm:$0xff]  }
 0x1c6   :  { %9980 = vmatprep.subr.bf16.mxu0 %v10804_v63  ;;  %v334_v49 = vcombine.high %v326_v47, %v326_v47  ;;  %v617_v50 = vpack.c.bf16 %v326_v47, %v326_v47  ;;  %v10846_v63 = vld [vmem:[%s13811_s1 + $0x1018] sm:$0xff]   ;;  %v10871_v47 = vld [vmem:[%s13811_s1 + $0x1108] sm:$0xff]  }
 0x1c7   :  { %9915 = vmatpush3.bf16.msra.mxu1 %v10795_v35  ;;  %v10834_v35 = vld [vmem:[%s13811_s1 + $0x1000] sm:$0xff]  }
 0x1c8   :  { %9916 = vmatprep.subr.bf16.mxu1 %v10798_v52  ;;  %v618_v52 = vpack.c.bf16 %v334_v49, %v334_v49  ;;  %v10873_v49 = vld [vmem:[%s13811_s1 + $0xfa0] sm:$0xff]  }
 0x1c9   :  { %9981 = vmatpush3.bf16.msra.mxu0 %v10805_v0  ;;  %v319_v0 = vcombine.high %v31_v44, %v31_v44  ;;  %v10869_v44 = vld [vmem:[%s13811_s1 + $0xf98] sm:$0xff]  }
 0x1ca   :  { %9982 = vmatprep.subr.bf16.mxu0 %v10808_v59  ;;  %7894 = vmatprep.mubr.bf16.mxu0 %v618_v52  ;;  %v10848_v59 = vld [vmem:[%s13811_s1 + $0xeb0] sm:$0xff]   ;;  %v10877_v52 = vld [vmem:[%s13811_s1 + $0xfa8] sm:$0xff]  }
 0x1cb   :  { %9917 = vmatpush3.bf16.msra.mxu1 %v10799_v56  ;;  %v10839_v56 = vld [vmem:[%s13811_s1 + $0xee0] sm:$0xff]   ;;  %v12908_v9 = vrot.slane %v319_v0, %v11250_v37 }
 0x1cc   :  { %9918 = vmatprep.subr.bf16.mxu1 %v10802_v60  ;;  %v10843_v60 = vld [vmem:[%s13811_s1 + $0xee8] sm:$0xff]  }
 0x1cd   :  { %9983 = vmatpush3.bf16.msra.mxu0 %v10809_v3 }
 0x1ce   :  { %9984 = vmatprep.subr.bf16.mxu0 %v10812_v7 }
 0x1cf   :  { %9919 = vmatpush3.bf16.msra.mxu1 %v10803_v62  ;;  %v10845_v62 = vld [vmem:[%s13811_s1 + $0x1058] sm:$0xff]  }
 0x1d0   :  { %9920 = vmatprep.subr.bf16.mxu1 %v10806_v1  ;;  %v10847_v1 = vld [vmem:[%s13811_s1 + $0xef0] sm:$0xff]  }
 0x1d1   :  { %9985 = vmatpush3.bf16.msra.mxu0 %v10813_v8  ;;  %v10850_v8 = vld [vmem:[%s13811_s1 + $0x1020] sm:$0xff]  }
 0x1d2   :  { %9986 = vmatprep.subr.bf16.mxu0 %v10816_v14  ;;  %v10853_v14 = vld [vmem:[%s13811_s1 + $0x1068] sm:$0xff]  }
 0x1d3   :  { %9921 = vmatpush3.bf16.msra.mxu1 %v10807_v2 }
 0x1d4   :  { %9922 = vmatprep.subr.bf16.mxu1 %v10810_v5  ;;  %v10849_v5 = vld [vmem:[%s13811_s1 + $0x1060] sm:$0xff]  }
 0x1d5   :  { %v9620_v11 = vpop.f32.mrb[28].mxu1  ;;  %9987 = vmatpush3.bf16.msra.mxu0 %v10817_v17  ;;  %v335_v17 = vcombine.high %v12908_v9, %v12908_v9 }
 0x1d6   :  { %v9621_v12 = vpop.f32.mrb[29].mxu1  ;;  %9988 = vmatprep.subr.bf16.mxu0 %v10820_v23  ;;  %v615_v23 = vpack.c.bf16 %v12795_v18, %v12795_v18  ;;  %v10861_v18 = vld [vmem:[%s13811_s1 + $0xf88] sm:$0xff]  }
 0x1d7   :  { %v9622_v15 = vadd.f32 %v9621_v12, %v9620_v11  ;;  %v9623_v16 = vpop.f32.mrb[30].mxu1  ;;  %9923 = vmatpush3.bf16.msra.mxu1 %v10811_v6  ;;  %v9686_v29 = vpop.f32.mrb[28].mxu0  ;;  %v10851_v11 = vld [vmem:[%s13811_s1 + $0xef8] sm:$0xff]  }
 0x1d8   :  { %v9624_v19 = vpop.f32.mrb[31].mxu1  ;;  %9924 = vmatprep.subr.bf16.mxu1 %v10814_v10  ;;  %v9687_v30 = vpop.f32.mrb[29].mxu0  ;;  %v10852_v12 = vld [vmem:[%s13811_s1 + $0xeb8] sm:$0xff]  }
 0x1d9   :  { %v7217_v13 = vadd.f32 %v9622_v15, %v12698_v33  ;;  %v12826_v33 = vadd.f32 %v9687_v30, %v9686_v29  ;;  %v9689_v34 = vpop.f32.mrb[30].mxu0  ;;  %9989 = vmatpush3.bf16.msra.mxu0 %v10822_v24  ;;  %v10855_v15 = vld [vmem:[%s13811_s1 + $0x1028] sm:$0xff]   ;;  %v10856_v19 = vld [vmem:[%s13811_s1 + $0xfc0] sm:$0xff]   ;;  %v10858_v24 = vld [vmem:[%s13811_s1 + $0x1070] sm:$0xff]   ;;  %v620_v29 = vpack.c.bf16 %v335_v17, %v335_v17 }
 0x1da   :  { %v9690_v39 = vpop.f32.mrb[31].mxu0  ;;  %9990 = vmatprep.subr.bf16.mxu0 %v10825_v32  ;;  %v10860_v30 = vld [vmem:[%s13811_s1 + $0xfc8] sm:$0xff]   ;;  %v10863_v32 = vld [vmem:[%s13811_s1 + $0x1038] sm:$0xff]   ;;  %v32_v34 = vld [vmem:[%s13810_s0 + $0x80] sm:$0xff] }
 0x1db   :  { %9925 = vmatpush3.bf16.msra.mxu1 %v10815_v4  ;;  %v12811_v25 = vadd.f32 %v12708_v41, %v7217_v13  ;;  %v10829_v41 = vld [vmem:[%s13811_s1 + $0xf78] sm:$0xff]   ;;  %v10857_v13 = vld [vmem:[%s13811_s1 + $0xf80] sm:$0xff]  }
 0x1dc   :  { %9926 = vmatprep.subr.bf16.mxu1 %v10818_v21  ;;  %v10866_v39 = vld [vmem:[%s13811_s1 + $0x1140] sm:$0xff]  }
 0x1dd   :  { %9991 = vmatpush3.bf16.msra.mxu0 %v10826_v38  ;;  %v10865_v38 = vld [vmem:[%s13811_s1 + $0xf90] sm:$0xff]  }
 0x1de   :  { %9992 = vmatprep.subr.bf16.mxu0 %v10829_v41 }
 0x1df   :  { %9927 = vmatpush3.bf16.msra.mxu1 %v10819_v22 }
 0x1e0   :  { %9956 = vmatprep.subr.bf16.mxu1 %v10823_v28  ;;  %v10859_v28 = vld [vmem:[%s13811_s1 + $0x1030] sm:$0xff]  }
 0x1e1   :  { %9993 = vmatpush3.bf16.msra.mxu0 %v10830_v42  ;;  %v10868_v42 = vld [vmem:[%s13811_s1 + $0xfd8] sm:$0xff]  }
 0x1e2   :  { %7775 = vmatmul.mubr.bf16.vlgmr.msra.gmra.mrb[56].mxu1 %v611_v31  ;;  %10022 = vmatprep.subr.bf16.mxu0 %v10833_v48  ;;  %v10862_v31 = vld [vmem:[%s13811_s1 + $0x1078] sm:$0xff]   ;;  %v10872_v48 = vld [vmem:[%s13811_s1 + $0xfe0] sm:$0xff]  }
 0x1e3   :  { %9957 = vmatpush3.bf16.msra.mxu1 %v10824_v20  ;;  %7854 = vmatprep.mubr.bf16.mxu1 %v616_v36  ;;  %v343_v36 = vrot.slane %v32_v34, %v11250_v37 }
 0x1e4   :  { %9958 = vmatprep.subr.bf16.mxu1 %v10827_v40  ;;  %7895 = vmatmul.mubr.bf16.vlgmr.msra.gmra.mrb[56].mxu0 %v617_v50  ;;  %v10875_v50 = vld [vmem:[%s13811_s1 + $0x1110] sm:$0xff]  }
 0x1e5   :  { %10023 = vmatpush3.bf16.msra.mxu0 %v10834_v35  ;;  %v351_v40 = vcombine.high %v343_v36, %v343_v36  ;;  %v621_v41 = vpack.c.bf16 %v343_v36, %v343_v36  ;;  %v10874_v35 = vld [vmem:[%s13811_s1 + $0x1150] sm:$0xff]   ;;  %v10905_v36 = vld [vmem:[%s13811_s1 + $0x10e0] sm:$0xff]  }
 0x1e6   :  { %10024 = vmatprep.subr.bf16.mxu0 %v10837_v54  ;;  %v10879_v54 = vld [vmem:[%s13811_s1 + $0x1118] sm:$0xff]  }
 0x1e7   :  { %9959 = vmatpush3.bf16.msra.mxu1 %v10828_v27  ;;  %v10867_v27 = vld [vmem:[%s13811_s1 + $0x1100] sm:$0xff]  }
 0x1e8   :  { %9960 = vmatprep.subr.bf16.mxu1 %v10831_v43  ;;  %v622_v43 = vpack.c.bf16 %v351_v40, %v351_v40  ;;  %v10906_v40 = vld [vmem:[%s13811_s1 + $0x10a0] sm:$0xff]  }
 0x1e9   :  { %10025 = vmatpush3.bf16.msra.mxu0 %v10838_v55  ;;  %v336_v55 = vcombine.high %v32_v34, %v32_v34  ;;  %v10902_v34 = vld [vmem:[%s13811_s1 + $0x1098] sm:$0xff]  }
 0x1ea   :  { %10026 = vmatprep.subr.bf16.mxu0 %v10841_v45  ;;  %7974 = vmatprep.mubr.bf16.mxu0 %v622_v43  ;;  %v10881_v45 = vld [vmem:[%s13811_s1 + $0xfb0] sm:$0xff]   ;;  %v10910_v43 = vld [vmem:[%s13811_s1 + $0x10a8] sm:$0xff]  }
 0x1eb   :  { %9961 = vmatpush3.bf16.msra.mxu1 %v10832_v46  ;;  %v10870_v46 = vld [vmem:[%s13811_s1 + $0x1148] sm:$0xff]   ;;  %v13021_v0 = vrot.slane %v336_v55, %v11250_v37  ;;  %v10917_v55 = vld [vmem:[%s13811_s1 + $0x10f8] sm:$0xff]  }
 0x1ec   :  { %9962 = vmatprep.subr.bf16.mxu1 %v10835_v51  ;;  %v10876_v51 = vld [vmem:[%s13811_s1 + $0xfe8] sm:$0xff]  }
 0x1ed   :  { %10027 = vmatpush3.bf16.msra.mxu0 %v10842_v58 }
 0x1ee   :  { %10028 = vmatprep.subr.bf16.mxu0 %v10845_v62 }
 0x1ef   :  { %9963 = vmatpush3.bf16.msra.mxu1 %v10836_v53  ;;  %v10878_v53 = vld [vmem:[%s13811_s1 + $0x1158] sm:$0xff]  }
 0x1f0   :  { %9964 = vmatprep.subr.bf16.mxu1 %v10839_v56  ;;  %v10880_v56 = vld [vmem:[%s13811_s1 + $0xff0] sm:$0xff]  }
 0x1f1   :  { %10029 = vmatpush3.bf16.msra.mxu0 %v10846_v63  ;;  %v10883_v63 = vld [vmem:[%s13811_s1 + $0x1120] sm:$0xff]  }
 0x1f2   :  { %10030 = vmatprep.subr.bf16.mxu0 %v10849_v5  ;;  %v10886_v5 = vld [vmem:[%s13811_s1 + $0x1168] sm:$0xff]  }
 0x1f3   :  { %9965 = vmatpush3.bf16.msra.mxu1 %v10840_v57 }
 0x1f4   :  { %9966 = vmatprep.subr.bf16.mxu1 %v10843_v60  ;;  %v10882_v60 = vld [vmem:[%s13811_s1 + $0x1160] sm:$0xff]  }
 0x1f5   :  { %v9664_v2 = vpop.f32.mrb[32].mxu1  ;;  %10031 = vmatpush3.bf16.msra.mxu0 %v10850_v8  ;;  %v352_v8 = vcombine.high %v13021_v0, %v13021_v0 }
 0x1f6   :  { %v9665_v3 = vpop.f32.mrb[33].mxu1  ;;  %10032 = vmatprep.subr.bf16.mxu0 %v10853_v14  ;;  %v619_v14 = vpack.c.bf16 %v12908_v9, %v12908_v9  ;;  %v10894_v9 = vld [vmem:[%s13811_s1 + $0x1088] sm:$0xff]  }
 0x1f7   :  { %v9666_v6 = vadd.f32 %v9665_v3, %v9664_v2  ;;  %v9667_v7 = vpop.f32.mrb[34].mxu1  ;;  %9967 = vmatpush3.bf16.msra.mxu1 %v10844_v61  ;;  %v9730_v21 = vpop.f32.mrb[32].mxu0  ;;  %v10884_v2 = vld [vmem:[%s13811_s1 + $0xff8] sm:$0xff]  }
 0x1f8   :  { %v9668_v10 = vpop.f32.mrb[35].mxu1  ;;  %9968 = vmatprep.subr.bf16.mxu1 %v10847_v1  ;;  %v9731_v22 = vpop.f32.mrb[33].mxu0  ;;  %v10885_v3 = vld [vmem:[%s13811_s1 + $0xfb8] sm:$0xff]  }
 0x1f9   :  { %v7297_v4 = vadd.f32 %v9666_v6, %v12811_v25  ;;  %v12939_v25 = vadd.f32 %v9731_v22, %v9730_v21  ;;  %v9733_v26 = vpop.f32.mrb[34].mxu0  ;;  %10033 = vmatpush3.bf16.msra.mxu0 %v10855_v15  ;;  %v10888_v6 = vld [vmem:[%s13811_s1 + $0x1128] sm:$0xff]   ;;  %v10889_v10 = vld [vmem:[%s13811_s1 + $0x10c0] sm:$0xff]   ;;  %v10891_v15 = vld [vmem:[%s13811_s1 + $0x1170] sm:$0xff]   ;;  %v624_v21 = vpack.c.bf16 %v352_v8, %v352_v8 }
 0x1fa   :  { %v9734_v20 = vpop.f32.mrb[35].mxu0  ;;  %10034 = vmatprep.subr.bf16.mxu0 %v10858_v24  ;;  %v10893_v22 = vld [vmem:[%s13811_s1 + $0x10c8] sm:$0xff]   ;;  %v10896_v24 = vld [vmem:[%s13811_s1 + $0x1138] sm:$0xff]  }
 0x1fb   :  { %9969 = vmatpush3.bf16.msra.mxu1 %v10848_v59  ;;  %v12924_v16 = vadd.f32 %v12826_v33, %v7297_v4  ;;  %v10864_v33 = vld [vmem:[%s13811_s1 + $0xfd0] sm:$0xff]   ;;  %v10890_v4 = vld [vmem:[%s13811_s1 + $0x1080] sm:$0xff]   ;;  %v33_v26 = vld [vmem:[%s13810_s0 + $0x88] sm:$0xff] }
 0x1fc   :  { %9970 = vmatprep.subr.bf16.mxu1 %v10851_v11  ;;  %v10898_v20 = vld [vmem:[%s13811_s1 + $0x1090] sm:$0xff]  }
 0x1fd   :  { %10035 = vmatpush3.bf16.msra.mxu0 %v10859_v28  ;;  %v360_v28 = vrot.slane %v33_v26, %v11250_v37 }
 0x1fe   :  { %10036 = vmatprep.subr.bf16.mxu0 %v10862_v31 }
 0x1ff   :  { %9971 = vmatpush3.bf16.msra.mxu1 %v10852_v12  ;;  %v625_v31 = vpack.c.bf16 %v360_v28, %v360_v28 }
 0x200   :  { %10000 = vmatprep.subr.bf16.mxu1 %v10856_v19  ;;  %v10892_v19 = vld [vmem:[%s13811_s1 + $0x1130] sm:$0xff]  }
 0x201   :  { %10037 = vmatpush3.bf16.msra.mxu0 %v10863_v32  ;;  %v10900_v32 = vld [vmem:[%s13811_s1 + $0x1200] sm:$0xff]  }
 0x202   :  { %7855 = vmatmul.mubr.bf16.vlgmr.msra.gmra.mrb[60].mxu1 %v615_v23  ;;  %10066 = vmatprep.subr.bf16.mxu0 %v10866_v39  ;;  %v10895_v23 = vld [vmem:[%s13811_s1 + $0x1178] sm:$0xff]   ;;  %v10904_v39 = vld [vmem:[%s13811_s1 + $0x1208] sm:$0xff]  }
 0x203   :  { %10001 = vmatpush3.bf16.msra.mxu1 %v10857_v13  ;;  %7934 = vmatprep.mubr.bf16.mxu1 %v620_v29  ;;  %v10899_v29 = vld [vmem:[%s13811_s1 + $0x1240] sm:$0xff]  }
 0x204   :  { %10002 = vmatprep.subr.bf16.mxu1 %v10860_v30  ;;  %7975 = vmatmul.mubr.bf16.vlgmr.msra.gmra.mrb[60].mxu0 %v621_v41  ;;  %v368_v30 = vcombine.high %v360_v28, %v360_v28  ;;  %v10909_v41 = vld [vmem:[%s13811_s1 + $0x10e8] sm:$0xff]  }
 0x205   :  { %10067 = vmatpush3.bf16.msra.mxu0 %v10867_v27  ;;  %v10907_v27 = vld [vmem:[%s13811_s1 + $0x1250] sm:$0xff]   ;;  %v10936_v28 = vld [vmem:[%s13811_s1 + $0x1348] sm:$0xff]  }
 0x206   :  { %10068 = vmatprep.subr.bf16.mxu0 %v10870_v46  ;;  %v10913_v46 = vld [vmem:[%s13811_s1 + $0x10f0] sm:$0xff]  }
 0x207   :  { %10003 = vmatpush3.bf16.msra.mxu1 %v10861_v18  ;;  %v10901_v18 = vld [vmem:[%s13811_s1 + $0x10d8] sm:$0xff]  }
 0x208   :  { %10004 = vmatprep.subr.bf16.mxu1 %v10864_v33  ;;  %v626_v33 = vpack.c.bf16 %v368_v30, %v368_v30  ;;  %v10939_v30 = vld [vmem:[%s13811_s1 + $0x11a0] sm:$0xff]  }
 0x209   :  { %10069 = vmatpush3.bf16.msra.mxu0 %v10871_v47  ;;  %v353_v47 = vcombine.high %v33_v26, %v33_v26  ;;  %v10935_v26 = vld [vmem:[%s13811_s1 + $0x1198] sm:$0xff]  }
 0x20a   :  { %10070 = vmatprep.subr.bf16.mxu0 %v10874_v35  ;;  %8054 = vmatprep.mubr.bf16.mxu0 %v626_v33  ;;  %v10943_v33 = vld [vmem:[%s13811_s1 + $0x11a8] sm:$0xff]  }
 0x20b   :  { %10005 = vmatpush3.bf16.msra.mxu1 %v10865_v38  ;;  %v10903_v38 = vld [vmem:[%s13811_s1 + $0x1248] sm:$0xff]  }
 0x20c   :  { %10006 = vmatprep.subr.bf16.mxu1 %v10868_v42  ;;  %v10908_v42 = vld [vmem:[%s13811_s1 + $0x1210] sm:$0xff]  }
 0x20d   :  { %10071 = vmatpush3.bf16.msra.mxu0 %v10875_v50  ;;  %v10914_v50 = vld [vmem:[%s13811_s1 + $0x10b0] sm:$0xff]  }
 0x20e   :  { %10072 = vmatprep.subr.bf16.mxu0 %v10878_v53  ;;  %v10915_v53 = vld [vmem:[%s13811_s1 + $0x1260] sm:$0xff]  }
 0x20f   :  { %10007 = vmatpush3.bf16.msra.mxu1 %v10869_v44  ;;  %v10911_v44 = vld [vmem:[%s13811_s1 + $0x1258] sm:$0xff]  }
 0x210   :  { %10008 = vmatprep.subr.bf16.mxu1 %v10872_v48 }
 0x211   :  { %10073 = vmatpush3.bf16.msra.mxu0 %v10879_v54 }
 0x212   :  { %10074 = vmatprep.subr.bf16.mxu0 %v10882_v60  ;;  %v10919_v60 = vld [vmem:[%s13811_s1 + $0x1268] sm:$0xff]  }
 0x213   :  { %10009 = vmatpush3.bf16.msra.mxu1 %v10873_v49  ;;  %v10912_v49 = vld [vmem:[%s13811_s1 + $0x1218] sm:$0xff]  }
 0x214   :  { %10010 = vmatprep.subr.bf16.mxu1 %v10876_v51 }
 0x215   :  { %v9708_v57 = vpop.f32.mrb[36].mxu1  ;;  %10075 = vmatpush3.bf16.msra.mxu0 %v10883_v63 }
 0x216   :  { %v9709_v58 = vpop.f32.mrb[37].mxu1  ;;  %10076 = vmatprep.subr.bf16.mxu0 %v10886_v5 }
 0x217   :  { %v9710_v61 = vadd.f32 %v9709_v58, %v9708_v57  ;;  %v9711_v62 = vpop.f32.mrb[38].mxu1  ;;  %10011 = vmatpush3.bf16.msra.mxu1 %v10877_v52  ;;  %v9774_v11 = vpop.f32.mrb[36].mxu0  ;;  %v10918_v58 = vld [vmem:[%s13811_s1 + $0x10b8] sm:$0xff]  }
 0x218   :  { %v9712_v1 = vpop.f32.mrb[39].mxu1  ;;  %10012 = vmatprep.subr.bf16.mxu1 %v10880_v56  ;;  %v9775_v12 = vpop.f32.mrb[37].mxu0  ;;  %v13134_v56 = vrot.slane %v353_v47, %v11250_v37  ;;  %v10922_v62 = vld [vmem:[%s13811_s1 + $0x11c0] sm:$0xff]   ;;  %v10950_v47 = vld [vmem:[%s13811_s1 + $0x11f8] sm:$0xff]  }
 0x219   :  { %v7377_v59 = vadd.f32 %v9710_v61, %v12924_v16  ;;  %v13052_v16 = vadd.f32 %v9775_v12, %v9774_v11  ;;  %v9777_v17 = vpop.f32.mrb[38].mxu0  ;;  %10077 = vmatpush3.bf16.msra.mxu0 %v10888_v6  ;;  %v10921_v1 = vld [vmem:[%s13811_s1 + $0x1228] sm:$0xff]   ;;  %v10924_v6 = vld [vmem:[%s13811_s1 + $0x1270] sm:$0xff]  }
 0x21a   :  { %v9778_v13 = vpop.f32.mrb[39].mxu0  ;;  %10078 = vmatprep.subr.bf16.mxu0 %v10891_v15  ;;  %v369_v63 = vcombine.high %v13134_v56, %v13134_v56  ;;  %v10927_v12 = vld [vmem:[%s13811_s1 + $0x1188] sm:$0xff]   ;;  %v10930_v15 = vld [vmem:[%s13811_s1 + $0x11d0] sm:$0xff]  }
 0x21b   :  { %10013 = vmatpush3.bf16.msra.mxu1 %v10881_v45  ;;  %v13037_v7 = vadd.f32 %v12939_v25, %v7377_v59  ;;  %v10897_v25 = vld [vmem:[%s13811_s1 + $0x10d0] sm:$0xff]   ;;  %v10916_v45 = vld [vmem:[%s13811_s1 + $0x1220] sm:$0xff]   ;;  %v623_v59 = vpack.c.bf16 %v13021_v0, %v13021_v0 }
 0x21c   :  { %10014 = vmatprep.subr.bf16.mxu1 %v10884_v2  ;;  %v628_v0 = vpack.c.bf16 %v369_v63, %v369_v63  ;;  %v34_v17 = vld [vmem:[%s13810_s0 + $0x90] sm:$0xff]  ;;  %v10932_v13 = vld [vmem:[%s13811_s1 + $0x1340] sm:$0xff]  }
 0x21d   :  { %10079 = vmatpush3.bf16.msra.mxu0 %v10892_v19  ;;  %v10931_v19 = vld [vmem:[%s13811_s1 + $0x1190] sm:$0xff]  }
 0x21e   :  { %10080 = vmatprep.subr.bf16.mxu0 %v10895_v23 }
 0x21f   :  { %10015 = vmatpush3.bf16.msra.mxu1 %v10885_v3  ;;  %v10923_v3 = vld [vmem:[%s13811_s1 + $0x1180] sm:$0xff]  }
 0x220   :  { %10044 = vmatprep.subr.bf16.mxu1 %v10889_v10  ;;  %v10926_v10 = vld [vmem:[%s13811_s1 + $0x11c8] sm:$0xff]  }
 0x221   :  { %10081 = vmatpush3.bf16.msra.mxu0 %v10896_v24  ;;  %v10933_v24 = vld [vmem:[%s13811_s1 + $0x1300] sm:$0xff]  }
 0x222   :  { %7935 = vmatmul.mubr.bf16.vlgmr.msra.gmra.mrb[64].mxu1 %v619_v14  ;;  %10110 = vmatprep.subr.bf16.mxu0 %v10899_v29  ;;  %v10928_v14 = vld [vmem:[%s13811_s1 + $0x1278] sm:$0xff]   ;;  %v10938_v29 = vld [vmem:[%s13811_s1 + $0x11e0] sm:$0xff]  }
 0x223   :  { %10045 = vmatpush3.bf16.msra.mxu1 %v10890_v4  ;;  %8014 = vmatprep.mubr.bf16.mxu1 %v624_v21  ;;  %v10925_v4 = vld [vmem:[%s13811_s1 + $0x1230] sm:$0xff]   ;;  %v377_v21 = vrot.slane %v34_v17, %v11250_v37 }
 0x224   :  { %10046 = vmatprep.subr.bf16.mxu1 %v10893_v22  ;;  %8055 = vmatmul.mubr.bf16.vlgmr.msra.gmra.mrb[64].mxu0 %v625_v31  ;;  %v10942_v31 = vld [vmem:[%s13811_s1 + $0x11e8] sm:$0xff]  }
 0x225   :  { %10111 = vmatpush3.bf16.msra.mxu0 %v10900_v32  ;;  %v385_v22 = vcombine.high %v377_v21, %v377_v21  ;;  %v629_v23 = vpack.c.bf16 %v377_v21, %v377_v21  ;;  %v10941_v32 = vld [vmem:[%s13811_s1 + $0x1310] sm:$0xff]   ;;  %v10971_v21 = vld [vmem:[%s13811_s1 + $0x12e0] sm:$0xff]  }
 0x226   :  { %10112 = vmatprep.subr.bf16.mxu0 %v10903_v38  ;;  %v10946_v38 = vld [vmem:[%s13811_s1 + $0x11f0] sm:$0xff]  }
 0x227   :  { %10047 = vmatpush3.bf16.msra.mxu1 %v10894_v9  ;;  %v10934_v9 = vld [vmem:[%s13811_s1 + $0x11d8] sm:$0xff]  }
 0x228   :  { %10048 = vmatprep.subr.bf16.mxu1 %v10897_v25  ;;  %v630_v25 = vpack.c.bf16 %v385_v22, %v385_v22  ;;  %v10972_v22 = vld [vmem:[%s13811_s1 + $0x12a0] sm:$0xff]  }
 0x229   :  { %10113 = vmatpush3.bf16.msra.mxu0 %v10904_v39 }
 0x22a   :  { %10114 = vmatprep.subr.bf16.mxu0 %v10907_v27  ;;  %8134 = vmatprep.mubr.bf16.mxu0 %v630_v25  ;;  %v10976_v25 = vld [vmem:[%s13811_s1 + $0x12a8] sm:$0xff]  }
 0x22b   :  { %10049 = vmatpush3.bf16.msra.mxu1 %v10898_v20  ;;  %v10937_v20 = vld [vmem:[%s13811_s1 + $0x1308] sm:$0xff]  }
 0x22c   :  { %10050 = vmatprep.subr.bf16.mxu1 %v10901_v18  ;;  %v10940_v18 = vld [vmem:[%s13811_s1 + $0x1350] sm:$0xff]  }
 0x22d   :  { %10115 = vmatpush3.bf16.msra.mxu0 %v10908_v42 }
 0x22e   :  { %10116 = vmatprep.subr.bf16.mxu0 %v10911_v44  ;;  %v10948_v44 = vld [vmem:[%s13811_s1 + $0x1360] sm:$0xff]  }
 0x22f   :  { %10051 = vmatpush3.bf16.msra.mxu1 %v10902_v34  ;;  %v10944_v34 = vld [vmem:[%s13811_s1 + $0x1358] sm:$0xff]  }
 0x230   :  { %10052 = vmatprep.subr.bf16.mxu1 %v10905_v36  ;;  %v370_v36 = vcombine.high %v34_v17, %v34_v17  ;;  %v10968_v17 = vld [vmem:[%s13811_s1 + $0x1298] sm:$0xff]  }
 0x231   :  { %10117 = vmatpush3.bf16.msra.mxu0 %v10912_v49 }
 0x232   :  { %10118 = vmatprep.subr.bf16.mxu0 %v10915_v53  ;;  %v10955_v53 = vld [vmem:[%s13811_s1 + $0x12c0] sm:$0xff]  }
 0x233   :  { %10053 = vmatpush3.bf16.msra.mxu1 %v10906_v40  ;;  %v10945_v40 = vld [vmem:[%s13811_s1 + $0x1318] sm:$0xff]  }
 0x234   :  { %10054 = vmatprep.subr.bf16.mxu1 %v10909_v41  ;;  %v10947_v41 = vld [vmem:[%s13811_s1 + $0x11b0] sm:$0xff]  }
 0x235   :  { %v9752_v48 = vpop.f32.mrb[40].mxu1  ;;  %10119 = vmatpush3.bf16.msra.mxu0 %v10916_v45  ;;  %v627_v45 = vpack.c.bf16 %v13134_v56, %v13134_v56 }
 0x236   :  { %v9753_v35 = vpop.f32.mrb[41].mxu1  ;;  %10120 = vmatprep.subr.bf16.mxu0 %v10919_v60 }
 0x237   :  { %v9754_v51 = vadd.f32 %v9753_v35, %v9752_v48  ;;  %v9755_v52 = vpop.f32.mrb[42].mxu1  ;;  %10055 = vmatpush3.bf16.msra.mxu1 %v10910_v43  ;;  %v9818_v2 = vpop.f32.mrb[40].mxu0  ;;  %v13247_v48 = vrot.slane %v370_v36, %v11250_v37  ;;  %v10949_v35 = vld [vmem:[%s13811_s1 + $0x1320] sm:$0xff]   ;;  %v10983_v36 = vld [vmem:[%s13811_s1 + $0x12f8] sm:$0xff]  }
 0x238   :  { %v9756_v54 = vpop.f32.mrb[43].mxu1  ;;  %10056 = vmatprep.subr.bf16.mxu1 %v10913_v46  ;;  %v9819_v5 = vpop.f32.mrb[41].mxu0 }
 0x239   :  { %v7457_v57 = vadd.f32 %v9754_v51, %v13037_v7  ;;  %v13165_v7 = vadd.f32 %v9819_v5, %v9818_v2  ;;  %v9821_v8 = vpop.f32.mrb[42].mxu0  ;;  %10121 = vmatpush3.bf16.msra.mxu0 %v10921_v1  ;;  %v10952_v51 = vld [vmem:[%s13811_s1 + $0x1368] sm:$0xff]   ;;  %v386_v54 = vcombine.high %v13247_v48, %v13247_v48  ;;  %v10961_v5 = vld [vmem:[%s13811_s1 + $0x1378] sm:$0xff]  }
 0x23a   :  { %v9822_v11 = vpop.f32.mrb[43].mxu0  ;;  %10122 = vmatprep.subr.bf16.mxu0 %v10924_v6  ;;  %v10959_v1 = vld [vmem:[%s13811_s1 + $0x12c8] sm:$0xff]   ;;  %v10963_v6 = vld [vmem:[%s13811_s1 + $0x12d0] sm:$0xff]   ;;  %v35_v8 = vld [vmem:[%s13810_s0 + $0x98] sm:$0xff] }
 0x23b   :  { %10057 = vmatpush3.bf16.msra.mxu1 %v10914_v50  ;;  %v13147_v61 = vadd.f32 %v13052_v16, %v7457_v57  ;;  %v10929_v16 = vld [vmem:[%s13811_s1 + $0x1238] sm:$0xff]   ;;  %v632_v56 = vpack.c.bf16 %v386_v54, %v386_v54  ;;  %v10965_v11 = vld [vmem:[%s13811_s1 + $0x1440] sm:$0xff]  }
 0x23c   :  { %10058 = vmatprep.subr.bf16.mxu1 %v10917_v55  ;;  %v10951_v50 = vld [vmem:[%s13811_s1 + $0x11b8] sm:$0xff]   ;;  %v10954_v55 = vld [vmem:[%s13811_s1 + $0x1328] sm:$0xff]  }
 0x23d   :  { %10123 = vmatpush3.bf16.msra.mxu0 %v10925_v4 }
 0x23e   :  { %10124 = vmatprep.subr.bf16.mxu0 %v10928_v14 }
 0x23f   :  { %10059 = vmatpush3.bf16.msra.mxu1 %v10918_v58  ;;  %v10956_v58 = vld [vmem:[%s13811_s1 + $0x1280] sm:$0xff]  }
 0x240   :  { %10088 = vmatprep.subr.bf16.mxu1 %v10922_v62 }
 0x241   :  { %10125 = vmatpush3.bf16.msra.mxu0 %v10929_v16 }
 0x242   :  { %8015 = vmatmul.mubr.bf16.vlgmr.msra.gmra.mrb[68].mxu1 %v623_v59  ;;  %10154 = vmatprep.subr.bf16.mxu0 %v10932_v13  ;;  %v10958_v59 = vld [vmem:[%s13811_s1 + $0x1330] sm:$0xff]   ;;  %v10970_v13 = vld [vmem:[%s13811_s1 + $0x1408] sm:$0xff]  }
 0x243   :  { %10089 = vmatpush3.bf16.msra.mxu1 %v10923_v3  ;;  %8094 = vmatprep.mubr.bf16.mxu1 %v628_v0  ;;  %v10960_v3 = vld [vmem:[%s13811_s1 + $0x1288] sm:$0xff]   ;;  %v394_v0 = vrot.slane %v35_v8, %v11250_v37 }
 0x244   :  { %10090 = vmatprep.subr.bf16.mxu1 %v10926_v10  ;;  %8135 = vmatmul.mubr.bf16.vlgmr.msra.gmra.mrb[68].mxu0 %v629_v23  ;;  %v10964_v10 = vld [vmem:[%s13811_s1 + $0x1290] sm:$0xff]   ;;  %v10975_v23 = vld [vmem:[%s13811_s1 + $0x12e8] sm:$0xff]  }
 0x245   :  { %10155 = vmatpush3.bf16.msra.mxu0 %v10933_v24  ;;  %v402_v4 = vcombine.high %v394_v0, %v394_v0  ;;  %v633_v14 = vpack.c.bf16 %v394_v0, %v394_v0  ;;  %v10974_v24 = vld [vmem:[%s13811_s1 + $0x1410] sm:$0xff]   ;;  %v11004_v0 = vld [vmem:[%s13811_s1 + $0x13e0] sm:$0xff]  }
 0x246   :  { %10156 = vmatprep.subr.bf16.mxu0 %v10936_v28  ;;  %v10979_v28 = vld [vmem:[%s13811_s1 + $0x12f0] sm:$0xff]  }
 0x247   :  { %10091 = vmatpush3.bf16.msra.mxu1 %v10927_v12  ;;  %v10967_v12 = vld [vmem:[%s13811_s1 + $0x12d8] sm:$0xff]   ;;  %v634_v16 = vpack.c.bf16 %v402_v4, %v402_v4  ;;  %v11005_v4 = vld [vmem:[%s13811_s1 + $0x13a0] sm:$0xff]  }
 0x248   :  { %10092 = vmatprep.subr.bf16.mxu1 %v10930_v15  ;;  %v10966_v15 = vld [vmem:[%s13811_s1 + $0x1400] sm:$0xff]  }
 0x249   :  { %10157 = vmatpush3.bf16.msra.mxu0 %v10937_v20  ;;  %8214 = vmatprep.mubr.bf16.mxu0 %v634_v16  ;;  %v11009_v16 = vld [vmem:[%s13811_s1 + $0x13a8] sm:$0xff]  }
 0x24a   :  { %10158 = vmatprep.subr.bf16.mxu0 %v10940_v18 }
 0x24b   :  { %10093 = vmatpush3.bf16.msra.mxu1 %v10931_v19  ;;  %v10969_v19 = vld [vmem:[%s13811_s1 + $0x1448] sm:$0xff]  }
 0x24c   :  { %10094 = vmatprep.subr.bf16.mxu1 %v10934_v9  ;;  %v10973_v9 = vld [vmem:[%s13811_s1 + $0x1450] sm:$0xff]  }
 0x24d   :  { %10159 = vmatpush3.bf16.msra.mxu0 %v10941_v32 }
 0x24e   :  { %10160 = vmatprep.subr.bf16.mxu0 %v10944_v34  ;;  %v10981_v34 = vld [vmem:[%s13811_s1 + $0x1460] sm:$0xff]  }
 0x24f   :  { %10095 = vmatpush3.bf16.msra.mxu1 %v10935_v26  ;;  %v10977_v26 = vld [vmem:[%s13811_s1 + $0x1458] sm:$0xff]  }
 0x250   :  { %10096 = vmatprep.subr.bf16.mxu1 %v10938_v29  ;;  %v387_v29 = vcombine.high %v35_v8, %v35_v8  ;;  %v11001_v8 = vld [vmem:[%s13811_s1 + $0x1398] sm:$0xff]  }
 0x251   :  { %10161 = vmatpush3.bf16.msra.mxu0 %v10945_v40 }
 0x252   :  { %10162 = vmatprep.subr.bf16.mxu0 %v10948_v44  ;;  %v10988_v44 = vld [vmem:[%s13811_s1 + $0x13c0] sm:$0xff]  }
 0x253   :  { %10097 = vmatpush3.bf16.msra.mxu1 %v10939_v30  ;;  %v10978_v30 = vld [vmem:[%s13811_s1 + $0x1418] sm:$0xff]  }
 0x254   :  { %10098 = vmatprep.subr.bf16.mxu1 %v10942_v31  ;;  %v10980_v31 = vld [vmem:[%s13811_s1 + $0x12b0] sm:$0xff]  }
 0x255   :  { %v9796_v39 = vpop.f32.mrb[44].mxu1  ;;  %10163 = vmatpush3.bf16.msra.mxu0 %v10949_v35  ;;  %v631_v35 = vpack.c.bf16 %v13247_v48, %v13247_v48 }
 0x256   :  { %v9797_v27 = vpop.f32.mrb[45].mxu1  ;;  %10164 = vmatprep.subr.bf16.mxu0 %v10952_v51 }
 0x257   :  { %v9798_v42 = vadd.f32 %v9797_v27, %v9796_v39  ;;  %v9799_v43 = vpop.f32.mrb[46].mxu1  ;;  %10099 = vmatpush3.bf16.msra.mxu1 %v10943_v33  ;;  %v9862_v57 = vpop.f32.mrb[44].mxu0  ;;  %v13360_v39 = vrot.slane %v387_v29, %v11250_v37  ;;  %v10982_v27 = vld [vmem:[%s13811_s1 + $0x1420] sm:$0xff]  }
 0x258   :  { %v9800_v46 = vpop.f32.mrb[47].mxu1  ;;  %10100 = vmatprep.subr.bf16.mxu1 %v10946_v38  ;;  %v9863_v60 = vpop.f32.mrb[45].mxu0 }
 0x259   :  { %v7537_v49 = vadd.f32 %v9798_v42, %v13147_v61  ;;  %v10957_v61 = vld [vmem:[%s13811_s1 + $0x1370] sm:$0xff]   ;;  %v13278_v62 = vadd.f32 %v9863_v60, %v9862_v57  ;;  %v9865_v63 = vpop.f32.mrb[46].mxu0  ;;  %10165 = vmatpush3.bf16.msra.mxu0 %v10954_v55  ;;  %v10985_v42 = vld [vmem:[%s13811_s1 + $0x1468] sm:$0xff]   ;;  %v403_v46 = vcombine.high %v13360_v39, %v13360_v39  ;;  %v10994_v60 = vld [vmem:[%s13811_s1 + $0x1478] sm:$0xff]  }
 0x25a   :  { %v9866_v2 = vpop.f32.mrb[47].mxu0  ;;  %10166 = vmatprep.subr.bf16.mxu0 %v10957_v61  ;;  %v10992_v55 = vld [vmem:[%s13811_s1 + $0x13c8] sm:$0xff]   ;;  %v10995_v61 = vld [vmem:[%s13811_s1 + $0x1438] sm:$0xff]   ;;  %v10997_v63 = vld [vmem:[%s13811_s1 + $0x1390] sm:$0xff]  }
 0x25b   :  { %10101 = vmatpush3.bf16.msra.mxu1 %v10947_v41  ;;  %v13260_v52 = vadd.f32 %v13165_v7, %v7537_v49  ;;  %v10962_v7 = vld [vmem:[%s13811_s1 + $0x1338] sm:$0xff]   ;;  %v636_v48 = vpack.c.bf16 %v403_v46, %v403_v46  ;;  %v10998_v2 = vld [vmem:[%s13811_s1 + $0x1540] sm:$0xff]  }
 0x25c   :  { %10102 = vmatprep.subr.bf16.mxu1 %v10950_v47  ;;  %v10984_v41 = vld [vmem:[%s13811_s1 + $0x12b8] sm:$0xff]   ;;  %v10987_v47 = vld [vmem:[%s13811_s1 + $0x1428] sm:$0xff]  }
 0x25d   :  { %10167 = vmatpush3.bf16.msra.mxu0 %v10958_v59 }
 0x25e   :  { %10168 = vmatprep.subr.bf16.mxu0 %v10961_v5 }
 0x25f   :  { %10103 = vmatpush3.bf16.msra.mxu1 %v10951_v50  ;;  %v10989_v50 = vld [vmem:[%s13811_s1 + $0x1380] sm:$0xff]  }
 0x260   :  { %10132 = vmatprep.subr.bf16.mxu1 %v10955_v53 }
 0x261   :  { %10169 = vmatpush3.bf16.msra.mxu0 %v10962_v7 }
 0x262   :  { %8095 = vmatmul.mubr.bf16.vlgmr.msra.gmra.mrb[72].mxu1 %v627_v45  ;;  %10198 = vmatprep.subr.bf16.mxu0 %v10965_v11  ;;  %v10991_v45 = vld [vmem:[%s13811_s1 + $0x1430] sm:$0xff]   ;;  %v11003_v11 = vld [vmem:[%s13811_s1 + $0x1508] sm:$0xff]  }
 0x263   :  { %10133 = vmatpush3.bf16.msra.mxu1 %v10956_v58  ;;  %8174 = vmatprep.mubr.bf16.mxu1 %v632_v56  ;;  %v10993_v58 = vld [vmem:[%s13811_s1 + $0x1388] sm:$0xff]  }
 0x264   :  { %10134 = vmatprep.subr.bf16.mxu1 %v10959_v1  ;;  %8215 = vmatmul.mubr.bf16.vlgmr.msra.gmra.mrb[72].mxu0 %v633_v14  ;;  %v36_v1 = vld [vmem:[%s13810_s0 + $0xa0] sm:$0xff]  ;;  %v11008_v14 = vld [vmem:[%s13811_s1 + $0x13e8] sm:$0xff]  }
 0x265   :  { %10199 = vmatpush3.bf16.msra.mxu0 %v10966_v15  ;;  %v411_v56 = vrot.slane %v36_v1, %v11250_v37  ;;  %v11007_v15 = vld [vmem:[%s13811_s1 + $0x1510] sm:$0xff]  }
 0x266   :  { %10200 = vmatprep.subr.bf16.mxu0 %v10969_v19 }
 0x267   :  { %10135 = vmatpush3.bf16.msra.mxu1 %v10960_v3  ;;  %v419_v59 = vcombine.high %v411_v56, %v411_v56  ;;  %v11000_v3 = vld [vmem:[%s13811_s1 + $0x13d8] sm:$0xff]   ;;  %v637_v5 = vpack.c.bf16 %v411_v56, %v411_v56  ;;  %v11037_v56 = vld [vmem:[%s13811_s1 + $0x14e0] sm:$0xff]  }
 0x268   :  { %10136 = vmatprep.subr.bf16.mxu1 %v10963_v6  ;;  %v10999_v6 = vld [vmem:[%s13811_s1 + $0x1500] sm:$0xff]  }
 0x269   :  { %10201 = vmatpush3.bf16.msra.mxu0 %v10970_v13  ;;  %v638_v7 = vpack.c.bf16 %v419_v59, %v419_v59  ;;  %v404_v13 = vcombine.high %v36_v1, %v36_v1  ;;  %v11035_v1 = vld [vmem:[%s13811_s1 + $0x1648] sm:$0xff]   ;;  %v11038_v59 = vld [vmem:[%s13811_s1 + $0x14a0] sm:$0xff]  }
 0x26a   :  { %10202 = vmatprep.subr.bf16.mxu0 %v10973_v9  ;;  %v11011_v9 = vld [vmem:[%s13811_s1 + $0x1518] sm:$0xff]  }
 0x26b   :  { %10137 = vmatpush3.bf16.msra.mxu1 %v10964_v10  ;;  %v11002_v10 = vld [vmem:[%s13811_s1 + $0x1548] sm:$0xff]   ;;  %8294 = vmatprep.mubr.bf16.mxu0 %v638_v7 }
 0x26c   :  { %10138 = vmatprep.subr.bf16.mxu1 %v10967_v12  ;;  %v11006_v12 = vld [vmem:[%s13811_s1 + $0x1550] sm:$0xff]   ;;  %v11042_v7 = vld [vmem:[%s13811_s1 + $0x14a8] sm:$0xff]  }
 0x26d   :  { %10203 = vmatpush3.bf16.msra.mxu0 %v10974_v24 }
 0x26e   :  { %10204 = vmatprep.subr.bf16.mxu0 %v10977_v26 }
 0x26f   :  { %10139 = vmatpush3.bf16.msra.mxu1 %v10968_v17  ;;  %v11010_v17 = vld [vmem:[%s13811_s1 + $0x1558] sm:$0xff]  }
 0x270   :  { %10140 = vmatprep.subr.bf16.mxu1 %v10971_v21  ;;  %v11012_v21 = vld [vmem:[%s13811_s1 + $0x13f0] sm:$0xff]  }
 0x271   :  { %10205 = vmatpush3.bf16.msra.mxu0 %v10978_v30  ;;  %v13474_v30 = vrot.slane %v404_v13, %v11250_v37  ;;  %v11049_v13 = vld [vmem:[%s13811_s1 + $0x14f8] sm:$0xff]  }
 0x272   :  { %10206 = vmatprep.subr.bf16.mxu0 %v10981_v34  ;;  %v11021_v34 = vld [vmem:[%s13811_s1 + $0x14c0] sm:$0xff]  }
 0x273   :  { %10141 = vmatpush3.bf16.msra.mxu1 %v10972_v22 }
 0x274   :  { %10142 = vmatprep.subr.bf16.mxu1 %v10975_v23 }
 0x275   :  { %v9840_v20 = vpop.f32.mrb[48].mxu1  ;;  %10207 = vmatpush3.bf16.msra.mxu0 %v10982_v27 }
 0x276   :  { %v9841_v18 = vpop.f32.mrb[49].mxu1  ;;  %10208 = vmatprep.subr.bf16.mxu0 %v10985_v42 }
 0x277   :  { %v9842_v32 = vadd.f32 %v9841_v18, %v9840_v20  ;;  %v9843_v33 = vpop.f32.mrb[50].mxu1  ;;  %10143 = vmatpush3.bf16.msra.mxu1 %v10976_v25  ;;  %v9906_v49 = vpop.f32.mrb[48].mxu0  ;;  %v11013_v25 = vld [vmem:[%s13811_s1 + $0x13b0] sm:$0xff]   ;;  %v11016_v20 = vld [vmem:[%s13811_s1 + $0x13f8] sm:$0xff]   ;;  %v11015_v18 = vld [vmem:[%s13811_s1 + $0x1520] sm:$0xff]  }
 0x278   :  { %v9844_v38 = vpop.f32.mrb[51].mxu1  ;;  %10144 = vmatprep.subr.bf16.mxu1 %v10979_v28  ;;  %v9907_v51 = vpop.f32.mrb[49].mxu0  ;;  %v11014_v28 = vld [vmem:[%s13811_s1 + $0x1560] sm:$0xff]   ;;  %v11018_v33 = vld [vmem:[%s13811_s1 + $0x1568] sm:$0xff]  }
 0x279   :  { %v7617_v40 = vadd.f32 %v9842_v32, %v13260_v52  ;;  %v10990_v52 = vld [vmem:[%s13811_s1 + $0x1470] sm:$0xff]   ;;  %v13391_v53 = vadd.f32 %v9907_v51, %v9906_v49  ;;  %v9909_v54 = vpop.f32.mrb[50].mxu0  ;;  %10209 = vmatpush3.bf16.msra.mxu0 %v10987_v47  ;;  %v420_v38 = vcombine.high %v13474_v30, %v13474_v30  ;;  %v11027_v51 = vld [vmem:[%s13811_s1 + $0x1578] sm:$0xff]  }
 0x27a   :  { %v9910_v57 = vpop.f32.mrb[51].mxu0  ;;  %10210 = vmatprep.subr.bf16.mxu0 %v10990_v52  ;;  %v11029_v52 = vld [vmem:[%s13811_s1 + $0x14d0] sm:$0xff]   ;;  %v37_v54 = vld [vmem:[%s13810_s0 + $0xa8] sm:$0xff] }
 0x27b   :  { %10145 = vmatpush3.bf16.msra.mxu1 %v10980_v31  ;;  %v13373_v43 = vadd.f32 %v13278_v62, %v7617_v40  ;;  %v10996_v62 = vld [vmem:[%s13811_s1 + $0x13d0] sm:$0xff]   ;;  %v11017_v31 = vld [vmem:[%s13811_s1 + $0x13b8] sm:$0xff]   ;;  %v635_v40 = vpack.c.bf16 %v13360_v39, %v13360_v39  ;;  %v11025_v39 = vld [vmem:[%s13811_s1 + $0x14c8] sm:$0xff]   ;;  %v640_v47 = vpack.c.bf16 %v420_v38, %v420_v38 }
 0x27c   :  { %10146 = vmatprep.subr.bf16.mxu1 %v10983_v36  ;;  %v11020_v36 = vld [vmem:[%s13811_s1 + $0x1528] sm:$0xff]   ;;  %v11031_v57 = vld [vmem:[%s13811_s1 + $0x1640] sm:$0xff]  }
 0x27d   :  { %10211 = vmatpush3.bf16.msra.mxu0 %v10991_v45 }
 0x27e   :  { %10212 = vmatprep.subr.bf16.mxu0 %v10994_v60 }
 0x27f   :  { %10147 = vmatpush3.bf16.msra.mxu1 %v10984_v41  ;;  %v11022_v41 = vld [vmem:[%s13811_s1 + $0x1480] sm:$0xff]  }
 0x280   :  { %10176 = vmatprep.subr.bf16.mxu1 %v10988_v44 }
 0x281   :  { %10213 = vmatpush3.bf16.msra.mxu0 %v10995_v61  ;;  %v11032_v61 = vld [vmem:[%s13811_s1 + $0x1600] sm:$0xff]  }
 0x282   :  { %8175 = vmatmul.mubr.bf16.vlgmr.msra.gmra.mrb[76].mxu1 %v631_v35  ;;  %10242 = vmatprep.subr.bf16.mxu0 %v10998_v2  ;;  %v11024_v35 = vld [vmem:[%s13811_s1 + $0x1530] sm:$0xff]   ;;  %v11036_v2 = vld [vmem:[%s13811_s1 + $0x1608] sm:$0xff]  }
 0x283   :  { %10177 = vmatpush3.bf16.msra.mxu1 %v10989_v50  ;;  %8254 = vmatprep.mubr.bf16.mxu1 %v636_v48  ;;  %v11026_v50 = vld [vmem:[%s13811_s1 + $0x1488] sm:$0xff]   ;;  %v428_v48 = vrot.slane %v37_v54, %v11250_v37 }
 0x284   :  { %10178 = vmatprep.subr.bf16.mxu1 %v10992_v55  ;;  %8295 = vmatmul.mubr.bf16.vlgmr.msra.gmra.mrb[76].mxu0 %v637_v5  ;;  %v11030_v55 = vld [vmem:[%s13811_s1 + $0x1490] sm:$0xff]   ;;  %v11041_v5 = vld [vmem:[%s13811_s1 + $0x14e8] sm:$0xff]  }
 0x285   :  { %10243 = vmatpush3.bf16.msra.mxu0 %v10999_v6  ;;  %v436_v45 = vcombine.high %v428_v48, %v428_v48  ;;  %v641_v60 = vpack.c.bf16 %v428_v48, %v428_v48  ;;  %v11040_v6 = vld [vmem:[%s13811_s1 + $0x1610] sm:$0xff]   ;;  %v11067_v48 = vld [vmem:[%s13811_s1 + $0x1708] sm:$0xff]  }
 0x286   :  { %10244 = vmatprep.subr.bf16.mxu0 %v11002_v10 }
 0x287   :  { %10179 = vmatpush3.bf16.msra.mxu1 %v10993_v58  ;;  %v11033_v58 = vld [vmem:[%s13811_s1 + $0x14d8] sm:$0xff]  }
 0x288   :  { %10180 = vmatprep.subr.bf16.mxu1 %v10996_v62  ;;  %v642_v62 = vpack.c.bf16 %v436_v45, %v436_v45  ;;  %v11071_v45 = vld [vmem:[%s13811_s1 + $0x15e8] sm:$0xff]  }
 0x289   :  { %10245 = vmatpush3.bf16.msra.mxu0 %v11003_v11  ;;  %v421_v11 = vcombine.high %v37_v54, %v37_v54  ;;  %v11135_v54 = vmov 0  }
 0x28a   :  { %10246 = vmatprep.subr.bf16.mxu0 %v11006_v12  ;;  %8374 = vmatprep.mubr.bf16.mxu0 %v642_v62  ;;  %v11044_v12 = vld [vmem:[%s13811_s1 + $0x1618] sm:$0xff]  }
 0x28b   :  { %10181 = vmatpush3.bf16.msra.mxu1 %v10997_v63  ;;  %v11034_v63 = vld [vmem:[%s13811_s1 + $0x1498] sm:$0xff]  }
 0x28c   :  { %10182 = vmatprep.subr.bf16.mxu1 %v11000_v3  ;;  %v11039_v3 = vld [vmem:[%s13811_s1 + $0x1650] sm:$0xff]  }
 0x28d   :  { %10247 = vmatpush3.bf16.msra.mxu0 %v11007_v15 }
 0x28e   :  { %10248 = vmatprep.subr.bf16.mxu0 %v11010_v17 }
 0x28f   :  { %10183 = vmatpush3.bf16.msra.mxu1 %v11001_v8  ;;  %v11043_v8 = vld [vmem:[%s13811_s1 + $0x1658] sm:$0xff]  }
 0x290   :  { %10184 = vmatprep.subr.bf16.mxu1 %v11004_v0  ;;  %v11045_v0 = vld [vmem:[%s13811_s1 + $0x14f0] sm:$0xff]  }
 0x291   :  { %10249 = vmatpush3.bf16.msra.mxu0 %v11011_v9  ;;  %v11048_v9 = vld [vmem:[%s13811_s1 + $0x1620] sm:$0xff]  }
 0x292   :  { %10250 = vmatprep.subr.bf16.mxu0 %v11014_v28 }
 0x293   :  { %10185 = vmatpush3.bf16.msra.mxu1 %v11005_v4 }
 0x294   :  { %10186 = vmatprep.subr.bf16.mxu1 %v11008_v14 }
 0x295   :  { %v9884_v19 = vpop.f32.mrb[52].mxu1  ;;  %10251 = vmatpush3.bf16.msra.mxu0 %v11015_v18 }
 0x296   :  { %v9885_v22 = vpop.f32.mrb[53].mxu1  ;;  %10252 = vmatprep.subr.bf16.mxu0 %v11018_v33  ;;  %v11056_v33 = vld [vmem:[%s13811_s1 + $0x1670] sm:$0xff]  }
 0x297   :  { %v9886_v23 = vadd.f32 %v9885_v22, %v9884_v19  ;;  %v9887_v24 = vpop.f32.mrb[54].mxu1  ;;  %10187 = vmatpush3.bf16.msra.mxu1 %v11009_v16  ;;  %v9950_v27 = vpop.f32.mrb[52].mxu0  ;;  %v11046_v16 = vld [vmem:[%s13811_s1 + $0x14b0] sm:$0xff]   ;;  %v11047_v19 = vld [vmem:[%s13811_s1 + $0x1660] sm:$0xff]   ;;  %v13587_v22 = vrot.slane %v421_v11, %v11250_v37 }
 0x298   :  { %v9888_v26 = vpop.f32.mrb[55].mxu1  ;;  %10188 = vmatprep.subr.bf16.mxu1 %v11012_v21  ;;  %v9951_v42 = vpop.f32.mrb[53].mxu0 }
 0x299   :  { %v7697_v29 = vadd.f32 %v9886_v23, %v13373_v43  ;;  %v11023_v43 = vld [vmem:[%s13811_s1 + $0x1570] sm:$0xff]   ;;  %v13504_v44 = vadd.f32 %v9951_v42, %v9950_v27  ;;  %v9953_v46 = vpop.f32.mrb[54].mxu0  ;;  %10253 = vmatpush3.bf16.msra.mxu0 %v11020_v36  ;;  %v11050_v23 = vld [vmem:[%s13811_s1 + $0x14b8] sm:$0xff]   ;;  %v11054_v26 = vld [vmem:[%s13811_s1 + $0x15c0] sm:$0xff]   ;;  %v437_v28 = vcombine.high %v13587_v22, %v13587_v22 }
 0x29a   :  { %v9954_v49 = vpop.f32.mrb[55].mxu0  ;;  %10254 = vmatprep.subr.bf16.mxu0 %v11023_v43  ;;  %v11057_v27 = vld [vmem:[%s13811_s1 + $0x1630] sm:$0xff]   ;;  %v11060_v42 = vld [vmem:[%s13811_s1 + $0x1678] sm:$0xff]  }
 0x29b   :  { %10189 = vmatpush3.bf16.msra.mxu1 %v11013_v25  ;;  %v13483_v32 = vadd.f32 %v13391_v53, %v7697_v29  ;;  %v11028_v53 = vld [vmem:[%s13811_s1 + $0x1538] sm:$0xff]   ;;  %v11051_v25 = vld [vmem:[%s13811_s1 + $0x1668] sm:$0xff]   ;;  %v644_v36 = vpack.c.bf16 %v437_v28, %v437_v28  ;;  %v11062_v43 = vld [vmem:[%s13811_s1 + $0x15d0] sm:$0xff]  }
 0x29c   :  { %10190 = vmatprep.subr.bf16.mxu1 %v11016_v20  ;;  %v11053_v29 = vld [vmem:[%s13811_s1 + $0x1628] sm:$0xff]   ;;  %v639_v20 = vpack.c.bf16 %v13474_v30, %v13474_v30  ;;  %v38_v46 = vld [vmem:[%s13810_s0 + $0xb0] sm:$0xff]  ;;  %v11065_v49 = vld [vmem:[%s13811_s1 + $0x15d8] sm:$0xff]  }
 0x29d   :  { %10255 = vmatpush3.bf16.msra.mxu0 %v11024_v35  ;;  %v11058_v30 = vld [vmem:[%s13811_s1 + $0x15c8] sm:$0xff]   ;;  %v11088_v28 = vld [vmem:[%s13811_s1 + $0x1690] sm:$0xff]  }
 0x29e   :  { %10256 = vmatprep.subr.bf16.mxu0 %v11027_v51  ;;  %v11064_v51 = vld [vmem:[%s13811_s1 + $0x1700] sm:$0xff]  }
 0x29f   :  { %10191 = vmatpush3.bf16.msra.mxu1 %v11017_v31  ;;  %v11055_v31 = vld [vmem:[%s13811_s1 + $0x1580] sm:$0xff]  }
 0x2a0   :  { %10220 = vmatprep.subr.bf16.mxu1 %v11021_v34 }
 0x2a1   :  { %10257 = vmatpush3.bf16.msra.mxu0 %v11028_v53  ;;  %v11066_v53 = vld [vmem:[%s13811_s1 + $0x1598] sm:$0xff]  }
 0x2a2   :  { %8255 = vmatmul.mubr.bf16.vlgmr.msra.gmra.mrb[80].mxu1 %v635_v40  ;;  %10286 = vmatprep.subr.bf16.mxu0 %v11031_v57  ;;  %v11069_v57 = vld [vmem:[%s13811_s1 + $0x15a0] sm:$0xff]  }
 0x2a3   :  { %10221 = vmatpush3.bf16.msra.mxu1 %v11022_v41  ;;  %8334 = vmatprep.mubr.bf16.mxu1 %v640_v47  ;;  %v11059_v41 = vld [vmem:[%s13811_s1 + $0x1588] sm:$0xff]   ;;  %v445_v47 = vrot.slane %v38_v46, %v11250_v37 }
 0x2a4   :  { %10222 = vmatprep.subr.bf16.mxu1 %v11025_v39  ;;  %8375 = vmatmul.mubr.bf16.vlgmr.msra.gmra.mrb[80].mxu0 %v641_v60  ;;  %v11063_v39 = vld [vmem:[%s13811_s1 + $0x1590] sm:$0xff]   ;;  %v11072_v60 = vld [vmem:[%s13811_s1 + $0x15a8] sm:$0xff]  }
 0x2a5   :  { %10287 = vmatpush3.bf16.msra.mxu0 %v11032_v61  ;;  %v453_v35 = vcombine.high %v445_v47, %v445_v47  ;;  %v11074_v61 = vld [vmem:[%s13811_s1 + $0x15f0] sm:$0xff]  }
 0x2a6   :  { %10288 = vmatprep.subr.bf16.mxu0 %v11035_v1 }
 0x2a7   :  { %10223 = vmatpush3.bf16.msra.mxu1 %v11026_v50  ;;  %v645_v50 = vpack.c.bf16 %v445_v47, %v445_v47 }
 0x2a8   :  { %10224 = vmatprep.subr.bf16.mxu1 %v11029_v52  ;;  %v646_v52 = vpack.c.bf16 %v453_v35, %v453_v35 }
 0x2a9   :  { %10289 = vmatpush3.bf16.msra.mxu0 %v11036_v2 }
 0x2aa   :  { %10290 = vmatprep.subr.bf16.mxu0 %v11039_v3  ;;  %8454 = vmatprep.mubr.bf16.mxu0 %v646_v52  ;;  %v11075_v3 = vld [vmem:[%s13811_s1 + $0x15b0] sm:$0xff]  }
 0x2ab   :  { %10225 = vmatpush3.bf16.msra.mxu1 %v11030_v55  ;;  %v11068_v55 = vld [vmem:[%s13811_s1 + $0x15e0] sm:$0xff]  }
 0x2ac   :  { %10226 = vmatprep.subr.bf16.mxu1 %v11033_v58  ;;  %v11070_v58 = vld [vmem:[%s13811_s1 + $0x1710] sm:$0xff]  }
 0x2ad   :  { %10291 = vmatpush3.bf16.msra.mxu0 %v11040_v6  ;;  %v11077_v6 = vld [vmem:[%s13811_s1 + $0x15f8] sm:$0xff]  }
 0x2ae   :  { %10292 = vmatprep.subr.bf16.mxu0 %v11043_v8 }
 0x2af   :  { %10227 = vmatpush3.bf16.msra.mxu1 %v11034_v63  ;;  %v438_v63 = vcombine.high %v38_v46, %v38_v46 }
 0x2b0   :  { %10228 = vmatprep.subr.bf16.mxu1 %v11037_v56  ;;  %v11073_v56 = vld [vmem:[%s13811_s1 + $0x1718] sm:$0xff]  }
 0x2b1   :  { %10293 = vmatpush3.bf16.msra.mxu0 %v11044_v12  ;;  %v13689_v8 = vrot.slane %v438_v63, %v11250_v37  ;;  %v11081_v37 = vld [vmem:[%s13811_s1 + $0x16c0] sm:$0xff]   ;;  %v11080_v12 = vld [vmem:[%s13811_s1 + $0x1728] sm:$0xff]  }
 0x2b2   :  { %10294 = vmatprep.subr.bf16.mxu0 %v11047_v19  ;;  %v11084_v19 = vld [vmem:[%s13811_s1 + $0x16c8] sm:$0xff]  }
 0x2b3   :  { %10229 = vmatpush3.bf16.msra.mxu1 %v11038_v59 }
 0x2b4   :  { %10230 = vmatprep.subr.bf16.mxu1 %v11041_v5 }
 0x2b5   :  { %v9928_v10 = vpop.f32.mrb[56].mxu1  ;;  %10295 = vmatpush3.bf16.msra.mxu0 %v11048_v9 }
 0x2b6   :  { %v9929_v4 = vpop.f32.mrb[57].mxu1  ;;  %10296 = vmatprep.subr.bf16.mxu0 %v11051_v25  ;;  %v11087_v25 = vld [vmem:[%s13811_s1 + $0x16d0] sm:$0xff]  }
 0x2b7   :  { %v9930_v14 = vadd.f32 %v9929_v4, %v9928_v10  ;;  %v9931_v15 = vpop.f32.mrb[58].mxu1  ;;  %10231 = vmatpush3.bf16.msra.mxu1 %v11042_v7  ;;  %v9994_v18 = vpop.f32.mrb[56].mxu0  ;;  %v11076_v10 = vld [vmem:[%s13811_s1 + $0x1720] sm:$0xff]   ;;  %v454_v4 = vcombine.high %v13689_v8, %v13689_v8 }
 0x2b8   :  { %v9932_v17 = vpop.f32.mrb[59].mxu1  ;;  %10232 = vmatprep.subr.bf16.mxu1 %v11045_v0  ;;  %v11078_v0 = vld [vmem:[%s13811_s1 + $0x15b8] sm:$0xff]  }
 0x2b9   :  { %v7777_v21 = vadd.f32 %v9930_v14, %v13483_v32  ;;  %v9995_v32 = vpop.f32.mrb[57].mxu0  ;;  %10297 = vmatpush3.bf16.msra.mxu0 %v11053_v29  ;;  %v643_v14 = vpack.c.bf16 %v13587_v22, %v13587_v22  ;;  %v648_v9 = vpack.c.bf16 %v454_v4, %v454_v4  ;;  %v11090_v29 = vld [vmem:[%s13811_s1 + $0x16d8] sm:$0xff]  }
 0x2ba   :  { %v13617_v34 = vadd.f32 %v9995_v32, %v9994_v18  ;;  %v9997_v38 = vpop.f32.mrb[58].mxu0  ;;  %10298 = vmatprep.subr.bf16.mxu0 %v11056_v33  ;;  %v11091_v18 = vld [vmem:[%s13811_s1 + $0x1698] sm:$0xff]   ;;  %v11092_v32 = vld [vmem:[%s13811_s1 + $0x1748] sm:$0xff]   ;;  %v11094_v33 = vld [vmem:[%s13811_s1 + $0x16a0] sm:$0xff]  }
 0x2bb   :  { %10233 = vmatpush3.bf16.msra.mxu1 %v11046_v16  ;;  %v13596_v24 = vadd.f32 %v13504_v44, %v7777_v21  ;;  %v9998_v40 = vpop.f32.mrb[59].mxu0  ;;  %v11061_v44 = vld [vmem:[%s13811_s1 + $0x1638] sm:$0xff]   ;;  %v11082_v16 = vld [vmem:[%s13811_s1 + $0x1680] sm:$0xff]  }
 0x2bc   :  { %10234 = vmatprep.subr.bf16.mxu1 %v11049_v13 }
 0x2bd   :  { %10299 = vmatpush3.bf16.msra.mxu0 %v11057_v27 }
 0x2be   :  { %10300 = vmatprep.subr.bf16.mxu0 %v11060_v42 }
 0x2bf   :  { %10235 = vmatpush3.bf16.msra.mxu1 %v11050_v23  ;;  %v11083_v23 = vld [vmem:[%s13811_s1 + $0x1730] sm:$0xff]  }
 0x2c0   :  { %10264 = vmatprep.subr.bf16.mxu1 %v11054_v26  ;;  %v11086_v26 = vld [vmem:[%s13811_s1 + $0x1738] sm:$0xff]  }
 0x2c1   :  { %10301 = vmatpush3.bf16.msra.mxu0 %v11061_v44 }
 0x2c2   :  { %8335 = vmatmul.mubr.bf16.vlgmr.msra.gmra.mrb[84].mxu1 %v639_v20  ;;  %8502 = vmatprep.subr.bf16.mxu0 %v11135_v54  ;;  %v11089_v20 = vld [vmem:[%s13811_s1 + $0x1740] sm:$0xff]  }
 0x2c3   :  { %10265 = vmatpush3.bf16.msra.mxu1 %v11055_v31  ;;  %8414 = vmatprep.mubr.bf16.mxu1 %v644_v36  ;;  %v11093_v31 = vld [vmem:[%s13811_s1 + $0x16e0] sm:$0xff]  }
 0x2c4   :  { %10266 = vmatprep.subr.bf16.mxu1 %v11058_v30  ;;  %8455 = vmatmul.mubr.bf16.vlgmr.msra.gmra.mrb[84].mxu0 %v645_v50 }
 0x2c5   :  { %8503 = vmatpush1.bf16.msra.mxu0 %v11064_v51 }
 0x2c6   :  { %8504 = vmatprep.subr.bf16.mxu0 %v11135_v54 }
 0x2c7   :  { %10267 = vmatpush3.bf16.msra.mxu1 %v11059_v41 }
 0x2c8   :  { %10268 = vmatprep.subr.bf16.mxu1 %v11062_v43 }
 0x2c9   :  { %8505 = vmatpush1.bf16.msra.mxu0 %v11067_v48 }
 0x2ca   :  { %8506 = vmatprep.subr.bf16.mxu0 %v11135_v54 }
 0x2cb   :  { %10269 = vmatpush3.bf16.msra.mxu1 %v11063_v39 }
 0x2cc   :  { %10270 = vmatprep.subr.bf16.mxu1 %v11065_v49 }
 0x2cd   :  { %8507 = vmatpush1.bf16.msra.mxu0 %v11070_v58 }
 0x2ce   :  { %8508 = vmatprep.subr.bf16.mxu0 %v11135_v54 }
 0x2cf   :  { %10271 = vmatpush3.bf16.msra.mxu1 %v11066_v53 }
 0x2d0   :  { %10272 = vmatprep.subr.bf16.mxu1 %v11068_v55 }
 0x2d1   :  { %8509 = vmatpush1.bf16.msra.mxu0 %v11073_v56 }
 0x2d2   :  { %8510 = vmatprep.subr.bf16.mxu0 %v11135_v54 }
 0x2d3   :  { %10273 = vmatpush3.bf16.msra.mxu1 %v11069_v57 }
 0x2d4   :  { %10274 = vmatprep.subr.bf16.mxu1 %v11071_v45 }
 0x2d5   :  { %v9972_v62 = vpop.f32.mrb[60].mxu1  ;;  %8511 = vmatpush1.bf16.msra.mxu0 %v11076_v10 }
 0x2d6   :  { %v9973_v1 = vpop.f32.mrb[61].mxu1  ;;  %8512 = vmatprep.subr.bf16.mxu0 %v11135_v54 }
 0x2d7   :  { %v9974_v2 = vadd.f32 %v9973_v1, %v9972_v62  ;;  %v9975_v59 = vpop.f32.mrb[62].mxu1  ;;  %10275 = vmatpush3.bf16.msra.mxu1 %v11072_v60  ;;  %v10038_v15 = vpop.f32.mrb[60].mxu0 }
 0x2d8   :  { %v9976_v5 = vpop.f32.mrb[63].mxu1  ;;  %10276 = vmatprep.subr.bf16.mxu1 %v11074_v61  ;;  %v10039_v17 = vpop.f32.mrb[61].mxu0 }
 0x2d9   :  { %v7857_v7 = vadd.f32 %v9974_v2, %v13596_v24  ;;  %v13718_v21 = vadd.f32 %v10039_v17, %v10038_v15  ;;  %v10041_v13 = vpop.f32.mrb[62].mxu0  ;;  %8513 = vmatpush1.bf16.msra.mxu0 %v11080_v12  ;;  %v11085_v24 = vld [vmem:[%s13811_s1 + $0x1688] sm:$0xff]  }
 0x2da   :  { %v10042_v22 = vpop.f32.mrb[63].mxu0  ;;  %8514 = vmatprep.subr.bf16.mxu0 %v11135_v54 }
 0x2db   :  { %10277 = vmatpush3.bf16.msra.mxu1 %v11075_v3  ;;  %v13698_v11 = vadd.f32 %v13617_v34, %v7857_v7  ;;  %v8564_v34 = vld.sshfl [vmem:[%s13810_s0 + $0xb8] sm:$0x33 pattern:$0x76325410] }
 0x2dc   :  { %10278 = vmatprep.subr.bf16.mxu1 %v11077_v6 }
 0x2dd   :  { %8515 = vmatpush1.bf16.msra.mxu0 %v11083_v23 }
 0x2de   :  { %8516 = vmatprep.subr.bf16.mxu0 %v11135_v54 }
 0x2df   :  { %10279 = vmatpush3.bf16.msra.mxu1 %v11078_v0 }
 0x2e0   :  { %10308 = vmatprep.subr.bf16.mxu1 %v11081_v37 }
 0x2e1   :  { %8517 = vmatpush1.bf16.msra.mxu0 %v11086_v26 }
 0x2e2   :  { %8415 = vmatmul.mubr.bf16.vlgmr.msra.gmra.mrb[88].mxu1 %v643_v14  ;;  %8518 = vmatprep.subr.bf16.mxu0 %v11135_v54 }
 0x2e3   :  { %10309 = vmatpush3.bf16.msra.mxu1 %v11082_v16  ;;  %8494 = vmatprep.mubr.bf16.mxu1 %v648_v9 }
 0x2e4   :  { %10310 = vmatprep.subr.bf16.mxu1 %v11084_v19 }
 0x2e5   :  { %8519 = vmatpush1.bf16.msra.mxu0 %v11089_v20 }
 0x2e7   :  { %10311 = vmatpush3.bf16.msra.mxu1 %v11085_v24 }
 0x2e8   :  { %10312 = vmatprep.subr.bf16.mxu1 %v11087_v25 }
 0x2eb   :  { %10313 = vmatpush3.bf16.msra.mxu1 %v11088_v28 }
 0x2ec   :  { %10314 = vmatprep.subr.bf16.mxu1 %v11090_v29 }
 0x2ef   :  { %10315 = vmatpush3.bf16.msra.mxu1 %v11091_v18 }
 0x2f0   :  { %8 = vsyncpa [#allocation3], 0  ;;  %8520 = vmatprep.subr.bf16.mxu0 %v11135_v54  ;;  %10316 = vmatprep.subr.bf16.mxu1 %v11093_v31  ;;  %v11096_v38 = vld [vmem:[%s13811_s1 + $0x16e8] sm:$0xff]   ;;  %v462_v30 = vcombine.high %v8564_v34, %v8564_v34  ;;  %vm6658_vm0 = vcmask 785408   ;;  %v11095_v40 = vld [vmem:[%s13811_s1 + $0x1750] sm:$0xff]   ;;  %v647_v55 = vpack.c.bf16 %v13689_v8, %v13689_v8  ;;  %v649_v61 = vpack.c.bf16 %v8564_v34, %v8564_v34 }
 0x2f1   :  { %8521 = vmatpush1.bf16.msra.mxu0 %v11092_v32  ;;  %v11097_v27 = vld [vmem:[%s13811_s1 + $0x16a8] sm:$0xff]   ;;  %v11099_v41 = vld [vmem:[%s13811_s1 + $0x16f0] sm:$0xff]   ;;  %v11098_v39 = vld [vmem:[%s13811_s1 + $0x1758] sm:$0xff]   ;;  %vm8548_vm1 = vcmask 402432  }
 0x2f2   :  { %v650_v36 = vpack.c.bf16 %v462_v30, %v462_v30  ;;  %8522 = vmatprep.subr.bf16.mxu0 %v11135_v54  ;;  %v11100_v47 = vld [vmem:[%s13811_s1 + $0x16b0] sm:$0xff]   ;;  %v11102_v35 = vld [vmem:[%s13811_s1 + $0x16f8] sm:$0xff]   ;;  %v11101_v51 = vld [vmem:[%s13811_s1 + $0x1760] sm:$0xff]  }
 0x2f3   :  { %10317 = vmatpush3.bf16.msra.mxu1 %v11094_v33  ;;  %v11103_v52 = vld [vmem:[%s13811_s1 + $0x16b8] sm:$0xff]   ;;  %v11105_v48 = vld [vmem:[%s13811_s1 + $0x1768] sm:$0xff]   ;;  %s11136_s1 = smov [#allocation2]  }
 0x2f4   :  { %10318 = vmatprep.subr.bf16.mxu1 %v11096_v38  ;;  %9316 = vmatprep.mubr.msk.bf16.mxu0 %vm6658_vm0, %v650_v36  ;;  %s8556_s14 = sshll.u32 %s11136_s1, 4  ;;  %s8557_s14 = int_to_ptr.vmem [resolvable:$true] %s8556_s14 }
 0x2f5   :  { %v10016_v42 = vpop.f32.mrb[64].mxu1  ;;  %8523 = vmatpush1.bf16.msra.mxu0 %v11095_v40  ;;  %s11110_s15 = scalar_lea.vmem %s8557_s14, 32  ;;  %p11115_p1 = scmp.lt.s32.totalorder %s8557_s14, %s8557_s14 }
 0x2f6   :  { %v10017_v43 = vpop.f32.mrb[65].mxu1  ;;  %8524 = vmatprep.subr.bf16.mxu0 %v11135_v54  ;;  %p11111_p0 = scmp.ne.s32.totalorder %s8557_s14, %s11110_s15  ;;  %p11116_p2 = scmp.lt.s32.totalorder %s11110_s15, %s11110_s15 }
 0x2f7   :  { %v10018_v44 = vadd.f32 %v10017_v43, %v10016_v42  ;;  %v10019_v46 = vpop.f32.mrb[66].mxu1  ;;  %10319 = vmatpush3.bf16.msra.mxu1 %v11097_v27  ;;  %v10082_v57 = vpop.f32.mrb[64].mxu0 }
 0x2f8   :  { %v10020_v49 = vpop.f32.mrb[67].mxu1  ;;  %10320 = vmatprep.subr.bf16.mxu1 %v11099_v41  ;;  %v10083_v45 = vpop.f32.mrb[65].mxu0  ;;  %p11117_p3 = por %p11116_p2, %p11115_p1 }
 0x2f9   :  { %v7937_v50 = vadd.f32 %v10018_v44, %v13698_v11  ;;  %8525 = vmatpush1.bf16.msra.mxu0 %v11098_v39  ;;  %v10084_v58 = vadd.f32 %v10083_v45, %v10082_v57  ;;  %v10085_v60 = vpop.f32.mrb[66].mxu0 }
 0x2fa   :  { %8526 = vmatprep.subr.bf16.mxu0 %v11135_v54  ;;  %v10086_v62 = vpop.f32.mrb[67].mxu0  ;;  %p11118_p4 = pnand %p11117_p3, %p11111_p0 }
 0x2fb   :  { %10321 = vmatpush3.bf16.msra.mxu1 %v11100_v47  ;;  %v7977_v53 = vadd.f32 %v13718_v21, %v7937_v50 }
 0x2fc   :  { %10322 = vmatprep.subr.bf16.mxu1 %v11102_v35 }
 0x2fd   :  { %8527 = vmatpush1.bf16.msra.mxu0 %v11101_v51 }
 0x2fe   :  { %8528 = vmatprep.subr.bf16.mxu0 %v11135_v54 }
 0x2ff   :  { %10323 = vmatpush3.bf16.msra.mxu1 %v11103_v52 }
 0x301   :  { %8529 = vmatpush1.bf16.msra.mxu0 %v11105_v48 }
 0x302   :  { %8495 = vmatmul.mubr.bf16.vlgmr.msra.gmra.mrb[92].mxu1 %v647_v55 }
 0x304   :  { %8535 = vmatmul.mubr.bf16.vlgmr.msra.gmra.mrb[88].mxu0 %v649_v61 }
 0x315   :  { %v10060_v63 = vpop.f32.mrb[68].mxu1 }
 0x316   :  { %v10061_v1 = vpop.f32.mrb[69].mxu1 }
 0x317   :  { %v10062_v56 = vadd.f32 %v10061_v1, %v10060_v63  ;;  %v10063_v2 = vpop.f32.mrb[70].mxu1  ;;  %v10126_v6 = vpop.f32.mrb[68].mxu0 }
 0x318   :  { %v10064_v59 = vpop.f32.mrb[71].mxu1  ;;  %v10127_v7 = vpop.f32.mrb[69].mxu0 }
 0x319   :  { %v8017_v3 = vadd.f32 %v10062_v56, %v7977_v53  ;;  %v10128_v8 = vadd.f32 %v10127_v7, %v10126_v6  ;;  %v10129_v10 = vpop.f32.mrb[70].mxu0 }
 0x31a   :  { %v10130_v54 = vpop.f32.mrb[71].mxu0 }
 0x31b   :  { %v8057_v5 = vadd.f32 %v10084_v58, %v8017_v3 }
 0x335   :  { %v10104_v0 = vpop.f32.mrb[72].mxu1 }
 0x336   :  { %v10105_v11 = vpop.f32.mrb[73].mxu1 }
 0x337   :  { %v10106_v37 = vadd.f32 %v10105_v11, %v10104_v0  ;;  %v10107_v4 = vpop.f32.mrb[74].mxu1  ;;  %v10170_v16 = vpop.f32.mrb[72].mxu0 }
 0x338   :  { %v10108_v12 = vpop.f32.mrb[75].mxu1  ;;  %v10171_v17 = vpop.f32.mrb[73].mxu0 }
 0x339   :  { %v8097_v14 = vadd.f32 %v10106_v37, %v8057_v5  ;;  %v10172_v19 = vadd.f32 %v10171_v17, %v10170_v16  ;;  %v10173_v21 = vpop.f32.mrb[74].mxu0 }
 0x33a   :  { %v10174_v13 = vpop.f32.mrb[75].mxu0 }
 0x33b   :  { %v8137_v15 = vadd.f32 %v10128_v8, %v8097_v14 }
 0x355   :  { %v10148_v9 = vpop.f32.mrb[76].mxu1 }
 0x356   :  { %v10149_v22 = vpop.f32.mrb[77].mxu1 }
 0x357   :  { %v10150_v23 = vadd.f32 %v10149_v22, %v10148_v9  ;;  %v10151_v24 = vpop.f32.mrb[78].mxu1  ;;  %v10214_v29 = vpop.f32.mrb[76].mxu0 }
 0x358   :  { %v10152_v25 = vpop.f32.mrb[79].mxu1  ;;  %v10215_v20 = vpop.f32.mrb[77].mxu0 }
 0x359   :  { %v8177_v26 = vadd.f32 %v10150_v23, %v8137_v15  ;;  %v10216_v18 = vadd.f32 %v10215_v20, %v10214_v29  ;;  %v10217_v31 = vpop.f32.mrb[78].mxu0 }
 0x35a   :  { %v10218_v32 = vpop.f32.mrb[79].mxu0 }
 0x35b   :  { %v8217_v28 = vadd.f32 %v10172_v19, %v8177_v26 }
 0x375   :  { %v10192_v33 = vpop.f32.mrb[80].mxu1 }
 0x376   :  { %v10193_v34 = vpop.f32.mrb[81].mxu1 }
 0x377   :  { %v10194_v38 = vadd.f32 %v10193_v34, %v10192_v33  ;;  %v10195_v30 = vpop.f32.mrb[82].mxu1  ;;  %v10258_v41 = vpop.f32.mrb[80].mxu0 }
 0x378   :  { %v10196_v36 = vpop.f32.mrb[83].mxu1  ;;  %v10259_v42 = vpop.f32.mrb[81].mxu0 }
 0x379   :  { %v8257_v40 = vadd.f32 %v10194_v38, %v8217_v28  ;;  %v10260_v43 = vadd.f32 %v10259_v42, %v10258_v41  ;;  %v10261_v44 = vpop.f32.mrb[82].mxu0 }
 0x37a   :  { %v10262_v46 = vpop.f32.mrb[83].mxu0 }
 0x37b   :  { %v8297_v27 = vadd.f32 %v10216_v18, %v8257_v40 }
 0x395   :  { %v10236_v39 = vpop.f32.mrb[84].mxu1 }
 0x396   :  { %v10237_v47 = vpop.f32.mrb[85].mxu1 }
 0x397   :  { %v10238_v49 = vadd.f32 %v10237_v47, %v10236_v39  ;;  %v10239_v35 = vpop.f32.mrb[86].mxu1  ;;  %v10302_v53 = vpop.f32.mrb[84].mxu0 }
 0x398   :  { %v10240_v50 = vpop.f32.mrb[87].mxu1  ;;  %v10303_v55 = vpop.f32.mrb[85].mxu0 }
 0x399   :  { %v8337_v51 = vadd.f32 %v10238_v49, %v8297_v27  ;;  %v10304_v48 = vadd.f32 %v10303_v55, %v10302_v53  ;;  %v10305_v57 = vpop.f32.mrb[86].mxu0 }
 0x39a   :  { %v10306_v45 = vpop.f32.mrb[87].mxu0 }
 0x39b   :  { %v8377_v52 = vadd.f32 %v10260_v43, %v8337_v51 }
 0x3b5   :  { %v10280_v58 = vpop.f32.mrb[88].mxu1 }
 0x3b6   :  { %v10281_v60 = vpop.f32.mrb[89].mxu1 }
 0x3b7   :  { %v10282_v61 = vadd.f32 %v10281_v60, %v10280_v58  ;;  %v10283_v62 = vpop.f32.mrb[90].mxu1 }
 0x3b8   :  { %v10284_v63 = vpop.f32.mrb[91].mxu1 }
 0x3b9   :  { %v8417_v1 = vadd.f32 %v10282_v61, %v8377_v52 }
 0x3bb   :  { %v8457_v56 = vadd.f32 %v10304_v48, %v8417_v1 }
 0x3d5   :  { %v10324_v2 = vpop.f32.mrb[92].mxu1 }
 0x3d6   :  { %v10325_v59 = vpop.f32.mrb[93].mxu1 }
 0x3d7   :  { %v10326_v3 = vadd.f32 %v10325_v59, %v10324_v2  ;;  %v10327_v5 = vpop.f32.mrb[94].mxu1  ;;  %v8536_v8 = vpop.f32.mrb[88].mxu0 }
 0x3d8   :  { %v10328_v6 = vpop.f32.mrb[95].mxu1  ;;  %v8538_v10 = vpop.f32.mrb[89].mxu0 }
 0x3d9   :  { %v8497_v7 = vadd.f32 %v10326_v3, %v8457_v56  ;;  %v8539_v0 = vpop.f32.mrb[90].mxu0 }
 0x3da   :  { %v8540_v11 = vpop.f32.mrb[91].mxu0 }
 0x3db   :  { %v8537_v54 = vadd.f32 %v8536_v8, %v8497_v7 }
 0x3dd   :  { %v9317_v37 = vmul.f32 -1.442695, %v8537_v54 }
 0x3df   :  { %11106 = vpow2.f32 %v9317_v37 }
 0x3e9   :  { %v11107_v4 = vpop.eup %11106 }
 0x3ea   :  { %v8545_v12 = vadd.f32 1.0, %v11107_v4 }
 0x3ec   :  { %11108 = vrcp.f32 %v8545_v12 }
 0x3f6   :  { %v11109_v14 = vpop.eup %11108 }
 0x3f7   :  { %8549 = vst.msk [vmem:[#allocation2] sm:$0x3] %vm8548_vm1, %v11109_v14 }
 0x3f8   :  { %11121 = shalt.err (!%p11118_p4)
}
 0x3f9   :  { %s11122_s18 = scalar_lea.hbm %s13813_s3, 32 }
 0x3fa   :  { %p11123_p5 = scmp.ne.s32.totalorder %s13813_s3, %s11122_s18  ;;  %p11126_p6 = scmp.lt.u32.totalorder %s11122_s18, %s13813_s3 }
 0x3fc   :  { %p11128_p7 = pnand %p11126_p6, %p11123_p5 }
 0x3fe   :  { %11131 = shalt.err (!%p11128_p7)
}
 0x3ff   :  { %8559 = dma.vmem_to_hbm [thread:$0]  %s8557_s14, 32, %s13813_s3, [#allocation3]  }
 0x400   :  { %11132 = dma.done.wait [#allocation3], 32  }
 0x401   :  { %11133 = vsyncadd [#allocation3], 4294967264 }
 0x402   :  { %8563 = vsyncpa [#allocation3], 1 }

</bundles_post_ra>
